<compile_context>
chip_gen: v7x
topology: tpu7x:2x2x1
jax: 0.10.0
libtpu: 0.0.40
codegen_flags: <defaults>
</compile_context>

<pallas_src>
import functools
import math

import jax
import jax.numpy as jnp
from jax.experimental import pallas as pl
from jax.experimental.pallas import tpu as pltpu

# 48 MiB: safe on v5e/v6e (128 MiB physical) and v7x (64 MiB per TensorCore).
VMEM_LIMIT = 48 * 1024 * 1024


def _pick_tile(dim, target, align):
    """Largest tile <= target that divides `dim` (aligned); falls back to full dim."""
    if dim <= target:
        return dim
    t = (target // align) * align
    while t >= align:
        if dim % t == 0:
            return t
        t -= align
    return dim


# -----------------------------------------------------------------------------
# Kernels
# -----------------------------------------------------------------------------
def _matmul_bias_kernel(x_ref, w_ref, b_ref, o_ref, acc_ref, *, activation):
    """acc += x @ w over grid axis 2; epilogue: + bias (+ optional activation)."""
    @pl.when(pl.program_id(2) == 0)
    def _():
        acc_ref[...] = jnp.zeros_like(acc_ref)

    acc_ref[...] += jnp.dot(x_ref[...], w_ref[...],
                            preferred_element_type=jnp.float32)

    @pl.when(pl.program_id(2) == pl.num_programs(2) - 1)
    def _():
        y = acc_ref[...] + b_ref[...]
        if activation == "gelu":
            # TODO(synk): tanh-approximate GELU; HF BERT default is erf-GELU.
            y = 0.5 * y * (1.0 + jnp.tanh(0.7978845608028654 * (y + 0.044715 * y * y * y)))
        elif activation == "tanh":
            y = jnp.tanh(y)
        o_ref[...] = y.astype(o_ref.dtype)


def _matmul_res_ln_kernel(x_ref, w_ref, b_ref, r_ref, g_ref, be_ref, o_ref,
                          acc_ref, *, eps):
    """acc += x @ w over grid axis 1; epilogue: LayerNorm(acc + bias + residual)."""
    @pl.when(pl.program_id(1) == 0)
    def _():
        acc_ref[...] = jnp.zeros_like(acc_ref)

    acc_ref[...] += jnp.dot(x_ref[...], w_ref[...],
                            preferred_element_type=jnp.float32)

    @pl.when(pl.program_id(1) == pl.num_programs(1) - 1)
    def _():
        y = acc_ref[...] + b_ref[...] + r_ref[...].astype(jnp.float32)
        mean = jnp.mean(y, axis=-1, keepdims=True)
        var = jnp.mean(jnp.square(y - mean), axis=-1, keepdims=True)
        normed = (y - mean) * jax.lax.rsqrt(var + eps)
        o_ref[...] = (normed * g_ref[...] + be_ref[...]).astype(o_ref.dtype)


def _emb_ln_kernel(we_ref, pe_ref, te_ref, g_ref, b_ref, o_ref, *, eps):
    """LayerNorm(word_emb + pos_emb + type_emb) for one sequence tile (f32 math)."""
    x = we_ref[...] + pe_ref[...] + te_ref[...]
    mean = jnp.mean(x, axis=-1, keepdims=True)
    var = jnp.mean(jnp.square(x - mean), axis=-1, keepdims=True)
    normed = (x - mean) * jax.lax.rsqrt(var + eps)
    o_ref[...] = (normed * g_ref[...] + b_ref[...]).astype(o_ref.dtype)


def _attention_kernel(qkv_ref, m_ref, o_ref, *, num_heads, hidden, head_dim):
    """One sequence of masked softmax attention over all heads.

    qkv_ref: (L, 3H) bf16 in [Q heads | K heads | V heads] column order,
    with the 1/sqrt(dh) scale already folded into the Q weight/bias.
    Output is the merged-head (L, H) context (lane-dense store).
    """
    blk = qkv_ref[...]            # (L, 3H) bf16
    mask = m_ref[...]             # (1, L) f32 additive mask
    H, dh = hidden, head_dim
    parts = []
    for h in range(num_heads):
        q = blk[:, h * dh:(h + 1) * dh]
        k = blk[:, H + h * dh:H + (h + 1) * dh]
        v = blk[:, 2 * H + h * dh:2 * H + (h + 1) * dh]
        s = jax.lax.dot_general(q, k, (((1,), (1,)), ((), ())),
                                preferred_element_type=jnp.float32)   # (L, L)
        s = s + mask
        s = s - jnp.max(s, axis=-1, keepdims=True)
        p = jnp.exp(s)
        p = p * pl.reciprocal(jnp.sum(p, axis=-1, keepdims=True), approx=True)
        parts.append(jnp.dot(p.astype(jnp.bfloat16), v,
                             preferred_element_type=jnp.float32))     # (L, dh)
    o_ref[...] = jnp.concatenate(parts, axis=-1).astype(o_ref.dtype)


def _pooler_cosine_kernel(cls_ref, pw_ref, pb_ref, mw_ref, mb_ref, o_ref, *,
                          inv_temp, eps, add_mlp):
    """Fused BERT pooler + optional MLP(tanh) + SimCSE cosine head.

    cls_ref: (3, B, H) bf16 — cls rows grouped as [z1; z2; z3].
    Output: (B, 2B) f32 = [cos(z1_i, z2_j), cos(z1_i, z3_j)] / temperature.
    """
    cls = cls_ref[...]
    pw, pb = pw_ref[...], pb_ref[...]
    mw, mb = mw_ref[...], mb_ref[...]

    def pooled_normalized(i):
        h = cls[i]                                                    # (B, H) bf16
        p = jnp.tanh(jnp.dot(h, pw, preferred_element_type=jnp.float32) + pb)
        if add_mlp:
            p = jnp.tanh(jnp.dot(p.astype(jnp.bfloat16), mw,
                                 preferred_element_type=jnp.float32) + mb)
        n = jnp.maximum(jnp.sqrt(jnp.sum(p * p, axis=-1, keepdims=True)), eps)
        return p / n

    z1n = pooled_normalized(0)
    z2n = pooled_normalized(1)
    z3n = pooled_normalized(2)
    dims = (((1,), (1,)), ((), ()))
    c12 = jax.lax.dot_general(z1n, z2n, dims, preferred_element_type=jnp.float32)
    c13 = jax.lax.dot_general(z1n, z3n, dims, preferred_element_type=jnp.float32)
    o_ref[...] = jnp.concatenate([c12, c13], axis=1) * inv_temp


# -----------------------------------------------------------------------------
# Pallas wrappers
# -----------------------------------------------------------------------------
def dense(x, w, b, activation=None, *, tm=256, tn=1024, tk=512,
          out_dtype=jnp.bfloat16):
    """out = act(x @ w + b); bf16 operands, f32 accumulator, bf16 output."""
    M, K = x.shape
    _, N = w.shape
    tm = _pick_tile(M, tm, 16)
    tn = _pick_tile(N, tn, 128)
    tk = _pick_tile(K, tk, 128)
    kernel = functools.partial(_matmul_bias_kernel, activation=activation)
    return pl.pallas_call(
        kernel,
        out_shape=jax.ShapeDtypeStruct((M, N), out_dtype),
        grid=(M // tm, N // tn, K // tk),
        in_specs=[
            pl.BlockSpec((tm, tk), lambda i, j, k: (i, k)),
            pl.BlockSpec((tk, tn), lambda i, j, k: (k, j)),
            pl.BlockSpec((1, tn), lambda i, j, k: (0, j)),
        ],
        out_specs=pl.BlockSpec((tm, tn), lambda i, j, k: (i, j)),
        scratch_shapes=[pltpu.VMEM((tm, tn), jnp.float32)],
        compiler_params=pltpu.CompilerParams(
            dimension_semantics=("parallel", "parallel", "arbitrary"),
            vmem_limit_bytes=VMEM_LIMIT),
    )(x, w, b)


def attention(qkv, mask, num_heads, hidden, seq_len):
    """Masked softmax attention, one sequence per grid step, all heads in-kernel.

    qkv: (N*L, 3H) bf16 (Q/K/V column groups, per-head dh-wide sub-columns).
    Returns merged-head context (N*L, H) bf16.
    """
    M, three_h = qkv.shape
    N = M // seq_len
    kernel = functools.partial(_attention_kernel, num_heads=num_heads,
                               hidden=hidden, head_dim=hidden // num_heads)
    return pl.pallas_call(
        kernel,
        out_shape=jax.ShapeDtypeStruct((M, hidden), jnp.bfloat16),
        grid=(N,),
        in_specs=[
            pl.BlockSpec((seq_len, three_h), lambda n: (n, 0)),
            pl.BlockSpec((None, 1, seq_len), lambda n: (n, 0, 0)),
        ],
        out_specs=pl.BlockSpec((seq_len, hidden), lambda n: (n, 0)),
        compiler_params=pltpu.CompilerParams(
            dimension_semantics=("parallel",),
            vmem_limit_bytes=VMEM_LIMIT),
    )(qkv, mask)


def matmul_residual_layernorm(x, w, b, residual, gamma, beta, *,
                              eps=1e-12, tm=256, tk=512):
    """LayerNorm(x @ w + b + residual) * gamma + beta, tiled over (M, K)."""
    M, K = x.shape
    _, H = w.shape
    tm = _pick_tile(M, tm, 16)
    tk = _pick_tile(K, tk, 128)
    kernel = functools.partial(_matmul_res_ln_kernel, eps=eps)
    return pl.pallas_call(
        kernel,
        out_shape=jax.ShapeDtypeStruct((M, H), jnp.bfloat16),
        grid=(M // tm, K // tk),
        in_specs=[
            pl.BlockSpec((tm, tk), lambda i, k: (i, k)),
            pl.BlockSpec((tk, H), lambda i, k: (k, 0)),
            pl.BlockSpec((1, H), lambda i, k: (0, 0)),
            pl.BlockSpec((tm, H), lambda i, k: (i, 0)),
            pl.BlockSpec((1, H), lambda i, k: (0, 0)),
            pl.BlockSpec((1, H), lambda i, k: (0, 0)),
        ],
        out_specs=pl.BlockSpec((tm, H), lambda i, k: (i, 0)),
        scratch_shapes=[pltpu.VMEM((tm, H), jnp.float32)],
        compiler_params=pltpu.CompilerParams(
            dimension_semantics=("parallel", "arbitrary"),
            vmem_limit_bytes=VMEM_LIMIT),
    )(x, w, b, residual, gamma, beta)


def embed_layernorm(word_e, pos_e, type_e, gamma, beta, *, eps=1e-12):
    """LayerNorm(word + pos + type) -> (N*L, H) bf16; pos table broadcast in-kernel."""
    N, L, H = word_e.shape
    kernel = functools.partial(_emb_ln_kernel, eps=eps)
    return pl.pallas_call(
        kernel,
        out_shape=jax.ShapeDtypeStruct((N * L, H), jnp.bfloat16),
        grid=(N,),
        in_specs=[
            pl.BlockSpec((None, L, H), lambda n: (n, 0, 0)),
            pl.BlockSpec((L, H), lambda n: (0, 0)),
            pl.BlockSpec((None, L, H), lambda n: (n, 0, 0)),
            pl.BlockSpec((1, H), lambda n: (0, 0)),
            pl.BlockSpec((1, H), lambda n: (0, 0)),
        ],
        out_specs=pl.BlockSpec((L, H), lambda n: (n, 0)),
        compiler_params=pltpu.CompilerParams(
            dimension_semantics=("parallel",),
            vmem_limit_bytes=VMEM_LIMIT),
    )(word_e, pos_e, type_e, gamma, beta)


def pooler_mlp_cosine(cls3, pw, pb, mw, mb, temperature, *, add_mlp, eps=1e-8):
    """Fused pooler + optional MLP + cosine head on the (3, B, H) cls block."""
    _, B, H = cls3.shape
    kernel = functools.partial(_pooler_cosine_kernel, inv_temp=1.0 / temperature,
                               eps=eps, add_mlp=add_mlp)
    return pl.pallas_call(
        kernel,
        out_shape=jax.ShapeDtypeStruct((B, 2 * B), jnp.float32),
        grid=(1,),
        in_specs=[
            pl.BlockSpec((3, B, H), lambda i: (0, 0, 0)),
            pl.BlockSpec((H, H), lambda i: (0, 0)),
            pl.BlockSpec((1, H), lambda i: (0, 0)),
            pl.BlockSpec((H, H), lambda i: (0, 0)),
            pl.BlockSpec((1, H), lambda i: (0, 0)),
        ],
        out_specs=pl.BlockSpec((B, 2 * B), lambda i: (0, 0)),
        compiler_params=pltpu.CompilerParams(
            dimension_semantics=("arbitrary",),
            vmem_limit_bytes=VMEM_LIMIT),
    )(cls3, pw, pb, mw, mb)


# -----------------------------------------------------------------------------
# Parameters (deterministic, synthetic "BERT-mini" config, kernel-friendly layout)
# -----------------------------------------------------------------------------
def init_params(key, vocab, max_pos, type_vocab, H, I, num_layers, num_labels,
                num_heads):
    dh = H // num_heads
    attn_scale = 1.0 / math.sqrt(dh)
    keys = iter(jax.random.split(key, 16 + 16 * num_layers))

    def w(shape, scale=0.02):
        return scale * jax.random.normal(next(keys), shape, dtype=jnp.float32)

    params = {
        "word_emb": w((vocab, H)),
        "pos_emb": w((max_pos, H)),
        "type_emb": w((type_vocab, H)),
        "emb_ln_g": jnp.ones((1, H), jnp.float32),
        "emb_ln_b": jnp.zeros((1, H), jnp.float32),
        "pooler_w": w((H, H)).astype(jnp.bfloat16),
        "pooler_b": jnp.zeros((1, H), jnp.float32),
        "mlp_w": w((H, H)).astype(jnp.bfloat16),      # self.mlp_layer (Linear + Tanh)
        "mlp_b": jnp.zeros((1, H), jnp.float32),
        "cls_w": w((H, num_labels)),                  # self.linear — unused in forward
        "cls_b": jnp.zeros((1, num_labels), jnp.float32),
        "layers": [],
    }
    for _ in range(num_layers):
        wq, wk, wv = w((H, H)), w((H, H)), w((H, H))
        bq = jnp.zeros((H,), jnp.float32)
        bk = jnp.zeros((H,), jnp.float32)
        bv = jnp.zeros((H,), jnp.float32)
        # Fused QKV weight (H, 3H), column groups [Q | K | V]; the attention
        # scale 1/sqrt(dh) is folded into wq/bq so the kernel never scales scores.
        wqkv = jnp.concatenate([wq * attn_scale, wk, wv], axis=1)
        bqkv = jnp.concatenate([bq * attn_scale, bk, bv]).reshape(1, 3 * H)
        params["layers"].append({
            "wqkv": wqkv.astype(jnp.bfloat16),
            "bqkv": bqkv,
            "wo": w((H, H)).astype(jnp.bfloat16),
            "bo": jnp.zeros((1, H), jnp.float32),
            "ln1_g": jnp.ones((1, H), jnp.float32),
            "ln1_b": jnp.zeros((1, H), jnp.float32),
            "w1": w((H, I)).astype(jnp.bfloat16),
            "b1": jnp.zeros((1, I), jnp.float32),
            "w2": w((I, H)).astype(jnp.bfloat16),
            "b2": jnp.zeros((1, H), jnp.float32),
            "ln2_g": jnp.ones((1, H), jnp.float32),
            "ln2_b": jnp.zeros((1, H), jnp.float32),
        })
    return params


# -----------------------------------------------------------------------------
# Forward pass (mirrors BertForSupervisedSimCse.forward)
# -----------------------------------------------------------------------------
def forward(params, input_ids, attention_mask, token_type_ids, *,
            num_heads, temperature, add_mlp_layer=True):
    B = input_ids.shape[0]
    L = input_ids.shape[-1]
    ids = input_ids.reshape(-1, L)      # (N, L), N = 3*B (anchor / positive / hard-neg)
    am = attention_mask.reshape(-1, L)
    tt = token_type_ids.reshape(-1, L)
    N = ids.shape[0]
    H = params["word_emb"].shape[1]

    # TODO(synk): embedding gather stays in plain JAX (jnp.take); a Pallas gather
    # needs per-row DMA and is not the hot path at these sizes.
    word_e = params["word_emb"][ids]     # (N, L, H) f32
    type_e = params["type_emb"][tt]      # (N, L, H) f32
    pos_e = params["pos_emb"][:L]        # (L, H) — broadcast inside the kernel
    x = embed_layernorm(word_e, pos_e, type_e,
                        params["emb_ln_g"], params["emb_ln_b"])   # (N*L, H) bf16

    # additive attention mask per sequence: (N, 1, L)
    mask = ((1.0 - am.astype(jnp.float32)) * -10000.0)[:, None, :]

    for layer in params["layers"]:
        qkv = dense(x, layer["wqkv"], layer["bqkv"])              # (N*L, 3H) bf16
        ctx = attention(qkv, mask, num_heads, H, L)               # (N*L, H) bf16
        x = matmul_residual_layernorm(ctx, layer["wo"], layer["bo"],
                                      x, layer["ln1_g"], layer["ln1_b"])
        ff = dense(x, layer["w1"], layer["b1"], activation="gelu")
        x = matmul_residual_layernorm(ff, layer["w2"], layer["b2"],
                                      x, layer["ln2_g"], layer["ln2_b"])

    # cls rows, regrouped to (3, B, H) = [z1; z2; z3] for the fused tail kernel.
    cls = x.reshape(N, L, H)[:, 0, :]                       # (3B, H) bf16
    cls3 = cls.reshape(B, 3, H).transpose(1, 0, 2)          # (3, B, H)
    # cos_sim = cat([cos(z1_i, z2_j), cos(z1_i, z3_j)], dim=1) / temperature -> (B, 2B)
    return pooler_mlp_cosine(cls3, params["pooler_w"], params["pooler_b"],
                             params["mlp_w"], params["mlp_b"],
                             temperature, add_mlp=add_mlp_layer)


# -----------------------------------------------------------------------------
# Driver
# -----------------------------------------------------------------------------
if __name__ == "__main__":
    B, L = 2, 16                # batch of SimCSE triplets, sequence length
    H, num_heads = 32, 2        # hidden size, attention heads
    I, num_layers = 64, 2       # FFN intermediate size, encoder layers
    vocab, max_pos, type_vocab = 50, 32, 2
    temperature = 0.05
    num_labels = 2

    key = jax.random.PRNGKey(0)
    k_params, k_ids, k_len = jax.random.split(key, 3)
    params = init_params(k_params, vocab, max_pos, type_vocab, H, I,
                         num_layers, num_labels, num_heads)

    input_ids = jax.random.randint(k_ids, (B, 3, L), 0, vocab, dtype=jnp.int32)
    lengths = jax.random.randint(k_len, (B, 3), 4, L + 1, dtype=jnp.int32)
    attention_mask = (jnp.arange(L)[None, None, :] < lengths[:, :, None]).astype(jnp.int32)
    token_type_ids = jnp.zeros((B, 3, L), dtype=jnp.int32)

    fwd = jax.jit(functools.partial(
        forward, num_heads=num_heads, temperature=temperature, add_mlp_layer=True))
    cos_sim = fwd(params, input_ids, attention_mask, token_type_ids)
    cos_sim = jax.block_until_ready(cos_sim)

    assert cos_sim.shape == (B, 2 * B), cos_sim.shape
    assert cos_sim.dtype == jnp.float32
    assert bool(jnp.all(jnp.isfinite(cos_sim)))
    print("KERNEL_OK")
</pallas_src>

<mosaic_0001>
module attributes {stable_mosaic.version = 11 : i64} {
  func.func @_emb_ln_kernel(%arg0: i32, %arg1: memref<1x16x32xf32, #tpu.memory_space<vmem>>, %arg2: memref<16x32xf32, #tpu.memory_space<vmem>>, %arg3: memref<1x16x32xf32, #tpu.memory_space<vmem>>, %arg4: memref<1x32xf32, #tpu.memory_space<vmem>>, %arg5: memref<1x32xf32, #tpu.memory_space<vmem>>, %arg6: memref<16x32xbf16, #tpu.memory_space<vmem>>) attributes {dimension_semantics = [#tpu.dimension_semantics<parallel>], iteration_bounds = array<i64: 6>, scalar_prefetch = 0 : i64, scratch_operands = 0 : i64, tpu.core_type = #tpu.core_type<tc>, window_params = [{transform_indices = @transform_0, window_bounds = array<i64: 1, 16, 32>}, {pipeline_mode = #tpu.pipeline_mode<synchronous>, transform_indices = @transform_1, window_bounds = array<i64: 16, 32>}, {transform_indices = @transform_2, window_bounds = array<i64: 1, 16, 32>}, {pipeline_mode = #tpu.pipeline_mode<synchronous>, transform_indices = @transform_3, window_bounds = array<i64: 1, 32>}, {pipeline_mode = #tpu.pipeline_mode<synchronous>, transform_indices = @transform_4, window_bounds = array<i64: 1, 32>}, {transform_indices = @transform_5, window_bounds = array<i64: 16, 32>}]} {
    %c0 = arith.constant 0 : index
    %c0_0 = arith.constant 0 : index
    %c0_1 = arith.constant 0 : index
    %0 = vector.load %arg1[%c0, %c0_0, %c0_1] : memref<1x16x32xf32, #tpu.memory_space<vmem>>, vector<1x16x32xf32>
    %1 = vector.shape_cast %0 : vector<1x16x32xf32> to vector<16x32xf32>
    %c0_2 = arith.constant 0 : index
    %c0_3 = arith.constant 0 : index
    %2 = vector.load %arg2[%c0_2, %c0_3] : memref<16x32xf32, #tpu.memory_space<vmem>>, vector<16x32xf32>
    %3 = arith.addf %1, %2 : vector<16x32xf32>
    %c0_4 = arith.constant 0 : index
    %c0_5 = arith.constant 0 : index
    %c0_6 = arith.constant 0 : index
    %4 = vector.load %arg3[%c0_4, %c0_5, %c0_6] : memref<1x16x32xf32, #tpu.memory_space<vmem>>, vector<1x16x32xf32>
    %5 = vector.shape_cast %4 : vector<1x16x32xf32> to vector<16x32xf32>
    %6 = arith.addf %3, %5 : vector<16x32xf32>
    %cst = arith.constant dense<0.000000e+00> : vector<16xf32>
    %7 = vector.multi_reduction <add>, %6, %cst [1] : vector<16x32xf32> to vector<16xf32>
    %8 = vector.shape_cast %7 : vector<16xf32> to vector<16x1xf32>
    %cst_7 = arith.constant 3.200000e+01 : f32
    %9 = vector.broadcast %cst_7 : f32 to vector<16x1xf32>
    %10 = arith.divf %8, %9 : vector<16x1xf32>
    %11 = vector.broadcast %10 : vector<16x1xf32> to vector<16x32xf32>
    %12 = arith.subf %6, %11 : vector<16x32xf32>
    %13 = arith.mulf %12, %12 : vector<16x32xf32>
    %cst_8 = arith.constant dense<0.000000e+00> : vector<16xf32>
    %14 = vector.multi_reduction <add>, %13, %cst_8 [1] : vector<16x32xf32> to vector<16xf32>
    %15 = vector.shape_cast %14 : vector<16xf32> to vector<16x1xf32>
    %cst_9 = arith.constant 3.200000e+01 : f32
    %16 = vector.broadcast %cst_9 : f32 to vector<16x1xf32>
    %17 = arith.divf %15, %16 : vector<16x1xf32>
    %18 = vector.broadcast %10 : vector<16x1xf32> to vector<16x32xf32>
    %19 = arith.subf %6, %18 : vector<16x32xf32>
    %cst_10 = arith.constant 9.99999996E-13 : f32
    %20 = vector.broadcast %cst_10 : f32 to vector<16x1xf32>
    %21 = arith.addf %17, %20 : vector<16x1xf32>
    %22 = math.rsqrt %21 : vector<16x1xf32>
    %23 = vector.broadcast %22 : vector<16x1xf32> to vector<16x32xf32>
    %24 = arith.mulf %19, %23 : vector<16x32xf32>
    %c0_11 = arith.constant 0 : index
    %c0_12 = arith.constant 0 : index
    %25 = vector.load %arg4[%c0_11, %c0_12] : memref<1x32xf32, #tpu.memory_space<vmem>>, vector<1x32xf32>
    %26 = vector.broadcast %25 : vector<1x32xf32> to vector<16x32xf32>
    %27 = arith.mulf %24, %26 : vector<16x32xf32>
    %c0_13 = arith.constant 0 : index
    %c0_14 = arith.constant 0 : index
    %28 = vector.load %arg5[%c0_13, %c0_14] : memref<1x32xf32, #tpu.memory_space<vmem>>, vector<1x32xf32>
    %29 = vector.broadcast %28 : vector<1x32xf32> to vector<16x32xf32>
    %30 = arith.addf %27, %29 : vector<16x32xf32>
    %31 = arith.truncf %30 : vector<16x32xf32> to vector<16x32xbf16>
    %c0_15 = arith.constant 0 : index
    %c0_16 = arith.constant 0 : index
    %32 = vector.load %arg6[%c0_15, %c0_16] : memref<16x32xbf16, #tpu.memory_space<vmem>>, vector<16x32xbf16>
    tpu.vector_store %arg6[%c0_15, %c0_16], %31 {strides = array<i32>} : memref<16x32xbf16, #tpu.memory_space<vmem>>, vector<16x32xbf16>,
    return
  }
  func.func @transform_0(%arg0: i32) -> (i32, i32, i32) {
    %c0_i32 = arith.constant 0 : i32
    %c0_i32_0 = arith.constant 0 : i32
    %c0_i32_1 = arith.constant 0 : i32
    return %arg0, %c0_i32, %c0_i32_0 : i32, i32, i32
  }
  func.func @transform_1(%arg0: i32) -> (i32, i32) {
    %c0_i32 = arith.constant 0 : i32
    %c0_i32_0 = arith.constant 0 : i32
    %c0_i32_1 = arith.constant 0 : i32
    return %c0_i32, %c0_i32_0 : i32, i32
  }
  func.func @transform_2(%arg0: i32) -> (i32, i32, i32) {
    %c0_i32 = arith.constant 0 : i32
    %c0_i32_0 = arith.constant 0 : i32
    %c0_i32_1 = arith.constant 0 : i32
    return %arg0, %c0_i32, %c0_i32_0 : i32, i32, i32
  }
  func.func @transform_3(%arg0: i32) -> (i32, i32) {
    %c0_i32 = arith.constant 0 : i32
    %c0_i32_0 = arith.constant 0 : i32
    %c0_i32_1 = arith.constant 0 : i32
    return %c0_i32, %c0_i32_0 : i32, i32
  }
  func.func @transform_4(%arg0: i32) -> (i32, i32) {
    %c0_i32 = arith.constant 0 : i32
    %c0_i32_0 = arith.constant 0 : i32
    %c0_i32_1 = arith.constant 0 : i32
    return %c0_i32, %c0_i32_0 : i32, i32
  }
  func.func @transform_5(%arg0: i32) -> (i32, i32) {
    %c0_i32 = arith.constant 0 : i32
    %c0_i32_0 = arith.constant 0 : i32
    return %arg0, %c0_i32 : i32, i32
  }
}

module attributes {stable_mosaic.version = 11 : i64} {
  func.func @_matmul_bias_kernel(%arg0: i32, %arg1: i32, %arg2: i32, %arg3: memref<96x32xbf16, #tpu.memory_space<vmem>>, %arg4: memref<32x96xbf16, #tpu.memory_space<vmem>>, %arg5: memref<1x96xf32, #tpu.memory_space<vmem>>, %arg6: memref<96x96xbf16, #tpu.memory_space<vmem>>, %arg7: memref<96x96xf32, #tpu.memory_space<vmem>>) attributes {dimension_semantics = [#tpu.dimension_semantics<parallel>, #tpu.dimension_semantics<parallel>, #tpu.dimension_semantics<arbitrary>], iteration_bounds = array<i64: 1, 1, 1>, scalar_prefetch = 0 : i64, scratch_operands = 1 : i64, tpu.core_type = #tpu.core_type<tc>, window_params = [{transform_indices = @transform_0, window_bounds = array<i64: 96, 32>}, {transform_indices = @transform_1, window_bounds = array<i64: 32, 96>}, {transform_indices = @transform_2, window_bounds = array<i64: 1, 96>}, {transform_indices = @transform_3, window_bounds = array<i64: 96, 96>}]} {
    %c0_i32 = arith.constant 0 : i32
    %0 = arith.cmpi eq, %arg2, %c0_i32 : i32
    %1 = arith.extui %0 : i1 to i32
    %c0_i32_0 = arith.constant 0 : i32
    %2 = arith.cmpi ne, %1, %c0_i32_0 : i32
    scf.if %2 {
      %cst_10 = arith.constant 0.000000e+00 : f32
      %12 = vector.broadcast %cst_10 : f32 to vector<96x96xf32>
      %c0_11 = arith.constant 0 : index
      %c0_12 = arith.constant 0 : index
      %13 = vector.load %arg7[%c0_11, %c0_12] : memref<96x96xf32, #tpu.memory_space<vmem>>, vector<96x96xf32>
      tpu.vector_store %arg7[%c0_11, %c0_12], %12 {strides = array<i32>} : memref<96x96xf32, #tpu.memory_space<vmem>>, vector<96x96xf32>,
    } else {
    }
    %c0 = arith.constant 0 : index
    %c0_1 = arith.constant 0 : index
    %3 = vector.load %arg7[%c0, %c0_1] : memref<96x96xf32, #tpu.memory_space<vmem>>, vector<96x96xf32>
    %c0_2 = arith.constant 0 : index
    %c0_3 = arith.constant 0 : index
    %4 = vector.load %arg3[%c0_2, %c0_3] : memref<96x32xbf16, #tpu.memory_space<vmem>>, vector<96x32xbf16>
    %c0_4 = arith.constant 0 : index
    %c0_5 = arith.constant 0 : index
    %5 = vector.load %arg4[%c0_4, %c0_5] : memref<32x96xbf16, #tpu.memory_space<vmem>>, vector<32x96xbf16>
    %cst = arith.constant dense<0.000000e+00> : vector<96x96xf32>
    %6 = tpu.matmul %4, %5, %cst {dimension_numbers = #tpu.dot_dimension_numbers<[1], [0], [0], [1], [0, 0, 1, 1], [], []>} : vector<96x32xbf16>, vector<32x96xbf16>, vector<96x96xf32> -> vector<96x96xf32>
    %7 = arith.addf %3, %6 : vector<96x96xf32>
    %c0_6 = arith.constant 0 : index
    %c0_7 = arith.constant 0 : index
    %8 = vector.load %arg7[%c0_6, %c0_7] : memref<96x96xf32, #tpu.memory_space<vmem>>, vector<96x96xf32>
    tpu.vector_store %arg7[%c0_6, %c0_7], %7 {strides = array<i32>} : memref<96x96xf32, #tpu.memory_space<vmem>>, vector<96x96xf32>,
    %c0_i32_8 = arith.constant 0 : i32
    %9 = arith.cmpi eq, %arg2, %c0_i32_8 : i32
    %10 = arith.extui %9 : i1 to i32
    %c0_i32_9 = arith.constant 0 : i32
    %11 = arith.cmpi ne, %10, %c0_i32_9 : i32
    scf.if %11 {
      %c0_10 = arith.constant 0 : index
      %c0_11 = arith.constant 0 : index
      %12 = vector.load %arg7[%c0_10, %c0_11] : memref<96x96xf32, #tpu.memory_space<vmem>>, vector<96x96xf32>
      %c0_12 = arith.constant 0 : index
      %c0_13 = arith.constant 0 : index
      %13 = vector.load %arg5[%c0_12, %c0_13] : memref<1x96xf32, #tpu.memory_space<vmem>>, vector<1x96xf32>
      %14 = vector.broadcast %13 : vector<1x96xf32> to vector<96x96xf32>
      %15 = arith.addf %12, %14 : vector<96x96xf32>
      %16 = arith.truncf %15 : vector<96x96xf32> to vector<96x96xbf16>
      %c0_14 = arith.constant 0 : index
      %c0_15 = arith.constant 0 : index
      %17 = vector.load %arg6[%c0_14, %c0_15] : memref<96x96xbf16, #tpu.memory_space<vmem>>, vector<96x96xbf16>
      tpu.vector_store %arg6[%c0_14, %c0_15], %16 {strides = array<i32>} : memref<96x96xbf16, #tpu.memory_space<vmem>>, vector<96x96xbf16>,
    } else {
    }
    return
  }
  func.func @transform_0(%arg0: i32, %arg1: i32, %arg2: i32) -> (i32, i32) {
    %c0_i32 = arith.constant 0 : i32
    return %arg0, %arg2 : i32, i32
  }
  func.func @transform_1(%arg0: i32, %arg1: i32, %arg2: i32) -> (i32, i32) {
    %c0_i32 = arith.constant 0 : i32
    return %arg2, %arg1 : i32, i32
  }
  func.func @transform_2(%arg0: i32, %arg1: i32, %arg2: i32) -> (i32, i32) {
    %c0_i32 = arith.constant 0 : i32
    %c0_i32_0 = arith.constant 0 : i32
    return %c0_i32, %arg1 : i32, i32
  }
  func.func @transform_3(%arg0: i32, %arg1: i32, %arg2: i32) -> (i32, i32) {
    %c0_i32 = arith.constant 0 : i32
    return %arg0, %arg1 : i32, i32
  }
}

module attributes {stable_mosaic.version = 11 : i64} {
  func.func @_matmul_res_ln_kernel(%arg0: i32, %arg1: i32, %arg2: memref<96x32xbf16, #tpu.memory_space<vmem>>, %arg3: memref<32x32xbf16, #tpu.memory_space<vmem>>, %arg4: memref<1x32xf32, #tpu.memory_space<vmem>>, %arg5: memref<96x32xbf16, #tpu.memory_space<vmem>>, %arg6: memref<1x32xf32, #tpu.memory_space<vmem>>, %arg7: memref<1x32xf32, #tpu.memory_space<vmem>>, %arg8: memref<96x32xbf16, #tpu.memory_space<vmem>>, %arg9: memref<96x32xf32, #tpu.memory_space<vmem>>) attributes {dimension_semantics = [#tpu.dimension_semantics<parallel>, #tpu.dimension_semantics<arbitrary>], iteration_bounds = array<i64: 1, 1>, scalar_prefetch = 0 : i64, scratch_operands = 1 : i64, tpu.core_type = #tpu.core_type<tc>, window_params = [{transform_indices = @transform_0, window_bounds = array<i64: 96, 32>}, {transform_indices = @transform_1, window_bounds = array<i64: 32, 32>}, {pipeline_mode = #tpu.pipeline_mode<synchronous>, transform_indices = @transform_2, window_bounds = array<i64: 1, 32>}, {transform_indices = @transform_3, window_bounds = array<i64: 96, 32>}, {pipeline_mode = #tpu.pipeline_mode<synchronous>, transform_indices = @transform_4, window_bounds = array<i64: 1, 32>}, {pipeline_mode = #tpu.pipeline_mode<synchronous>, transform_indices = @transform_5, window_bounds = array<i64: 1, 32>}, {transform_indices = @transform_6, window_bounds = array<i64: 96, 32>}]} {
    %c0_i32 = arith.constant 0 : i32
    %0 = arith.cmpi eq, %arg1, %c0_i32 : i32
    %1 = arith.extui %0 : i1 to i32
    %c0_i32_0 = arith.constant 0 : i32
    %2 = arith.cmpi ne, %1, %c0_i32_0 : i32
    scf.if %2 {
      %cst_10 = arith.constant 0.000000e+00 : f32
      %12 = vector.broadcast %cst_10 : f32 to vector<96x32xf32>
      %c0_11 = arith.constant 0 : index
      %c0_12 = arith.constant 0 : index
      %13 = vector.load %arg9[%c0_11, %c0_12] : memref<96x32xf32, #tpu.memory_space<vmem>>, vector<96x32xf32>
      tpu.vector_store %arg9[%c0_11, %c0_12], %12 {strides = array<i32>} : memref<96x32xf32, #tpu.memory_space<vmem>>, vector<96x32xf32>,
    } else {
    }
    %c0 = arith.constant 0 : index
    %c0_1 = arith.constant 0 : index
    %3 = vector.load %arg9[%c0, %c0_1] : memref<96x32xf32, #tpu.memory_space<vmem>>, vector<96x32xf32>
    %c0_2 = arith.constant 0 : index
    %c0_3 = arith.constant 0 : index
    %4 = vector.load %arg2[%c0_2, %c0_3] : memref<96x32xbf16, #tpu.memory_space<vmem>>, vector<96x32xbf16>
    %c0_4 = arith.constant 0 : index
    %c0_5 = arith.constant 0 : index
    %5 = vector.load %arg3[%c0_4, %c0_5] : memref<32x32xbf16, #tpu.memory_space<vmem>>, vector<32x32xbf16>
    %cst = arith.constant dense<0.000000e+00> : vector<96x32xf32>
    %6 = tpu.matmul %4, %5, %cst {dimension_numbers = #tpu.dot_dimension_numbers<[1], [0], [0], [1], [0, 0, 1, 1], [], []>} : vector<96x32xbf16>, vector<32x32xbf16>, vector<96x32xf32> -> vector<96x32xf32>
    %7 = arith.addf %3, %6 : vector<96x32xf32>
    %c0_6 = arith.constant 0 : index
    %c0_7 = arith.constant 0 : index
    %8 = vector.load %arg9[%c0_6, %c0_7] : memref<96x32xf32, #tpu.memory_space<vmem>>, vector<96x32xf32>
    tpu.vector_store %arg9[%c0_6, %c0_7], %7 {strides = array<i32>} : memref<96x32xf32, #tpu.memory_space<vmem>>, vector<96x32xf32>,
    %c0_i32_8 = arith.constant 0 : i32
    %9 = arith.cmpi eq, %arg1, %c0_i32_8 : i32
    %10 = arith.extui %9 : i1 to i32
    %c0_i32_9 = arith.constant 0 : i32
    %11 = arith.cmpi ne, %10, %c0_i32_9 : i32
    scf.if %11 {
      %c0_10 = arith.constant 0 : index
      %c0_11 = arith.constant 0 : index
      %12 = vector.load %arg9[%c0_10, %c0_11] : memref<96x32xf32, #tpu.memory_space<vmem>>, vector<96x32xf32>
      %c0_12 = arith.constant 0 : index
      %c0_13 = arith.constant 0 : index
      %13 = vector.load %arg4[%c0_12, %c0_13] : memref<1x32xf32, #tpu.memory_space<vmem>>, vector<1x32xf32>
      %14 = vector.broadcast %13 : vector<1x32xf32> to vector<96x32xf32>
      %15 = arith.addf %12, %14 : vector<96x32xf32>
      %c0_14 = arith.constant 0 : index
      %c0_15 = arith.constant 0 : index
      %16 = vector.load %arg5[%c0_14, %c0_15] : memref<96x32xbf16, #tpu.memory_space<vmem>>, vector<96x32xbf16>
      %17 = arith.extf %16 : vector<96x32xbf16> to vector<96x32xf32>
      %18 = arith.addf %15, %17 : vector<96x32xf32>
      %cst_16 = arith.constant dense<0.000000e+00> : vector<96xf32>
      %19 = vector.multi_reduction <add>, %18, %cst_16 [1] : vector<96x32xf32> to vector<96xf32>
      %20 = vector.shape_cast %19 : vector<96xf32> to vector<96x1xf32>
      %cst_17 = arith.constant 3.200000e+01 : f32
      %21 = vector.broadcast %cst_17 : f32 to vector<96x1xf32>
      %22 = arith.divf %20, %21 : vector<96x1xf32>
      %23 = vector.broadcast %22 : vector<96x1xf32> to vector<96x32xf32>
      %24 = arith.subf %18, %23 : vector<96x32xf32>
      %25 = arith.mulf %24, %24 : vector<96x32xf32>
      %cst_18 = arith.constant dense<0.000000e+00> : vector<96xf32>
      %26 = vector.multi_reduction <add>, %25, %cst_18 [1] : vector<96x32xf32> to vector<96xf32>
      %27 = vector.shape_cast %26 : vector<96xf32> to vector<96x1xf32>
      %cst_19 = arith.constant 3.200000e+01 : f32
      %28 = vector.broadcast %cst_19 : f32 to vector<96x1xf32>
      %29 = arith.divf %27, %28 : vector<96x1xf32>
      %30 = vector.broadcast %22 : vector<96x1xf32> to vector<96x32xf32>
      %31 = arith.subf %18, %30 : vector<96x32xf32>
      %cst_20 = arith.constant 9.99999996E-13 : f32
      %32 = vector.broadcast %cst_20 : f32 to vector<96x1xf32>
      %33 = arith.addf %29, %32 : vector<96x1xf32>
      %34 = math.rsqrt %33 : vector<96x1xf32>
      %35 = vector.broadcast %34 : vector<96x1xf32> to vector<96x32xf32>
      %36 = arith.mulf %31, %35 : vector<96x32xf32>
      %c0_21 = arith.constant 0 : index
      %c0_22 = arith.constant 0 : index
      %37 = vector.load %arg6[%c0_21, %c0_22] : memref<1x32xf32, #tpu.memory_space<vmem>>, vector<1x32xf32>
      %38 = vector.broadcast %37 : vector<1x32xf32> to vector<96x32xf32>
      %39 = arith.mulf %36, %38 : vector<96x32xf32>
      %c0_23 = arith.constant 0 : index
      %c0_24 = arith.constant 0 : index
      %40 = vector.load %arg7[%c0_23, %c0_24] : memref<1x32xf32, #tpu.memory_space<vmem>>, vector<1x32xf32>
      %41 = vector.broadcast %40 : vector<1x32xf32> to vector<96x32xf32>
      %42 = arith.addf %39, %41 : vector<96x32xf32>
      %43 = arith.truncf %42 : vector<96x32xf32> to vector<96x32xbf16>
      %c0_25 = arith.constant 0 : index
      %c0_26 = arith.constant 0 : index
      %44 = vector.load %arg8[%c0_25, %c0_26] : memref<96x32xbf16, #tpu.memory_space<vmem>>, vector<96x32xbf16>
      tpu.vector_store %arg8[%c0_25, %c0_26], %43 {strides = array<i32>} : memref<96x32xbf16, #tpu.memory_space<vmem>>, vector<96x32xbf16>,
    } else {
    }
    return
  }
  func.func @transform_0(%arg0: i32, %arg1: i32) -> (i32, i32) {
    %c0_i32 = arith.constant 0 : i32
    return %arg0, %arg1 : i32, i32
  }
  func.func @transform_1(%arg0: i32, %arg1: i32) -> (i32, i32) {
    %c0_i32 = arith.constant 0 : i32
    %c0_i32_0 = arith.constant 0 : i32
    return %arg1, %c0_i32 : i32, i32
  }
  func.func @transform_2(%arg0: i32, %arg1: i32) -> (i32, i32) {
    %c0_i32 = arith.constant 0 : i32
    %c0_i32_0 = arith.constant 0 : i32
    %c0_i32_1 = arith.constant 0 : i32
    return %c0_i32, %c0_i32_0 : i32, i32
  }
  func.func @transform_3(%arg0: i32, %arg1: i32) -> (i32, i32) {
    %c0_i32 = arith.constant 0 : i32
    %c0_i32_0 = arith.constant 0 : i32
    return %arg0, %c0_i32 : i32, i32
  }
  func.func @transform_4(%arg0: i32, %arg1: i32) -> (i32, i32) {
    %c0_i32 = arith.constant 0 : i32
    %c0_i32_0 = arith.constant 0 : i32
    %c0_i32_1 = arith.constant 0 : i32
    return %c0_i32, %c0_i32_0 : i32, i32
  }
  func.func @transform_5(%arg0: i32, %arg1: i32) -> (i32, i32) {
    %c0_i32 = arith.constant 0 : i32
    %c0_i32_0 = arith.constant 0 : i32
    %c0_i32_1 = arith.constant 0 : i32
    return %c0_i32, %c0_i32_0 : i32, i32
  }
  func.func @transform_6(%arg0: i32, %arg1: i32) -> (i32, i32) {
    %c0_i32 = arith.constant 0 : i32
    %c0_i32_0 = arith.constant 0 : i32
    return %arg0, %c0_i32 : i32, i32
  }
}

module attributes {stable_mosaic.version = 11 : i64} {
  func.func @_attention_kernel(%arg0: i32, %arg1: memref<16x96xbf16, #tpu.memory_space<vmem>>, %arg2: memref<1x1x16xf32, #tpu.memory_space<vmem>>, %arg3: memref<16x32xbf16, #tpu.memory_space<vmem>>) attributes {dimension_semantics = [#tpu.dimension_semantics<parallel>], iteration_bounds = array<i64: 6>, scalar_prefetch = 0 : i64, scratch_operands = 0 : i64, tpu.core_type = #tpu.core_type<tc>, window_params = [{transform_indices = @transform_0, window_bounds = array<i64: 16, 96>}, {transform_indices = @transform_1, window_bounds = array<i64: 1, 1, 16>}, {transform_indices = @transform_2, window_bounds = array<i64: 16, 32>}]} {
    %c0 = arith.constant 0 : index
    %c0_0 = arith.constant 0 : index
    %0 = vector.load %arg1[%c0, %c0_0] : memref<16x96xbf16, #tpu.memory_space<vmem>>, vector<16x96xbf16>
    %c0_1 = arith.constant 0 : index
    %c0_2 = arith.constant 0 : index
    %c0_3 = arith.constant 0 : index
    %1 = vector.load %arg2[%c0_1, %c0_2, %c0_3] : memref<1x1x16xf32, #tpu.memory_space<vmem>>, vector<1x1x16xf32>
    %2 = vector.shape_cast %1 : vector<1x1x16xf32> to vector<1x16xf32>
    %3 = vector.extract_strided_slice %0 {offsets = [0, 0], sizes = [16, 16], strides = [1, 1]} : vector<16x96xbf16> to vector<16x16xbf16>
    %4 = vector.extract_strided_slice %0 {offsets = [0, 32], sizes = [16, 16], strides = [1, 1]} : vector<16x96xbf16> to vector<16x16xbf16>
    %5 = vector.extract_strided_slice %0 {offsets = [0, 64], sizes = [16, 16], strides = [1, 1]} : vector<16x96xbf16> to vector<16x16xbf16>
    %cst = arith.constant dense<0.000000e+00> : vector<16x16xf32>
    %6 = tpu.matmul %3, %4, %cst {dimension_numbers = #tpu.dot_dimension_numbers<[1], [1], [0], [0], [0, 0, 1, 0], [], []>} : vector<16x16xbf16>, vector<16x16xbf16>, vector<16x16xf32> -> vector<16x16xf32>
    %7 = vector.broadcast %2 : vector<1x16xf32> to vector<16x16xf32>
    %8 = arith.addf %6, %7 : vector<16x16xf32>
    %cst_4 = arith.constant dense<0xFF800000> : vector<16xf32>
    %9 = vector.multi_reduction <maximumf>, %8, %cst_4 [1] : vector<16x16xf32> to vector<16xf32>
    %10 = vector.shape_cast %9 : vector<16xf32> to vector<16x1xf32>
    %11 = vector.broadcast %10 : vector<16x1xf32> to vector<16x16xf32>
    %12 = arith.subf %8, %11 : vector<16x16xf32>
    %13 = math.exp %12 : vector<16x16xf32>
    %cst_5 = arith.constant dense<0.000000e+00> : vector<16xf32>
    %14 = vector.multi_reduction <add>, %13, %cst_5 [1] : vector<16x16xf32> to vector<16xf32>
    %15 = vector.shape_cast %14 : vector<16xf32> to vector<16x1xf32>
    %16 = tpu.reciprocal %15 {approx = true} : vector<16x1xf32> -> vector<16x1xf32>
    %17 = vector.broadcast %16 : vector<16x1xf32> to vector<16x16xf32>
    %18 = arith.mulf %13, %17 : vector<16x16xf32>
    %19 = arith.truncf %18 : vector<16x16xf32> to vector<16x16xbf16>
    %cst_6 = arith.constant dense<0.000000e+00> : vector<16x16xf32>
    %20 = tpu.matmul %19, %5, %cst_6 {dimension_numbers = #tpu.dot_dimension_numbers<[1], [0], [0], [1], [0, 0, 1, 1], [], []>} : vector<16x16xbf16>, vector<16x16xbf16>, vector<16x16xf32> -> vector<16x16xf32>
    %21 = vector.extract_strided_slice %0 {offsets = [0, 16], sizes = [16, 16], strides = [1, 1]} : vector<16x96xbf16> to vector<16x16xbf16>
    %22 = vector.extract_strided_slice %0 {offsets = [0, 48], sizes = [16, 16], strides = [1, 1]} : vector<16x96xbf16> to vector<16x16xbf16>
    %23 = vector.extract_strided_slice %0 {offsets = [0, 80], sizes = [16, 16], strides = [1, 1]} : vector<16x96xbf16> to vector<16x16xbf16>
    %cst_7 = arith.constant dense<0.000000e+00> : vector<16x16xf32>
    %24 = tpu.matmul %21, %22, %cst_7 {dimension_numbers = #tpu.dot_dimension_numbers<[1], [1], [0], [0], [0, 0, 1, 0], [], []>} : vector<16x16xbf16>, vector<16x16xbf16>, vector<16x16xf32> -> vector<16x16xf32>
    %25 = vector.broadcast %2 : vector<1x16xf32> to vector<16x16xf32>
    %26 = arith.addf %24, %25 : vector<16x16xf32>
    %cst_8 = arith.constant dense<0xFF800000> : vector<16xf32>
    %27 = vector.multi_reduction <maximumf>, %26, %cst_8 [1] : vector<16x16xf32> to vector<16xf32>
    %28 = vector.shape_cast %27 : vector<16xf32> to vector<16x1xf32>
    %29 = vector.broadcast %28 : vector<16x1xf32> to vector<16x16xf32>
    %30 = arith.subf %26, %29 : vector<16x16xf32>
    %31 = math.exp %30 : vector<16x16xf32>
    %cst_9 = arith.constant dense<0.000000e+00> : vector<16xf32>
    %32 = vector.multi_reduction <add>, %31, %cst_9 [1] : vector<16x16xf32> to vector<16xf32>
    %33 = vector.shape_cast %32 : vector<16xf32> to vector<16x1xf32>
    %34 = tpu.reciprocal %33 {approx = true} : vector<16x1xf32> -> vector<16x1xf32>
    %35 = vector.broadcast %34 : vector<16x1xf32> to vector<16x16xf32>
    %36 = arith.mulf %31, %35 : vector<16x16xf32>
    %37 = arith.truncf %36 : vector<16x16xf32> to vector<16x16xbf16>
    %cst_10 = arith.constant dense<0.000000e+00> : vector<16x16xf32>
    %38 = tpu.matmul %37, %23, %cst_10 {dimension_numbers = #tpu.dot_dimension_numbers<[1], [0], [0], [1], [0, 0, 1, 1], [], []>} : vector<16x16xbf16>, vector<16x16xbf16>, vector<16x16xf32> -> vector<16x16xf32>
    %39 = tpu.concatenate %20, %38 in 1 : vector<16x16xf32>, vector<16x16xf32> -> vector<16x32xf32>
    %40 = arith.truncf %39 : vector<16x32xf32> to vector<16x32xbf16>
    %c0_11 = arith.constant 0 : index
    %c0_12 = arith.constant 0 : index
    %41 = vector.load %arg3[%c0_11, %c0_12] : memref<16x32xbf16, #tpu.memory_space<vmem>>, vector<16x32xbf16>
    tpu.vector_store %arg3[%c0_11, %c0_12], %40 {strides = array<i32>} : memref<16x32xbf16, #tpu.memory_space<vmem>>, vector<16x32xbf16>,
    return
  }
  func.func @transform_0(%arg0: i32) -> (i32, i32) {
    %c0_i32 = arith.constant 0 : i32
    %c0_i32_0 = arith.constant 0 : i32
    return %arg0, %c0_i32 : i32, i32
  }
  func.func @transform_1(%arg0: i32) -> (i32, i32, i32) {
    %c0_i32 = arith.constant 0 : i32
    %c0_i32_0 = arith.constant 0 : i32
    %c0_i32_1 = arith.constant 0 : i32
    return %arg0, %c0_i32, %c0_i32_0 : i32, i32, i32
  }
  func.func @transform_2(%arg0: i32) -> (i32, i32) {
    %c0_i32 = arith.constant 0 : i32
    %c0_i32_0 = arith.constant 0 : i32
    return %arg0, %c0_i32 : i32, i32
  }
}

module attributes {stable_mosaic.version = 11 : i64} {
  func.func @_matmul_bias_kernel(%arg0: i32, %arg1: i32, %arg2: i32, %arg3: memref<96x32xbf16, #tpu.memory_space<vmem>>, %arg4: memref<32x64xbf16, #tpu.memory_space<vmem>>, %arg5: memref<1x64xf32, #tpu.memory_space<vmem>>, %arg6: memref<96x64xbf16, #tpu.memory_space<vmem>>, %arg7: memref<96x64xf32, #tpu.memory_space<vmem>>) attributes {dimension_semantics = [#tpu.dimension_semantics<parallel>, #tpu.dimension_semantics<parallel>, #tpu.dimension_semantics<arbitrary>], iteration_bounds = array<i64: 1, 1, 1>, scalar_prefetch = 0 : i64, scratch_operands = 1 : i64, tpu.core_type = #tpu.core_type<tc>, window_params = [{transform_indices = @transform_0, window_bounds = array<i64: 96, 32>}, {transform_indices = @transform_1, window_bounds = array<i64: 32, 64>}, {transform_indices = @transform_2, window_bounds = array<i64: 1, 64>}, {transform_indices = @transform_3, window_bounds = array<i64: 96, 64>}]} {
    %c0_i32 = arith.constant 0 : i32
    %0 = arith.cmpi eq, %arg2, %c0_i32 : i32
    %1 = arith.extui %0 : i1 to i32
    %c0_i32_0 = arith.constant 0 : i32
    %2 = arith.cmpi ne, %1, %c0_i32_0 : i32
    scf.if %2 {
      %cst_10 = arith.constant 0.000000e+00 : f32
      %12 = vector.broadcast %cst_10 : f32 to vector<96x64xf32>
      %c0_11 = arith.constant 0 : index
      %c0_12 = arith.constant 0 : index
      %13 = vector.load %arg7[%c0_11, %c0_12] : memref<96x64xf32, #tpu.memory_space<vmem>>, vector<96x64xf32>
      tpu.vector_store %arg7[%c0_11, %c0_12], %12 {strides = array<i32>} : memref<96x64xf32, #tpu.memory_space<vmem>>, vector<96x64xf32>,
    } else {
    }
    %c0 = arith.constant 0 : index
    %c0_1 = arith.constant 0 : index
    %3 = vector.load %arg7[%c0, %c0_1] : memref<96x64xf32, #tpu.memory_space<vmem>>, vector<96x64xf32>
    %c0_2 = arith.constant 0 : index
    %c0_3 = arith.constant 0 : index
    %4 = vector.load %arg3[%c0_2, %c0_3] : memref<96x32xbf16, #tpu.memory_space<vmem>>, vector<96x32xbf16>
    %c0_4 = arith.constant 0 : index
    %c0_5 = arith.constant 0 : index
    %5 = vector.load %arg4[%c0_4, %c0_5] : memref<32x64xbf16, #tpu.memory_space<vmem>>, vector<32x64xbf16>
    %cst = arith.constant dense<0.000000e+00> : vector<96x64xf32>
    %6 = tpu.matmul %4, %5, %cst {dimension_numbers = #tpu.dot_dimension_numbers<[1], [0], [0], [1], [0, 0, 1, 1], [], []>} : vector<96x32xbf16>, vector<32x64xbf16>, vector<96x64xf32> -> vector<96x64xf32>
    %7 = arith.addf %3, %6 : vector<96x64xf32>
    %c0_6 = arith.constant 0 : index
    %c0_7 = arith.constant 0 : index
    %8 = vector.load %arg7[%c0_6, %c0_7] : memref<96x64xf32, #tpu.memory_space<vmem>>, vector<96x64xf32>
    tpu.vector_store %arg7[%c0_6, %c0_7], %7 {strides = array<i32>} : memref<96x64xf32, #tpu.memory_space<vmem>>, vector<96x64xf32>,
    %c0_i32_8 = arith.constant 0 : i32
    %9 = arith.cmpi eq, %arg2, %c0_i32_8 : i32
    %10 = arith.extui %9 : i1 to i32
    %c0_i32_9 = arith.constant 0 : i32
    %11 = arith.cmpi ne, %10, %c0_i32_9 : i32
    scf.if %11 {
      %c0_10 = arith.constant 0 : index
      %c0_11 = arith.constant 0 : index
      %12 = vector.load %arg7[%c0_10, %c0_11] : memref<96x64xf32, #tpu.memory_space<vmem>>, vector<96x64xf32>
      %c0_12 = arith.constant 0 : index
      %c0_13 = arith.constant 0 : index
      %13 = vector.load %arg5[%c0_12, %c0_13] : memref<1x64xf32, #tpu.memory_space<vmem>>, vector<1x64xf32>
      %14 = vector.broadcast %13 : vector<1x64xf32> to vector<96x64xf32>
      %15 = arith.addf %12, %14 : vector<96x64xf32>
      %cst_14 = arith.constant 5.000000e-01 : f32
      %16 = vector.broadcast %cst_14 : f32 to vector<96x64xf32>
      %17 = arith.mulf %16, %15 : vector<96x64xf32>
      %cst_15 = arith.constant 4.471500e-02 : f32
      %18 = vector.broadcast %cst_15 : f32 to vector<96x64xf32>
      %19 = arith.mulf %18, %15 : vector<96x64xf32>
      %20 = arith.mulf %19, %15 : vector<96x64xf32>
      %21 = arith.mulf %20, %15 : vector<96x64xf32>
      %22 = arith.addf %15, %21 : vector<96x64xf32>
      %cst_16 = arith.constant 0.797884583 : f32
      %23 = vector.broadcast %cst_16 : f32 to vector<96x64xf32>
      %24 = arith.mulf %23, %22 : vector<96x64xf32>
      %25 = math.tanh %24 : vector<96x64xf32>
      %cst_17 = arith.constant 1.000000e+00 : f32
      %26 = vector.broadcast %cst_17 : f32 to vector<96x64xf32>
      %27 = arith.addf %26, %25 : vector<96x64xf32>
      %28 = arith.mulf %17, %27 : vector<96x64xf32>
      %29 = arith.truncf %28 : vector<96x64xf32> to vector<96x64xbf16>
      %c0_18 = arith.constant 0 : index
      %c0_19 = arith.constant 0 : index
      %30 = vector.load %arg6[%c0_18, %c0_19] : memref<96x64xbf16, #tpu.memory_space<vmem>>, vector<96x64xbf16>
      tpu.vector_store %arg6[%c0_18, %c0_19], %29 {strides = array<i32>} : memref<96x64xbf16, #tpu.memory_space<vmem>>, vector<96x64xbf16>,
    } else {
    }
    return
  }
  func.func @transform_0(%arg0: i32, %arg1: i32, %arg2: i32) -> (i32, i32) {
    %c0_i32 = arith.constant 0 : i32
    return %arg0, %arg2 : i32, i32
  }
  func.func @transform_1(%arg0: i32, %arg1: i32, %arg2: i32) -> (i32, i32) {
    %c0_i32 = arith.constant 0 : i32
    return %arg2, %arg1 : i32, i32
  }
  func.func @transform_2(%arg0: i32, %arg1: i32, %arg2: i32) -> (i32, i32) {
    %c0_i32 = arith.constant 0 : i32
    %c0_i32_0 = arith.constant 0 : i32
    return %c0_i32, %arg1 : i32, i32
  }
  func.func @transform_3(%arg0: i32, %arg1: i32, %arg2: i32) -> (i32, i32) {
    %c0_i32 = arith.constant 0 : i32
    return %arg0, %arg1 : i32, i32
  }
}

module attributes {stable_mosaic.version = 11 : i64} {
  func.func @_matmul_res_ln_kernel(%arg0: i32, %arg1: i32, %arg2: memref<96x64xbf16, #tpu.memory_space<vmem>>, %arg3: memref<64x32xbf16, #tpu.memory_space<vmem>>, %arg4: memref<1x32xf32, #tpu.memory_space<vmem>>, %arg5: memref<96x32xbf16, #tpu.memory_space<vmem>>, %arg6: memref<1x32xf32, #tpu.memory_space<vmem>>, %arg7: memref<1x32xf32, #tpu.memory_space<vmem>>, %arg8: memref<96x32xbf16, #tpu.memory_space<vmem>>, %arg9: memref<96x32xf32, #tpu.memory_space<vmem>>) attributes {dimension_semantics = [#tpu.dimension_semantics<parallel>, #tpu.dimension_semantics<arbitrary>], iteration_bounds = array<i64: 1, 1>, scalar_prefetch = 0 : i64, scratch_operands = 1 : i64, tpu.core_type = #tpu.core_type<tc>, window_params = [{transform_indices = @transform_0, window_bounds = array<i64: 96, 64>}, {transform_indices = @transform_1, window_bounds = array<i64: 64, 32>}, {pipeline_mode = #tpu.pipeline_mode<synchronous>, transform_indices = @transform_2, window_bounds = array<i64: 1, 32>}, {transform_indices = @transform_3, window_bounds = array<i64: 96, 32>}, {pipeline_mode = #tpu.pipeline_mode<synchronous>, transform_indices = @transform_4, window_bounds = array<i64: 1, 32>}, {pipeline_mode = #tpu.pipeline_mode<synchronous>, transform_indices = @transform_5, window_bounds = array<i64: 1, 32>}, {transform_indices = @transform_6, window_bounds = array<i64: 96, 32>}]} {
    %c0_i32 = arith.constant 0 : i32
    %0 = arith.cmpi eq, %arg1, %c0_i32 : i32
    %1 = arith.extui %0 : i1 to i32
    %c0_i32_0 = arith.constant 0 : i32
    %2 = arith.cmpi ne, %1, %c0_i32_0 : i32
    scf.if %2 {
      %cst_10 = arith.constant 0.000000e+00 : f32
      %12 = vector.broadcast %cst_10 : f32 to vector<96x32xf32>
      %c0_11 = arith.constant 0 : index
      %c0_12 = arith.constant 0 : index
      %13 = vector.load %arg9[%c0_11, %c0_12] : memref<96x32xf32, #tpu.memory_space<vmem>>, vector<96x32xf32>
      tpu.vector_store %arg9[%c0_11, %c0_12], %12 {strides = array<i32>} : memref<96x32xf32, #tpu.memory_space<vmem>>, vector<96x32xf32>,
    } else {
    }
    %c0 = arith.constant 0 : index
    %c0_1 = arith.constant 0 : index
    %3 = vector.load %arg9[%c0, %c0_1] : memref<96x32xf32, #tpu.memory_space<vmem>>, vector<96x32xf32>
    %c0_2 = arith.constant 0 : index
    %c0_3 = arith.constant 0 : index
    %4 = vector.load %arg2[%c0_2, %c0_3] : memref<96x64xbf16, #tpu.memory_space<vmem>>, vector<96x64xbf16>
    %c0_4 = arith.constant 0 : index
    %c0_5 = arith.constant 0 : index
    %5 = vector.load %arg3[%c0_4, %c0_5] : memref<64x32xbf16, #tpu.memory_space<vmem>>, vector<64x32xbf16>
    %cst = arith.constant dense<0.000000e+00> : vector<96x32xf32>
    %6 = tpu.matmul %4, %5, %cst {dimension_numbers = #tpu.dot_dimension_numbers<[1], [0], [0], [1], [0, 0, 1, 1], [], []>} : vector<96x64xbf16>, vector<64x32xbf16>, vector<96x32xf32> -> vector<96x32xf32>
    %7 = arith.addf %3, %6 : vector<96x32xf32>
    %c0_6 = arith.constant 0 : index
    %c0_7 = arith.constant 0 : index
    %8 = vector.load %arg9[%c0_6, %c0_7] : memref<96x32xf32, #tpu.memory_space<vmem>>, vector<96x32xf32>
    tpu.vector_store %arg9[%c0_6, %c0_7], %7 {strides = array<i32>} : memref<96x32xf32, #tpu.memory_space<vmem>>, vector<96x32xf32>,
    %c0_i32_8 = arith.constant 0 : i32
    %9 = arith.cmpi eq, %arg1, %c0_i32_8 : i32
    %10 = arith.extui %9 : i1 to i32
    %c0_i32_9 = arith.constant 0 : i32
    %11 = arith.cmpi ne, %10, %c0_i32_9 : i32
    scf.if %11 {
      %c0_10 = arith.constant 0 : index
      %c0_11 = arith.constant 0 : index
      %12 = vector.load %arg9[%c0_10, %c0_11] : memref<96x32xf32, #tpu.memory_space<vmem>>, vector<96x32xf32>
      %c0_12 = arith.constant 0 : index
      %c0_13 = arith.constant 0 : index
      %13 = vector.load %arg4[%c0_12, %c0_13] : memref<1x32xf32, #tpu.memory_space<vmem>>, vector<1x32xf32>
      %14 = vector.broadcast %13 : vector<1x32xf32> to vector<96x32xf32>
      %15 = arith.addf %12, %14 : vector<96x32xf32>
      %c0_14 = arith.constant 0 : index
      %c0_15 = arith.constant 0 : index
      %16 = vector.load %arg5[%c0_14, %c0_15] : memref<96x32xbf16, #tpu.memory_space<vmem>>, vector<96x32xbf16>
      %17 = arith.extf %16 : vector<96x32xbf16> to vector<96x32xf32>
      %18 = arith.addf %15, %17 : vector<96x32xf32>
      %cst_16 = arith.constant dense<0.000000e+00> : vector<96xf32>
      %19 = vector.multi_reduction <add>, %18, %cst_16 [1] : vector<96x32xf32> to vector<96xf32>
      %20 = vector.shape_cast %19 : vector<96xf32> to vector<96x1xf32>
      %cst_17 = arith.constant 3.200000e+01 : f32
      %21 = vector.broadcast %cst_17 : f32 to vector<96x1xf32>
      %22 = arith.divf %20, %21 : vector<96x1xf32>
      %23 = vector.broadcast %22 : vector<96x1xf32> to vector<96x32xf32>
      %24 = arith.subf %18, %23 : vector<96x32xf32>
      %25 = arith.mulf %24, %24 : vector<96x32xf32>
      %cst_18 = arith.constant dense<0.000000e+00> : vector<96xf32>
      %26 = vector.multi_reduction <add>, %25, %cst_18 [1] : vector<96x32xf32> to vector<96xf32>
      %27 = vector.shape_cast %26 : vector<96xf32> to vector<96x1xf32>
      %cst_19 = arith.constant 3.200000e+01 : f32
      %28 = vector.broadcast %cst_19 : f32 to vector<96x1xf32>
      %29 = arith.divf %27, %28 : vector<96x1xf32>
      %30 = vector.broadcast %22 : vector<96x1xf32> to vector<96x32xf32>
      %31 = arith.subf %18, %30 : vector<96x32xf32>
      %cst_20 = arith.constant 9.99999996E-13 : f32
      %32 = vector.broadcast %cst_20 : f32 to vector<96x1xf32>
      %33 = arith.addf %29, %32 : vector<96x1xf32>
      %34 = math.rsqrt %33 : vector<96x1xf32>
      %35 = vector.broadcast %34 : vector<96x1xf32> to vector<96x32xf32>
      %36 = arith.mulf %31, %35 : vector<96x32xf32>
      %c0_21 = arith.constant 0 : index
      %c0_22 = arith.constant 0 : index
      %37 = vector.load %arg6[%c0_21, %c0_22] : memref<1x32xf32, #tpu.memory_space<vmem>>, vector<1x32xf32>
      %38 = vector.broadcast %37 : vector<1x32xf32> to vector<96x32xf32>
      %39 = arith.mulf %36, %38 : vector<96x32xf32>
      %c0_23 = arith.constant 0 : index
      %c0_24 = arith.constant 0 : index
      %40 = vector.load %arg7[%c0_23, %c0_24] : memref<1x32xf32, #tpu.memory_space<vmem>>, vector<1x32xf32>
      %41 = vector.broadcast %40 : vector<1x32xf32> to vector<96x32xf32>
      %42 = arith.addf %39, %41 : vector<96x32xf32>
      %43 = arith.truncf %42 : vector<96x32xf32> to vector<96x32xbf16>
      %c0_25 = arith.constant 0 : index
      %c0_26 = arith.constant 0 : index
      %44 = vector.load %arg8[%c0_25, %c0_26] : memref<96x32xbf16, #tpu.memory_space<vmem>>, vector<96x32xbf16>
      tpu.vector_store %arg8[%c0_25, %c0_26], %43 {strides = array<i32>} : memref<96x32xbf16, #tpu.memory_space<vmem>>, vector<96x32xbf16>,
    } else {
    }
    return
  }
  func.func @transform_0(%arg0: i32, %arg1: i32) -> (i32, i32) {
    %c0_i32 = arith.constant 0 : i32
    return %arg0, %arg1 : i32, i32
  }
  func.func @transform_1(%arg0: i32, %arg1: i32) -> (i32, i32) {
    %c0_i32 = arith.constant 0 : i32
    %c0_i32_0 = arith.constant 0 : i32
    return %arg1, %c0_i32 : i32, i32
  }
  func.func @transform_2(%arg0: i32, %arg1: i32) -> (i32, i32) {
    %c0_i32 = arith.constant 0 : i32
    %c0_i32_0 = arith.constant 0 : i32
    %c0_i32_1 = arith.constant 0 : i32
    return %c0_i32, %c0_i32_0 : i32, i32
  }
  func.func @transform_3(%arg0: i32, %arg1: i32) -> (i32, i32) {
    %c0_i32 = arith.constant 0 : i32
    %c0_i32_0 = arith.constant 0 : i32
    return %arg0, %c0_i32 : i32, i32
  }
  func.func @transform_4(%arg0: i32, %arg1: i32) -> (i32, i32) {
    %c0_i32 = arith.constant 0 : i32
    %c0_i32_0 = arith.constant 0 : i32
    %c0_i32_1 = arith.constant 0 : i32
    return %c0_i32, %c0_i32_0 : i32, i32
  }
  func.func @transform_5(%arg0: i32, %arg1: i32) -> (i32, i32) {
    %c0_i32 = arith.constant 0 : i32
    %c0_i32_0 = arith.constant 0 : i32
    %c0_i32_1 = arith.constant 0 : i32
    return %c0_i32, %c0_i32_0 : i32, i32
  }
  func.func @transform_6(%arg0: i32, %arg1: i32) -> (i32, i32) {
    %c0_i32 = arith.constant 0 : i32
    %c0_i32_0 = arith.constant 0 : i32
    return %arg0, %c0_i32 : i32, i32
  }
}

module attributes {stable_mosaic.version = 11 : i64} {
  func.func @_pooler_cosine_kernel(%arg0: i32, %arg1: memref<3x2x32xbf16, #tpu.memory_space<vmem>>, %arg2: memref<32x32xbf16, #tpu.memory_space<vmem>>, %arg3: memref<1x32xf32, #tpu.memory_space<vmem>>, %arg4: memref<32x32xbf16, #tpu.memory_space<vmem>>, %arg5: memref<1x32xf32, #tpu.memory_space<vmem>>, %arg6: memref<2x4xf32, #tpu.memory_space<vmem>>) attributes {dimension_semantics = [#tpu.dimension_semantics<arbitrary>], iteration_bounds = array<i64: 1>, scalar_prefetch = 0 : i64, scratch_operands = 0 : i64, tpu.core_type = #tpu.core_type<tc>, window_params = [{pipeline_mode = #tpu.pipeline_mode<synchronous>, transform_indices = @transform_0, window_bounds = array<i64: 3, 2, 32>}, {pipeline_mode = #tpu.pipeline_mode<synchronous>, transform_indices = @transform_1, window_bounds = array<i64: 32, 32>}, {pipeline_mode = #tpu.pipeline_mode<synchronous>, transform_indices = @transform_2, window_bounds = array<i64: 1, 32>}, {pipeline_mode = #tpu.pipeline_mode<synchronous>, transform_indices = @transform_3, window_bounds = array<i64: 32, 32>}, {pipeline_mode = #tpu.pipeline_mode<synchronous>, transform_indices = @transform_4, window_bounds = array<i64: 1, 32>}, {pipeline_mode = #tpu.pipeline_mode<synchronous>, transform_indices = @transform_5, window_bounds = array<i64: 2, 4>}]} {
    %c0 = arith.constant 0 : index
    %c0_0 = arith.constant 0 : index
    %c0_1 = arith.constant 0 : index
    %0 = vector.load %arg1[%c0, %c0_0, %c0_1] : memref<3x2x32xbf16, #tpu.memory_space<vmem>>, vector<3x2x32xbf16>
    %c0_2 = arith.constant 0 : index
    %c0_3 = arith.constant 0 : index
    %1 = vector.load %arg2[%c0_2, %c0_3] : memref<32x32xbf16, #tpu.memory_space<vmem>>, vector<32x32xbf16>
    %c0_4 = arith.constant 0 : index
    %c0_5 = arith.constant 0 : index
    %2 = vector.load %arg3[%c0_4, %c0_5] : memref<1x32xf32, #tpu.memory_space<vmem>>, vector<1x32xf32>
    %c0_6 = arith.constant 0 : index
    %c0_7 = arith.constant 0 : index
    %3 = vector.load %arg4[%c0_6, %c0_7] : memref<32x32xbf16, #tpu.memory_space<vmem>>, vector<32x32xbf16>
    %c0_8 = arith.constant 0 : index
    %c0_9 = arith.constant 0 : index
    %4 = vector.load %arg5[%c0_8, %c0_9] : memref<1x32xf32, #tpu.memory_space<vmem>>, vector<1x32xf32>
    %5 = vector.extract_strided_slice %0 {offsets = [0, 0, 0], sizes = [1, 2, 32], strides = [1, 1, 1]} : vector<3x2x32xbf16> to vector<1x2x32xbf16>
    %6 = vector.shape_cast %5 : vector<1x2x32xbf16> to vector<2x32xbf16>
    %cst = arith.constant dense<0.000000e+00> : vector<2x32xf32>
    %7 = tpu.matmul %6, %1, %cst {dimension_numbers = #tpu.dot_dimension_numbers<[1], [0], [0], [1], [0, 0, 1, 1], [], []>} : vector<2x32xbf16>, vector<32x32xbf16>, vector<2x32xf32> -> vector<2x32xf32>
    %8 = vector.broadcast %2 : vector<1x32xf32> to vector<2x32xf32>
    %9 = arith.addf %7, %8 : vector<2x32xf32>
    %10 = math.tanh %9 : vector<2x32xf32>
    %11 = arith.truncf %10 : vector<2x32xf32> to vector<2x32xbf16>
    %cst_10 = arith.constant dense<0.000000e+00> : vector<2x32xf32>
    %12 = tpu.matmul %11, %3, %cst_10 {dimension_numbers = #tpu.dot_dimension_numbers<[1], [0], [0], [1], [0, 0, 1, 1], [], []>} : vector<2x32xbf16>, vector<32x32xbf16>, vector<2x32xf32> -> vector<2x32xf32>
    %13 = vector.broadcast %4 : vector<1x32xf32> to vector<2x32xf32>
    %14 = arith.addf %12, %13 : vector<2x32xf32>
    %15 = math.tanh %14 : vector<2x32xf32>
    %16 = arith.mulf %15, %15 : vector<2x32xf32>
    %cst_11 = arith.constant dense<0.000000e+00> : vector<2xf32>
    %17 = vector.multi_reduction <add>, %16, %cst_11 [1] : vector<2x32xf32> to vector<2xf32>
    %18 = vector.shape_cast %17 : vector<2xf32> to vector<2x1xf32>
    %19 = math.sqrt %18 : vector<2x1xf32>
    %cst_12 = arith.constant 9.99999993E-9 : f32
    %20 = vector.broadcast %cst_12 : f32 to vector<2x1xf32>
    %21 = arith.maximumf %19, %20 : vector<2x1xf32>
    %22 = vector.broadcast %21 : vector<2x1xf32> to vector<2x32xf32>
    %23 = arith.divf %15, %22 : vector<2x32xf32>
    %24 = vector.extract_strided_slice %0 {offsets = [1, 0, 0], sizes = [1, 2, 32], strides = [1, 1, 1]} : vector<3x2x32xbf16> to vector<1x2x32xbf16>
    %25 = vector.shape_cast %24 : vector<1x2x32xbf16> to vector<2x32xbf16>
    %cst_13 = arith.constant dense<0.000000e+00> : vector<2x32xf32>
    %26 = tpu.matmul %25, %1, %cst_13 {dimension_numbers = #tpu.dot_dimension_numbers<[1], [0], [0], [1], [0, 0, 1, 1], [], []>} : vector<2x32xbf16>, vector<32x32xbf16>, vector<2x32xf32> -> vector<2x32xf32>
    %27 = vector.broadcast %2 : vector<1x32xf32> to vector<2x32xf32>
    %28 = arith.addf %26, %27 : vector<2x32xf32>
    %29 = math.tanh %28 : vector<2x32xf32>
    %30 = arith.truncf %29 : vector<2x32xf32> to vector<2x32xbf16>
    %cst_14 = arith.constant dense<0.000000e+00> : vector<2x32xf32>
    %31 = tpu.matmul %30, %3, %cst_14 {dimension_numbers = #tpu.dot_dimension_numbers<[1], [0], [0], [1], [0, 0, 1, 1], [], []>} : vector<2x32xbf16>, vector<32x32xbf16>, vector<2x32xf32> -> vector<2x32xf32>
    %32 = vector.broadcast %4 : vector<1x32xf32> to vector<2x32xf32>
    %33 = arith.addf %31, %32 : vector<2x32xf32>
    %34 = math.tanh %33 : vector<2x32xf32>
    %35 = arith.mulf %34, %34 : vector<2x32xf32>
    %cst_15 = arith.constant dense<0.000000e+00> : vector<2xf32>
    %36 = vector.multi_reduction <add>, %35, %cst_15 [1] : vector<2x32xf32> to vector<2xf32>
    %37 = vector.shape_cast %36 : vector<2xf32> to vector<2x1xf32>
    %38 = math.sqrt %37 : vector<2x1xf32>
    %cst_16 = arith.constant 9.99999993E-9 : f32
    %39 = vector.broadcast %cst_16 : f32 to vector<2x1xf32>
    %40 = arith.maximumf %38, %39 : vector<2x1xf32>
    %41 = vector.broadcast %40 : vector<2x1xf32> to vector<2x32xf32>
    %42 = arith.divf %34, %41 : vector<2x32xf32>
    %43 = vector.extract_strided_slice %0 {offsets = [2, 0, 0], sizes = [1, 2, 32], strides = [1, 1, 1]} : vector<3x2x32xbf16> to vector<1x2x32xbf16>
    %44 = vector.shape_cast %43 : vector<1x2x32xbf16> to vector<2x32xbf16>
    %cst_17 = arith.constant dense<0.000000e+00> : vector<2x32xf32>
    %45 = tpu.matmul %44, %1, %cst_17 {dimension_numbers = #tpu.dot_dimension_numbers<[1], [0], [0], [1], [0, 0, 1, 1], [], []>} : vector<2x32xbf16>, vector<32x32xbf16>, vector<2x32xf32> -> vector<2x32xf32>
    %46 = vector.broadcast %2 : vector<1x32xf32> to vector<2x32xf32>
    %47 = arith.addf %45, %46 : vector<2x32xf32>
    %48 = math.tanh %47 : vector<2x32xf32>
    %49 = arith.truncf %48 : vector<2x32xf32> to vector<2x32xbf16>
    %cst_18 = arith.constant dense<0.000000e+00> : vector<2x32xf32>
    %50 = tpu.matmul %49, %3, %cst_18 {dimension_numbers = #tpu.dot_dimension_numbers<[1], [0], [0], [1], [0, 0, 1, 1], [], []>} : vector<2x32xbf16>, vector<32x32xbf16>, vector<2x32xf32> -> vector<2x32xf32>
    %51 = vector.broadcast %4 : vector<1x32xf32> to vector<2x32xf32>
    %52 = arith.addf %50, %51 : vector<2x32xf32>
    %53 = math.tanh %52 : vector<2x32xf32>
    %54 = arith.mulf %53, %53 : vector<2x32xf32>
    %cst_19 = arith.constant dense<0.000000e+00> : vector<2xf32>
    %55 = vector.multi_reduction <add>, %54, %cst_19 [1] : vector<2x32xf32> to vector<2xf32>
    %56 = vector.shape_cast %55 : vector<2xf32> to vector<2x1xf32>
    %57 = math.sqrt %56 : vector<2x1xf32>
    %cst_20 = arith.constant 9.99999993E-9 : f32
    %58 = vector.broadcast %cst_20 : f32 to vector<2x1xf32>
    %59 = arith.maximumf %57, %58 : vector<2x1xf32>
    %60 = vector.broadcast %59 : vector<2x1xf32> to vector<2x32xf32>
    %61 = arith.divf %53, %60 : vector<2x32xf32>
    %cst_21 = arith.constant dense<0.000000e+00> : vector<2x2xf32>
    %62 = tpu.matmul %23, %42, %cst_21 {dimension_numbers = #tpu.dot_dimension_numbers<[1], [1], [0], [0], [0, 0, 1, 0], [], []>} : vector<2x32xf32>, vector<2x32xf32>, vector<2x2xf32> -> vector<2x2xf32>
    %cst_22 = arith.constant dense<0.000000e+00> : vector<2x2xf32>
    %63 = tpu.matmul %23, %61, %cst_22 {dimension_numbers = #tpu.dot_dimension_numbers<[1], [1], [0], [0], [0, 0, 1, 0], [], []>} : vector<2x32xf32>, vector<2x32xf32>, vector<2x2xf32> -> vector<2x2xf32>
    %64 = tpu.concatenate %62, %63 in 1 : vector<2x2xf32>, vector<2x2xf32> -> vector<2x4xf32>
    %cst_23 = arith.constant 2.000000e+01 : f32
    %65 = vector.broadcast %cst_23 : f32 to vector<2x4xf32>
    %66 = arith.mulf %64, %65 : vector<2x4xf32>
    %c0_24 = arith.constant 0 : index
    %c0_25 = arith.constant 0 : index
    %67 = vector.load %arg6[%c0_24, %c0_25] : memref<2x4xf32, #tpu.memory_space<vmem>>, vector<2x4xf32>
    tpu.vector_store %arg6[%c0_24, %c0_25], %66 {strides = array<i32>} : memref<2x4xf32, #tpu.memory_space<vmem>>, vector<2x4xf32>,
    return
  }
  func.func @transform_0(%arg0: i32) -> (i32, i32, i32) {
    %c0_i32 = arith.constant 0 : i32
    %c0_i32_0 = arith.constant 0 : i32
    %c0_i32_1 = arith.constant 0 : i32
    %c0_i32_2 = arith.constant 0 : i32
    return %c0_i32, %c0_i32_0, %c0_i32_1 : i32, i32, i32
  }
  func.func @transform_1(%arg0: i32) -> (i32, i32) {
    %c0_i32 = arith.constant 0 : i32
    %c0_i32_0 = arith.constant 0 : i32
    %c0_i32_1 = arith.constant 0 : i32
    return %c0_i32, %c0_i32_0 : i32, i32
  }
  func.func @transform_2(%arg0: i32) -> (i32, i32) {
    %c0_i32 = arith.constant 0 : i32
    %c0_i32_0 = arith.constant 0 : i32
    %c0_i32_1 = arith.constant 0 : i32
    return %c0_i32, %c0_i32_0 : i32, i32
  }
  func.func @transform_3(%arg0: i32) -> (i32, i32) {
    %c0_i32 = arith.constant 0 : i32
    %c0_i32_0 = arith.constant 0 : i32
    %c0_i32_1 = arith.constant 0 : i32
    return %c0_i32, %c0_i32_0 : i32, i32
  }
  func.func @transform_4(%arg0: i32) -> (i32, i32) {
    %c0_i32 = arith.constant 0 : i32
    %c0_i32_0 = arith.constant 0 : i32
    %c0_i32_1 = arith.constant 0 : i32
    return %c0_i32, %c0_i32_0 : i32, i32
  }
  func.func @transform_5(%arg0: i32) -> (i32, i32) {
    %c0_i32 = arith.constant 0 : i32
    %c0_i32_0 = arith.constant 0 : i32
    %c0_i32_1 = arith.constant 0 : i32
    return %c0_i32, %c0_i32_0 : i32, i32
  }
}

</mosaic_0001>

<bundles_post_ra>
// kernel: forward.12
= control target key start
LH: loop header
LB: loop body
LE: loop exit
PB: predicated region body
PF: predicated region fallthrough
CT: control target
= control target key end

     0   :  { %s452_s18 = smov 0   ;;  %s493_s0 = inlined_call_operand.vmem [shape: f32[6,16,32], index: 0, kind: input, shape index: {}]   ;;  %s494_s1 = inlined_call_operand.vmem [shape: f32[16,32], index: 1, kind: input, shape index: {}]   ;;  %s495_s2 = inlined_call_operand.vmem [shape: f32[6,16,32], index: 2, kind: input, shape index: {}]   ;;  %s496_s3 = inlined_call_operand.vmem [shape: f32[1,32], index: 3, kind: input, shape index: {}]   ;;  %s497_s4 = inlined_call_operand.vmem [shape: f32[1,32], index: 4, kind: input, shape index: {}]   ;;  %s498_s5 = inlined_call_operand.vmem [shape: bf16[96,32], index: 5, kind: output, shape index: {}]  }
   0x1 LB: > { %s458_s19 = sadd.s32 4294967295, %s420_s18   ;;  %p385_p0 = scmp.ge.s32.totalorder %s420_s18, 1  ;;  %s420_s18 = sphi %s452_s18, %s15_s18  }
   0x2   : > { %p197_p1 = scmp.lt.s32.totalorder %s420_s18, 7 }
   0x4   : > { %p198_p2 = pnand %p385_p0, %p197_p1 }
   0x5   : > { %p230_p3 = scmp.lt.s32.totalorder (!%p198_p2), %s458_s19, 5  ;;  %v248_v0 = vld [vmem:[%s494_s1] sm:$0xff] (!%p198_p2)  ;;  %v249_v1 = vld [vmem:[%s494_s1 + $0x8] sm:$0xff] (!%p198_p2)  ;;  %vm256_vm0 = vcmask (!%p198_p2), 261120   ;;  %s390_s7 = sshll.u32 (!%p198_p2), %s458_s19, 1  ;;  %vm310_vm1 = vcmask (!%p198_p2), 257024  }
   0x6   : > { %201 = sbr.rel (%p198_p2) target bundleno = 342 (0x156), region = 40  ;;  %p241_p4 = scmp.lt.s32.totalorder (!%p198_p2), %s390_s7, 11  ;;  %v392_v29 = vld [vmem:[%s496_s3] ss:$0 sm:$0xff] (!%p198_p2) }
   0x7   : > { %v393_v31 = vld [vmem:[%s497_s4] ss:$0 sm:$0xff] (!%p198_p2) }
   0xd   : > { %s231_s20 = scalar_select %p230_p3, %s458_s19, 5 }
   0xe   : > { %s500_s7 = smov (!%p241_p4, %s390_s7), 11 }
   0xf   : > { %s398_s21 = sshll.u32 %s231_s20, 4  ;;  %s391_s12 = sshll.u32 %s500_s7, 2 }
  0x10   : > { %s234_s28 = scalar_lea.vmem %s493_s0, %s398_s21  ;;  %s239_s6 = scalar_lea.vmem %s495_s2, %s398_s21 }
  0x11   : > { %v246_v2 = vld [vmem:[%s234_s28] sm:$0xff]  ;;  %v247_v4 = vld [vmem:[%s234_s28 + $0x8] sm:$0xff]  ;;  %s244_s15 = scalar_lea.vmem %s498_s5, %s391_s12 }
  0x12   : > { %v252_v3 = vld [vmem:[%s239_s6] sm:$0xff]  ;;  %v250_v5 = vadd.f32 %v248_v0, %v246_v2  ;;  %v251_v6 = vadd.f32 %v249_v1, %v247_v4  ;;  %v253_v7 = vld [vmem:[%s239_s6 + $0x8] sm:$0xff] }
  0x14   : > { %v254_v8 = vadd.f32 %v252_v3, %v250_v5  ;;  %v255_v9 = vadd.f32 %v253_v7, %v251_v6 }
  0x16   : > { %v257_v10 = vsel %vm256_vm0, %v254_v8, 0.0  ;;  %v260_v11 = vsel %vm256_vm0, %v255_v9, 0.0 }
  0x17   : > { %258 = vadd.xlane.f32.xlu0 %v257_v10 }
  0x1b   : > { %261 = vadd.xlane.f32.xlu0 %v260_v11 }
  0xa4   : > { %v259_v12 = vpop.xlane.xlu0 %258 }
  0xa5   : > { %v264_v13 = vmul.f32 0.03125, %v259_v12 }
  0xa7   : > { %v266_v14 = vsub.f32 %v254_v8, %v264_v13 }
  0xa8   : > { %v262_v15 = vpop.xlane.xlu0 %261 }
  0xa9   : > { %v265_v16 = vmul.f32 0.03125, %v262_v15  ;;  %v268_v17 = vmul.f32 %v266_v14, %v266_v14 }
  0xab   : > { %v267_v18 = vsub.f32 %v255_v9, %v265_v16  ;;  %v270_v19 = vsel %vm256_vm0, %v268_v17, 0.0 }
  0xac   : > { %271 = vadd.xlane.f32.xlu1 %v270_v19 }
  0xad   : > { %v269_v20 = vmul.f32 %v267_v18, %v267_v18 }
  0xaf   : > { %v273_v21 = vsel %vm256_vm0, %v269_v20, 0.0 }
  0xb0   : > { %274 = vadd.xlane.f32.xlu1 %v273_v21 }
 0x139   : > { %v272_v22 = vpop.xlane.xlu1 %271 }
 0x13a   : > { %v276_v23 = vmul.f32 0.03125, %v272_v22 }
 0x13c   : > { %v278_v24 = vadd.f32 1e-12, %v276_v23 }
 0x13d   : > { %v275_v25 = vpop.xlane.xlu1 %274 }
 0x13e   : > { %410 = vrsqrt.f32 %v278_v24  ;;  %v277_v26 = vmul.f32 0.03125, %v275_v25 }
 0x140   : > { %v279_v27 = vadd.f32 1e-12, %v277_v26 }
 0x142   : > { %412 = vrsqrt.f32 %v279_v27 }
 0x148   : > { %v411_v28 = vpop.eup %410 }
 0x149   : > { %v282_v30 = vmul.f32 %v411_v28, %v266_v14 }
 0x14b   : > { %v291_v32 = vmul.f32 %v392_v29, %v282_v30 }
 0x14c   : > { %v413_v33 = vpop.eup %412 }
 0x14d   : > { %v300_v34 = vadd.f32 %v393_v31, %v291_v32  ;;  %v283_v35 = vmul.f32 %v413_v33, %v267_v18 }
 0x14f   : > { %v400_v36 = vpack.c.bf16 %v300_v34, %v300_v34  ;;  %v292_v37 = vmul.f32 %v392_v29, %v283_v35 }
 0x151   : > { %311 = vst.msk [vmem:[%s244_s15] sm:$0xf] %vm310_vm1, %v400_v36  ;;  %v301_v38 = vadd.f32 %v393_v31, %v292_v37 }
 0x153   : > { %v401_v39 = vpack.c.bf16 %v301_v38, %v301_v38 }
 0x155   : > { %312 = vst.msk [vmem:[%s244_s15 + $0x4] sm:$0xf] %vm310_vm1, %v401_v39 }
 0x156 PF: > { %s15_s18 = sadd.s32 1, %s420_s18  }
 0x157   : > { %p12_p5 = scmp.ge.s32.totalorder %s15_s18, 8  }
 0x159   :  { %14 = sbr.rel (!%p12_p5) target bundleno = 1 (0x1), region = 73 }

// kernel: forward.14
= control target key start
LH: loop header
LB: loop body
LE: loop exit
PB: predicated region body
PF: predicated region fallthrough
CT: control target
= control target key end

     0   :  { %s625_s9 = smov 0   ;;  %s688_s0 = inlined_call_operand.vmem [shape: bf16[96,96], index: 0, kind: input, shape index: {}]   ;;  %s689_s1 = inlined_call_operand.vmem [shape: f32[6,1,16], index: 1, kind: input, shape index: {}]   ;;  %s690_s2 = inlined_call_operand.vmem [shape: bf16[96,32], index: 2, kind: output, shape index: {}]  }
   0x1 LB: > { %s503_s10 = sadd.s32 4294967295, %s600_s9   ;;  %p507_p0 = scmp.ge.s32.totalorder %s600_s9, 1  ;;  %s600_s9 = sphi %s625_s9, %s12_s9  }
   0x2   : > { %p121_p1 = scmp.lt.s32.totalorder %s600_s9, 7 }
   0x4   : > { %p122_p2 = pnand %p507_p0, %p121_p1 }
   0x5   : > { %s508_s11 = sshll.u32 (!%p122_p2), %s503_s10, 1  ;;  %v602_v0 = vmov (!%p122_p2), 0.0   ;;  %vm603_vm0 = vmmov (!%p122_p2), 0   ;;  %s604_s16 = smov (!%p122_p2), 96   ;;  %vm178_vm1 = vcmask (!%p122_p2), 130048   ;;  %vm435_vm2 = vcmask (!%p122_p2), 257024  }
   0x6   : > { %125 = sbr.rel (%p122_p2) target bundleno = 1553 (0x611), region = 28  ;;  %p147_p3 = scmp.lt.s32.totalorder (!%p122_p2), %s508_s11, 11  ;;  %532 = vmatprep.subr.bf16.mxu0 (!%p122_p2), %v602_v0  ;;  %534 = vmatprep.mubr.msk.bf16.mxu0 (!%p122_p2), %vm603_vm0, %v602_v0 }
   0x7   : > { %538 = vmatprep.subr.bf16.mxu1 (!%p122_p2), %v602_v0  ;;  %540 = vmatprep.mubr.msk.bf16.mxu1 (!%p122_p2), %vm603_vm0, %v602_v0  ;;  %p152_p4 = scmp.lt.s32.totalorder (!%p122_p2), %s503_s10, 5  ;;  %s605_s20 = smov (!%p122_p2), 64  }
   0x8   : > { %s606_s21 = smov (!%p122_p2), 80   ;;  %s607_s22 = smov (!%p122_p2), 112  }
   0x9   : > { %s608_s23 = smov (!%p122_p2), 48   ;;  %s609_s24 = smov (!%p122_p2), 16  }
   0xd   : > { %s692_s11 = smov (!%p147_p3, %s508_s11), 11  ;;  %s694_s10 = smov (!%p152_p4, %s503_s10), 5 }
   0xe   : > { %s509_s12 = sshll.u32 %s692_s11, 2  ;;  %s154_s19 = scalar_lea.vmem %s689_s1, %s694_s10 }
   0xf   : > { %s150_s15 = scalar_lea.vmem %s688_s0, %s509_s12  ;;  %v512_v4 = vld [vmem:[%s154_s19] ss:$0 sm:$0xff]  ;;  %s159_s27 = scalar_lea.vmem %s690_s2, %s509_s12 }
  0x10   : > { %v647_v1 = vld [vmem:[%s150_s15] sm:$0xff]  }
  0x11   : > { %176 = vrot.lane.b32.xlu0 %v647_v1, %s604_s16 }
  0x83   : > { %v177_v2 = vpop.permute.xlu0 %176 }
  0x84   : > { %v183_v3 = vsel %vm178_vm1, %v177_v2, 0 }
  0x85   : > { %533 = vmatpush3.bf16.xpose.msra.mxu0 %v183_v3 }
  0x86   : > { %550 = vmatprep.subr.bf16.mxu0 %v602_v0 }
  0x8c   : > { %535 = vmatmul.mubr.msk.bf16.vlgmr.msra.gmra.mrb[0].mxu0 %vm178_vm1, %v647_v1 }
  0x8d   : > { %552 = vmatprep.mubr.msk.bf16.mxu0 %vm603_vm0, %v602_v0 }
 0x15f   : > { %v219_v5 = vpop.f32.mrb[0].mxu0 }
 0x160   : > { %v220_v6 = vadd.f32 %v512_v4, %v219_v5  ;;  %v536_v7 = vpop.f32.mrb[1].mxu0 }
 0x161   : > { %v222_v8 = vpop.f32.mrb[2].mxu0 }
 0x162   : > { %v223_v9 = vadd.f32 %v512_v4, %v222_v8  ;;  %v537_v10 = vpop.f32.mrb[3].mxu0  ;;  %v226_v11 = vsel %vm178_vm1, %v220_v6, -inf }
 0x163   : > { %227 = vmax.xlane.f32.xlu0 %v226_v11 }
 0x164   : > { %v229_v12 = vsel %vm178_vm1, %v223_v9, -inf }
 0x165   : > { %230 = vmax.xlane.f32.xlu1 %v229_v12 }
 0x176   : > { %249 = vrot.lane.b32.xlu1 %v647_v1, %s605_s20 }
 0x1f0   : > { %v228_v13 = vpop.xlane.xlu0 %227 }
 0x1f1   : > { %v232_v14 = vsub.f32 %v220_v6, %v228_v13 }
 0x1f2   : > { %v231_v15 = vpop.xlane.xlu1 %230 }
 0x1f3   : > { %v234_v16 = vmul.f32 1.442695, %v232_v14  ;;  %v233_v17 = vsub.f32 %v223_v9, %v231_v15 }
 0x1f5   : > { %578 = vpow2.f32 %v234_v16  ;;  %v236_v18 = vmul.f32 1.442695, %v233_v17 }
 0x1f6   : > { %v250_v19 = vpop.permute.xlu1 %249 }
 0x1f7   : > { %580 = vpow2.f32 %v236_v18  ;;  %539 = vmatpush3.bf16.msra.mxu1 %v250_v19 }
 0x1f8   : > { %544 = vmatprep.subr.bf16.mxu1 %v602_v0 }
 0x1ff   : > { %v579_v20 = vpop.eup %578 }
 0x200   : > { %v238_v21 = vsel %vm178_vm1, %v579_v20, 0.0 }
 0x201   : > { %v581_v22 = vpop.eup %580  ;;  %239 = vadd.xlane.f32.xlu1 %v238_v21 }
 0x202   : > { %v241_v23 = vsel %vm178_vm1, %v581_v22, 0.0 }
 0x205   : > { %242 = vadd.xlane.f32.xlu1 %v241_v23 }
 0x216   : > { %298 = vrot.lane.b32.xlu1 %v647_v1, %s606_s21 }
 0x21a   : > { %296 = vrot.lane.b32.xlu1 %v647_v1, %s607_s22 }
 0x28e   : > { %v240_v24 = vpop.xlane.xlu1 %239 }
 0x28f   : > { %582 = vrcp.f32 %v240_v24 }
 0x292   : > { %v243_v25 = vpop.xlane.xlu1 %242 }
 0x293   : > { %584 = vrcp.f32 %v243_v25 }
 0x296   : > { %v299_v28 = vpop.permute.xlu1 %298 }
 0x297   : > { %v304_v31 = vsel %vm178_vm1, %v299_v28, 0 }
 0x299   : > { %v583_v26 = vpop.eup %582 }
 0x29a   : > { %v246_v29 = vmul.f32 %v583_v26, %v579_v20  ;;  %v297_v33 = vpop.permute.xlu1 %296 }
 0x29d   : > { %v585_v27 = vpop.eup %584 }
 0x29e   : > { %v247_v30 = vmul.f32 %v585_v27, %v581_v22 }
 0x2a0   : > { %v248_v32 = vpack.c.bf16 %v247_v30, %v246_v29 }
 0x2a2   : > { %541 = vmatmul.mubr.msk.bf16.vlgmr.msra.gmra.mrb[0].mxu1 %vm178_vm1, %v248_v32 }
 0x2a3   : > { %545 = vmatpush3.bf16.xpose.msra.mxu1 %v304_v31  ;;  %546 = vmatprep.mubr.msk.bf16.mxu1 %vm603_vm0, %v602_v0 }
 0x2aa   : > { %547 = vmatmul.mubr.msk.bf16.vlgmr.msra.gmra.mrb[4].mxu1 %vm178_vm1, %v297_v33 }
 0x375   : > { %v289_v34 = vpop.f32.mrb[0].mxu1 }
 0x376   : > { %v542_v35 = vpop.f32.mrb[1].mxu1 }
 0x377   : > { %v292_v36 = vpop.f32.mrb[2].mxu1 }
 0x378   : > { %v543_v37 = vpop.f32.mrb[3].mxu1 }
 0x37d   : > { %v340_v38 = vpop.f32.mrb[4].mxu1 }
 0x37e   : > { %v341_v39 = vadd.f32 %v512_v4, %v340_v38  ;;  %v548_v40 = vpop.f32.mrb[5].mxu1 }
 0x37f   : > { %v343_v41 = vpop.f32.mrb[6].mxu1 }
 0x380   : > { %v344_v42 = vadd.f32 %v512_v4, %v343_v41  ;;  %v549_v43 = vpop.f32.mrb[7].mxu1  ;;  %v347_v44 = vsel %vm178_vm1, %v341_v39, -inf }
 0x381   : > { %348 = vmax.xlane.f32.xlu0 %v347_v44 }
 0x382   : > { %v350_v45 = vsel %vm178_vm1, %v344_v42, -inf }
 0x383   : > { %351 = vmax.xlane.f32.xlu1 %v350_v45 }
 0x40e   : > { %v349_v46 = vpop.xlane.xlu0 %348 }
 0x40f   : > { %v353_v47 = vsub.f32 %v341_v39, %v349_v46 }
 0x410   : > { %v352_v48 = vpop.xlane.xlu1 %351 }
 0x411   : > { %v355_v49 = vmul.f32 1.442695, %v353_v47  ;;  %v354_v50 = vsub.f32 %v344_v42, %v352_v48 }
 0x413   : > { %586 = vpow2.f32 %v355_v49  ;;  %v357_v51 = vmul.f32 1.442695, %v354_v50 }
 0x415   : > { %588 = vpow2.f32 %v357_v51 }
 0x41d   : > { %v587_v52 = vpop.eup %586 }
 0x41e   : > { %v359_v53 = vsel %vm178_vm1, %v587_v52, 0.0 }
 0x41f   : > { %v589_v54 = vpop.eup %588  ;;  %360 = vadd.xlane.f32.xlu0 %v359_v53 }
 0x420   : > { %v362_v55 = vsel %vm178_vm1, %v589_v54, 0.0 }
 0x423   : > { %363 = vadd.xlane.f32.xlu0 %v362_v55 }
 0x439   : > { %370 = vrot.lane.b32.xlu0 %v647_v1, %s608_s23 }
 0x4ac   : > { %v361_v56 = vpop.xlane.xlu0 %360 }
 0x4ad   : > { %590 = vrcp.f32 %v361_v56 }
 0x4b0   : > { %v364_v57 = vpop.xlane.xlu0 %363 }
 0x4b1   : > { %592 = vrcp.f32 %v364_v57 }
 0x4b4   : > { %v371_v58 = vpop.permute.xlu0 %370 }
 0x4b5   : > { %551 = vmatpush3.bf16.msra.mxu0 %v371_v58 }
 0x4b7   : > { %v591_v59 = vpop.eup %590 }
 0x4b8   : > { %v367_v61 = vmul.f32 %v591_v59, %v587_v52 }
 0x4bb   : > { %v593_v60 = vpop.eup %592 }
 0x4bc   : > { %v368_v62 = vmul.f32 %v593_v60, %v589_v54 }
 0x4be   : > { %v369_v63 = vpack.c.bf16 %v368_v62, %v367_v61 }
 0x4c0   : > { %553 = vmatmul.mubr.msk.bf16.vlgmr.msra.gmra.mrb[4].mxu0 %vm178_vm1, %v369_v63 }
 0x593   : > { %v410_v0 = vpop.f32.mrb[4].mxu0 }
 0x594   : > { %v554_v2 = vpop.f32.mrb[5].mxu0 }
 0x595   : > { %v413_v3 = vpop.f32.mrb[6].mxu0 }
 0x596   : > { %v572_v4 = vpack.i.bf16 %v413_v3, %v410_v0  ;;  %v555_v5 = vpop.f32.mrb[7].mxu0 }
 0x598   : > { %573 = vrot.lane.b32.xlu0 %v572_v4, %s609_s24 }
 0x60a   : > { %v574_v1 = vpop.permute.xlu0 %573 }
 0x60b   : > { %v576_v6 = vunpack.i.h.bf16 %v574_v1  ;;  %v575_v7 = vunpack.i.l.bf16 %v574_v1 }
 0x60d   : > { %v426_v8 = vsel %vm178_vm1, %v292_v36, %v576_v6  ;;  %v425_v9 = vsel %vm178_vm1, %v289_v34, %v575_v7 }
 0x60e   : > { %v523_v10 = vpack.c.bf16 %v426_v8, %v426_v8  ;;  %v522_v11 = vpack.c.bf16 %v425_v9, %v425_v9 }
 0x610   : > { %437 = vst.msk [vmem:[%s159_s27 + $0x4] sm:$0xf] %vm435_vm2, %v523_v10  ;;  %436 = vst.msk [vmem:[%s159_s27] sm:$0xf] %vm435_vm2, %v522_v11 }
 0x611 PF: > { %s12_s9 = sadd.s32 1, %s600_s9  }
 0x612   : > { %p9_p5 = scmp.ge.s32.totalorder %s12_s9, 8  }
 0x614   :  { %11 = sbr.rel (!%p9_p5) target bundleno = 1 (0x1), region = 61 }

// kernel: forward.15
= control target key start
LH: loop header
LB: loop body
LE: loop exit
PB: predicated region body
PF: predicated region fallthrough
CT: control target
= control target key end

     0   :  { %vm28_vm0 = vcmask 261120   ;;  %v696_v1 = vmov 0.0   ;;  %vm548_vm1 = vcmask 257024   ;;  %s1027_s1 = inlined_call_operand.vmem [shape: bf16[32,32], index: 1, kind: input, shape index: {}]   ;;  %s1028_s0 = inlined_call_operand.vmem [shape: bf16[96,32], index: 0, kind: input, shape index: {}]   ;;  %s1029_s3 = inlined_call_operand.vmem [shape: bf16[96,32], index: 3, kind: input, shape index: {}]   ;;  %s1030_s2 = inlined_call_operand.vmem [shape: f32[1,32], index: 2, kind: input, shape index: {}]   ;;  %s1031_s4 = inlined_call_operand.vmem [shape: f32[1,32], index: 4, kind: input, shape index: {}]   ;;  %s1032_s5 = inlined_call_operand.vmem [shape: f32[1,32], index: 5, kind: input, shape index: {}]   ;;  %s1033_s6 = inlined_call_operand.vmem [shape: bf16[96,32], index: 6, kind: output, shape index: {}]  }
   0x1   :  { %v664_v0 = vld [vmem:[%s1027_s1] sm:$0xff]   ;;  %31 = vst.msk [vmem:[#allocation2 + $0x10] sm:$0xff] %vm28_vm0, %v696_v1  ;;  %29 = vst.msk [vmem:[#allocation2] sm:$0xff] %vm28_vm0, %v696_v1  ;;  %v665_v2 = vld [vmem:[%s1027_s1 + $0x8] sm:$0xff]  }
   0x2   :  { %30 = vst.msk [vmem:[#allocation2 + $0x8] sm:$0xff] %vm28_vm0, %v696_v1  ;;  %32 = vst.msk [vmem:[#allocation2 + $0x18] sm:$0xff] %vm28_vm0, %v696_v1  ;;  %643 = vmatprep.subr.bf16.mxu0 %v664_v0  ;;  %659 = vmatprep.subr.bf16.mxu1 %v664_v0  ;;  %v666_v3 = vld [vmem:[%s1028_s0] sm:$0xff]   ;;  %v667_v4 = vld [vmem:[%s1028_s0 + $0x10] sm:$0xff]  }
   0x3   :  { %33 = vst.msk [vmem:[#allocation2 + $0x20] sm:$0xff] %vm28_vm0, %v696_v1  ;;  %34 = vst.msk [vmem:[#allocation2 + $0x28] sm:$0xff] %vm28_vm0, %v696_v1  ;;  %644 = vmatpush3.bf16.msra.mxu0 %v664_v0  ;;  %661 = vmatpush3.bf16.msra.mxu1 %v664_v0  ;;  %v668_v5 = vld [vmem:[%s1028_s0 + $0x8] sm:$0xff]   ;;  %v669_v6 = vld [vmem:[%s1028_s0 + $0x18] sm:$0xff]  }
   0x4   :  { %35 = vst.msk [vmem:[#allocation2 + $0x30] sm:$0xff] %vm28_vm0, %v696_v1  ;;  %36 = vst.msk [vmem:[#allocation2 + $0x38] sm:$0xff] %vm28_vm0, %v696_v1  ;;  %645 = vmatprep.subr.bf16.mxu0 %v665_v2  ;;  %660 = vmatprep.subr.bf16.mxu1 %v665_v2  ;;  %v670_v7 = vld [vmem:[%s1028_s0 + $0x20] sm:$0xff]   ;;  %v671_v8 = vld [vmem:[%s1028_s0 + $0x28] sm:$0xff]  }
   0x5   :  { %37 = vst.msk [vmem:[#allocation2 + $0x40] sm:$0xff] %vm28_vm0, %v696_v1  ;;  %38 = vst.msk [vmem:[#allocation2 + $0x48] sm:$0xff] %vm28_vm0, %v696_v1  ;;  %647 = vmatprep.mubr.msk.bf16.mxu0 %vm28_vm0, %v666_v3  ;;  %651 = vmatprep.mubr.msk.bf16.mxu1 %vm28_vm0, %v667_v4  ;;  %v632_v34 = vld [vmem:[%s1029_s3 + $0x18] sm:$0xff]   ;;  %v630_v35 = vld [vmem:[%s1029_s3 + $0x8] sm:$0xff]  }
   0x6   :  { %39 = vst.msk [vmem:[#allocation2 + $0x50] sm:$0xff] %vm28_vm0, %v696_v1  ;;  %40 = vst.msk [vmem:[#allocation2 + $0x58] sm:$0xff] %vm28_vm0, %v696_v1  ;;  %v791_v37 = vld [vmem:[%s1029_s3] sm:$0xff]   ;;  %v620_v43 = vunpack.c.l.bf16 %v632_v34  ;;  %v612_v45 = vunpack.c.l.bf16 %v630_v35  ;;  %v613_v56 = vunpack.c.h.bf16 %v630_v35  ;;  %v631_v58 = vld [vmem:[%s1029_s3 + $0x10] sm:$0xff]  }
   0x7   :  { %646 = vmatpush3.bf16.msra.mxu0 %v665_v2  ;;  %662 = vmatpush3.bf16.msra.mxu1 %v665_v2  ;;  %v796_v40 = vld [vmem:[%s1030_s2] ss:$0 sm:$0xff]  ;;  %v608_v50 = vunpack.c.l.bf16 %v791_v37  ;;  %v616_v3 = vunpack.c.l.bf16 %v631_v58 }
   0x8   :  { %v43_v9 = vld [vmem:[#allocation2 + $0x10] sm:$0xff]  ;;  %v41_v11 = vld [vmem:[#allocation2] sm:$0xff] }
   0x9   :  { %v44_v15 = vld [vmem:[#allocation2 + $0x18] sm:$0xff]  ;;  %v42_v21 = vld [vmem:[#allocation2 + $0x8] sm:$0xff] }
   0xa   :  { %648 = vmatmul.mubr.msk.bf16.vlgmr.msra.gmra.mrb[0].mxu0 %vm28_vm0, %v668_v5  ;;  %652 = vmatmul.mubr.msk.bf16.vlgmr.msra.gmra.mrb[0].mxu1 %vm28_vm0, %v669_v6  ;;  %v45_v12 = vld [vmem:[#allocation2 + $0x20] sm:$0xff]  ;;  %v46_v22 = vld [vmem:[#allocation2 + $0x28] sm:$0xff]  ;;  %v621_v5 = vunpack.c.h.bf16 %v632_v34 }
   0xb   :  { %655 = vmatprep.mubr.msk.bf16.mxu1 %vm28_vm0, %v670_v7  ;;  %v47_v10 = vld [vmem:[#allocation2 + $0x30] sm:$0xff]  ;;  %v48_v16 = vld [vmem:[#allocation2 + $0x38] sm:$0xff] }
   0xc   :  { %v49_v36 = vld [vmem:[#allocation2 + $0x40] sm:$0xff]  ;;  %v50_v44 = vld [vmem:[#allocation2 + $0x48] sm:$0xff] }
   0xd   :  { %v51_v33 = vld [vmem:[#allocation2 + $0x50] sm:$0xff]  ;;  %v52_v39 = vld [vmem:[#allocation2 + $0x58] sm:$0xff] }
  0x12   :  { %656 = vmatmul.mubr.msk.bf16.gmra.mrb[4].mxu1 %vm28_vm0, %v671_v8 }
  0xdd   :  { %v649_v13 = vpop.f32.mrb[0].mxu0  ;;  %v653_v14 = vpop.f32.mrb[0].mxu1 }
  0xde   :  { %v213_v17 = vadd.f32 %v649_v13, %v43_v9  ;;  %v217_v18 = vadd.f32 %v653_v14, %v47_v10  ;;  %v164_v19 = vpop.f32.mrb[1].mxu0  ;;  %v180_v20 = vpop.f32.mrb[1].mxu1  ;;  %v617_v14 = vunpack.c.h.bf16 %v631_v58 }
  0xdf   :  { %v211_v23 = vadd.f32 %v164_v19, %v41_v11  ;;  %v215_v24 = vadd.f32 %v180_v20, %v45_v12  ;;  %v650_v25 = vpop.f32.mrb[2].mxu0  ;;  %v654_v26 = vpop.f32.mrb[2].mxu1 }
  0xe0   :  { %225 = vst.msk [vmem:[#allocation2 + $0x10] sm:$0xff] %vm28_vm0, %v213_v17  ;;  %229 = vst.msk [vmem:[#allocation2 + $0x30] sm:$0xff] %vm28_vm0, %v217_v18  ;;  %v214_v27 = vadd.f32 %v650_v25, %v44_v15  ;;  %v218_v28 = vadd.f32 %v654_v26, %v48_v16  ;;  %v167_v29 = vpop.f32.mrb[3].mxu0  ;;  %v183_v30 = vpop.f32.mrb[3].mxu1  ;;  %v609_v15 = vunpack.c.h.bf16 %v791_v37  ;;  %v633_v16 = vld [vmem:[%s1029_s3 + $0x20] sm:$0xff]  }
  0xe1   :  { %223 = vst.msk [vmem:[#allocation2] sm:$0xff] %vm28_vm0, %v211_v23  ;;  %227 = vst.msk [vmem:[#allocation2 + $0x20] sm:$0xff] %vm28_vm0, %v215_v24  ;;  %v212_v31 = vadd.f32 %v167_v29, %v42_v21  ;;  %v216_v32 = vadd.f32 %v183_v30, %v46_v22  ;;  %v625_v23 = vunpack.c.h.bf16 %v633_v16  ;;  %v624_v25 = vunpack.c.l.bf16 %v633_v16 }
  0xe2   :  { %226 = vst.msk [vmem:[#allocation2 + $0x18] sm:$0xff] %vm28_vm0, %v214_v27  ;;  %230 = vst.msk [vmem:[#allocation2 + $0x38] sm:$0xff] %vm28_vm0, %v218_v28 }
  0xe3   :  { %224 = vst.msk [vmem:[#allocation2 + $0x8] sm:$0xff] %vm28_vm0, %v212_v31  ;;  %228 = vst.msk [vmem:[#allocation2 + $0x28] sm:$0xff] %vm28_vm0, %v216_v32  ;;  %v634_v31 = vld [vmem:[%s1029_s3 + $0x28] sm:$0xff]  }
  0xe4   :  { %v628_v37 = vunpack.c.l.bf16 %v634_v31 }
  0xe5   :  { %v657_v38 = vpop.f32.mrb[4].mxu1 }
  0xe6   :  { %v221_v41 = vadd.f32 %v657_v38, %v51_v33  ;;  %v196_v42 = vpop.f32.mrb[5].mxu1 }
  0xe7   :  { %v219_v46 = vadd.f32 %v196_v42, %v49_v36  ;;  %v658_v47 = vpop.f32.mrb[6].mxu1  ;;  %v244_v48 = vld [vmem:[#allocation2 + $0x30] sm:$0xff]  ;;  %v629_v36 = vunpack.c.h.bf16 %v634_v31 }
  0xe8   :  { %v240_v49 = vld [vmem:[#allocation2 + $0x10] sm:$0xff]  ;;  %233 = vst.msk [vmem:[#allocation2 + $0x50] sm:$0xff] %vm28_vm0, %v221_v41  ;;  %v222_v51 = vadd.f32 %v658_v47, %v52_v39  ;;  %v263_v52 = vadd.f32 %v796_v40, %v244_v48  ;;  %v199_v53 = vpop.f32.mrb[7].mxu1  ;;  %v238_v55 = vld [vmem:[#allocation2] sm:$0xff] }
  0xe9   :  { %v259_v54 = vadd.f32 %v796_v40, %v240_v49  ;;  %v242_v57 = vld [vmem:[#allocation2 + $0x20] sm:$0xff]  ;;  %231 = vst.msk [vmem:[#allocation2 + $0x40] sm:$0xff] %vm28_vm0, %v219_v46  ;;  %v220_v59 = vadd.f32 %v199_v53, %v50_v44  ;;  %v257_v60 = vadd.f32 %v796_v40, %v238_v55  ;;  %v241_v61 = vld [vmem:[#allocation2 + $0x18] sm:$0xff] }
  0xea   :  { %v245_v62 = vld [vmem:[#allocation2 + $0x38] sm:$0xff]  ;;  %234 = vst.msk [vmem:[#allocation2 + $0x58] sm:$0xff] %vm28_vm0, %v222_v51  ;;  %v808_v63 = vadd.f32 %v620_v43, %v263_v52  ;;  %v260_v1 = vadd.f32 %v796_v40, %v241_v61  ;;  %v261_v2 = vadd.f32 %v796_v40, %v242_v57  ;;  %v243_v10 = vld [vmem:[#allocation2 + $0x28] sm:$0xff] }
  0xeb   :  { %v810_v0 = vadd.f32 %v612_v45, %v259_v54  ;;  %232 = vst.msk [vmem:[#allocation2 + $0x48] sm:$0xff] %vm28_vm0, %v220_v59  ;;  %v264_v4 = vadd.f32 %v796_v40, %v245_v62  ;;  %v820_v8 = vadd.f32 %v608_v50, %v257_v60  ;;  %v239_v11 = vld [vmem:[#allocation2 + $0x8] sm:$0xff]  ;;  %v262_v13 = vadd.f32 %v796_v40, %v243_v10 }
  0xec   :  { %v323_v6 = vsel %vm28_vm0, %v808_v63, 0.0  ;;  %v822_v9 = vadd.f32 %v613_v56, %v260_v1  ;;  %v824_v12 = vadd.f32 %v616_v3, %v261_v2  ;;  %v258_v20 = vadd.f32 %v796_v40, %v239_v11 }
  0xed   :  { %v311_v7 = vsel %vm28_vm0, %v810_v0, 0.0  ;;  %324 = vadd.xlane.f32.xlu0 %v323_v6  ;;  %v305_v17 = vsel %vm28_vm0, %v820_v8, 0.0  ;;  %v300_v19 = vadd.f32 %v621_v5, %v264_v4  ;;  %v298_v29 = vadd.f32 %v617_v14, %v262_v13 }
  0xee   :  { %312 = vadd.xlane.f32.xlu1 %v311_v7  ;;  %v314_v18 = vsel %vm28_vm0, %v822_v9, 0.0  ;;  %v317_v27 = vsel %vm28_vm0, %v824_v12, 0.0  ;;  %v294_v30 = vadd.f32 %v609_v15, %v258_v20 }
  0xef   :  { %v326_v28 = vsel %vm28_vm0, %v300_v19, 0.0  ;;  %v248_v33 = vld [vmem:[#allocation2 + $0x50] sm:$0xff]  ;;  %v320_v38 = vsel %vm28_vm0, %v298_v29, 0.0 }
  0xf0   :  { %v246_v21 = vld [vmem:[#allocation2 + $0x40] sm:$0xff]  ;;  %v308_v39 = vsel %vm28_vm0, %v294_v30, 0.0  ;;  %v267_v42 = vadd.f32 %v796_v40, %v248_v33 }
  0xf1   :  { %306 = vadd.xlane.f32.xlu0 %v305_v17  ;;  %v265_v24 = vadd.f32 %v796_v40, %v246_v21  ;;  %v249_v32 = vld [vmem:[#allocation2 + $0x58] sm:$0xff] }
  0xf2   :  { %315 = vadd.xlane.f32.xlu1 %v314_v18  ;;  %v247_v22 = vld [vmem:[#allocation2 + $0x48] sm:$0xff]  ;;  %v268_v41 = vadd.f32 %v796_v40, %v249_v32  ;;  %v858_v46 = vadd.f32 %v628_v37, %v267_v42 }
  0xf3   :  { %v266_v26 = vadd.f32 %v796_v40, %v247_v22  ;;  %v846_v35 = vadd.f32 %v624_v25, %v265_v24 }
  0xf4   :  { %v856_v45 = vadd.f32 %v629_v36, %v268_v41  ;;  %v335_v40 = vsel %vm28_vm0, %v858_v46, 0.0 }
  0xf5   :  { %318 = vadd.xlane.f32.xlu0 %v317_v27  ;;  %v844_v34 = vadd.f32 %v625_v23, %v266_v26  ;;  %v329_v44 = vsel %vm28_vm0, %v846_v35, 0.0 }
  0xf6   :  { %327 = vadd.xlane.f32.xlu1 %v326_v28  ;;  %v338_v47 = vsel %vm28_vm0, %v856_v45, 0.0 }
  0xf7   :  { %v332_v43 = vsel %vm28_vm0, %v844_v34, 0.0 }
  0xf9   :  { %309 = vadd.xlane.f32.xlu0 %v308_v39 }
  0xfa   :  { %321 = vadd.xlane.f32.xlu1 %v320_v38 }
  0xfd   :  { %330 = vadd.xlane.f32.xlu0 %v329_v44 }
  0xfe   :  { %333 = vadd.xlane.f32.xlu1 %v332_v43 }
 0x101   :  { %336 = vadd.xlane.f32.xlu0 %v335_v40 }
 0x102   :  { %339 = vadd.xlane.f32.xlu1 %v338_v47 }
 0x17a   :  { %v325_v48 = vpop.xlane.xlu0 %324 }
 0x17b   :  { %v313_v49 = vpop.xlane.xlu1 %312  ;;  %v348_v50 = vmul.f32 0.03125, %v325_v48 }
 0x17c   :  { %v344_v51 = vmul.f32 0.03125, %v313_v49 }
 0x17d   :  { %v865_v52 = vsub.f32 %v808_v63, %v348_v50 }
 0x17e   :  { %v868_v53 = vsub.f32 %v810_v0, %v344_v51  ;;  %v307_v54 = vpop.xlane.xlu0 %306 }
 0x17f   :  { %v316_v55 = vpop.xlane.xlu1 %315  ;;  %v342_v56 = vmul.f32 0.03125, %v307_v54  ;;  %v372_v62 = vmul.f32 %v865_v52, %v865_v52 }
 0x180   :  { %v345_v57 = vmul.f32 0.03125, %v316_v55  ;;  %v368_v58 = vmul.f32 %v868_v53, %v868_v53 }
 0x181   :  { %v873_v59 = vsub.f32 %v820_v8, %v342_v56  ;;  %v396_v8 = vsel %vm28_vm0, %v372_v62, 0.0 }
 0x182   :  { %v876_v60 = vsub.f32 %v822_v9, %v345_v57  ;;  %v384_v61 = vsel %vm28_vm0, %v368_v58, 0.0  ;;  %v319_v63 = vpop.xlane.xlu0 %318 }
 0x183   :  { %v328_v0 = vpop.xlane.xlu1 %327  ;;  %385 = vadd.xlane.f32.xlu0 %v384_v61  ;;  %v346_v1 = vmul.f32 0.03125, %v319_v63  ;;  %v366_v4 = vmul.f32 %v873_v59, %v873_v59 }
 0x184   :  { %v349_v2 = vmul.f32 0.03125, %v328_v0  ;;  %v369_v3 = vmul.f32 %v876_v60, %v876_v60 }
 0x185   :  { %v886_v5 = vsub.f32 %v824_v12, %v346_v1  ;;  %v378_v15 = vsel %vm28_vm0, %v366_v4, 0.0  ;;  %v936_v4 = vld [vmem:[%s1031_s4] ss:$0 sm:$0xff] }
 0x186   :  { %v888_v6 = vsub.f32 %v300_v19, %v349_v2  ;;  %v387_v7 = vsel %vm28_vm0, %v369_v3, 0.0  ;;  %v310_v10 = vpop.xlane.xlu0 %309 }
 0x187   :  { %388 = vadd.xlane.f32.xlu1 %v387_v7  ;;  %v322_v9 = vpop.xlane.xlu1 %321  ;;  %397 = vadd.xlane.f32.xlu0 %v396_v8  ;;  %v343_v13 = vmul.f32 0.03125, %v310_v10  ;;  %v370_v18 = vmul.f32 %v886_v5, %v886_v5 }
 0x188   :  { %v347_v11 = vmul.f32 0.03125, %v322_v9  ;;  %v373_v14 = vmul.f32 %v888_v6, %v888_v6 }
 0x189   :  { %v897_v12 = vsub.f32 %v294_v30, %v343_v13  ;;  %v390_v27 = vsel %vm28_vm0, %v370_v18, 0.0  ;;  %v942_v13 = vld [vmem:[%s1032_s5] ss:$0 sm:$0xff] }
 0x18a   :  { %v895_v16 = vsub.f32 %v298_v29, %v347_v11  ;;  %v399_v17 = vsel %vm28_vm0, %v373_v14, 0.0  ;;  %v331_v20 = vpop.xlane.xlu0 %330 }
 0x18b   :  { %400 = vadd.xlane.f32.xlu1 %v399_v17  ;;  %v334_v19 = vpop.xlane.xlu1 %333  ;;  %379 = vadd.xlane.f32.xlu0 %v378_v15  ;;  %v350_v22 = vmul.f32 0.03125, %v331_v20  ;;  %v367_v23 = vmul.f32 %v897_v12, %v897_v12 }
 0x18c   :  { %v351_v21 = vmul.f32 0.03125, %v334_v19  ;;  %v371_v24 = vmul.f32 %v895_v16, %v895_v16 }
 0x18d   :  { %v910_v26 = vsub.f32 %v846_v35, %v350_v22  ;;  %v381_v28 = vsel %vm28_vm0, %v367_v23, 0.0 }
 0x18e   :  { %v907_v25 = vsub.f32 %v844_v34, %v351_v21  ;;  %v337_v30 = vpop.xlane.xlu0 %336  ;;  %v393_v36 = vsel %vm28_vm0, %v371_v24, 0.0 }
 0x18f   :  { %v340_v29 = vpop.xlane.xlu1 %339  ;;  %391 = vadd.xlane.f32.xlu0 %v390_v27  ;;  %382 = vadd.xlane.f32.xlu1 %v381_v28  ;;  %v352_v32 = vmul.f32 0.03125, %v337_v30  ;;  %v374_v33 = vmul.f32 %v910_v26, %v910_v26 }
 0x190   :  { %v353_v31 = vmul.f32 0.03125, %v340_v29  ;;  %v375_v38 = vmul.f32 %v907_v25, %v907_v25 }
 0x191   :  { %v921_v35 = vsub.f32 %v858_v46, %v352_v32  ;;  %v402_v37 = vsel %vm28_vm0, %v374_v33, 0.0 }
 0x192   :  { %v918_v34 = vsub.f32 %v856_v45, %v353_v31  ;;  %v405_v41 = vsel %vm28_vm0, %v375_v38, 0.0 }
 0x193   :  { %394 = vadd.xlane.f32.xlu1 %v393_v36  ;;  %403 = vadd.xlane.f32.xlu0 %v402_v37  ;;  %v376_v39 = vmul.f32 %v921_v35, %v921_v35 }
 0x194   :  { %v377_v43 = vmul.f32 %v918_v34, %v918_v34 }
 0x195   :  { %v408_v42 = vsel %vm28_vm0, %v376_v39, 0.0 }
 0x196   :  { %v411_v44 = vsel %vm28_vm0, %v377_v43, 0.0 }
 0x197   :  { %406 = vadd.xlane.f32.xlu1 %v405_v41  ;;  %409 = vadd.xlane.f32.xlu0 %v408_v42 }
 0x19b   :  { %412 = vadd.xlane.f32.xlu1 %v411_v44 }
 0x210   :  { %v386_v45 = vpop.xlane.xlu0 %385 }
 0x211   :  { %v416_v46 = vmul.f32 0.03125, %v386_v45 }
 0x213   :  { %v428_v47 = vadd.f32 1e-12, %v416_v46 }
 0x214   :  { %v389_v40 = vpop.xlane.xlu1 %388  ;;  %v398_v48 = vpop.xlane.xlu0 %397 }
 0x215   :  { %672 = vrsqrt.f32 %v428_v47  ;;  %v417_v49 = vmul.f32 0.03125, %v389_v40  ;;  %v420_v50 = vmul.f32 0.03125, %v398_v48 }
 0x217   :  { %v429_v51 = vadd.f32 1e-12, %v417_v49  ;;  %v432_v54 = vadd.f32 1e-12, %v420_v50 }
 0x218   :  { %v401_v55 = vpop.xlane.xlu1 %400  ;;  %v380_v56 = vpop.xlane.xlu0 %379 }
 0x219   :  { %674 = vrsqrt.f32 %v429_v51  ;;  %v421_v57 = vmul.f32 0.03125, %v401_v55  ;;  %v414_v58 = vmul.f32 0.03125, %v380_v56 }
 0x21a   :  { %676 = vrsqrt.f32 %v432_v54 }
 0x21b   :  { %v433_v61 = vadd.f32 1e-12, %v421_v57  ;;  %v426_v62 = vadd.f32 1e-12, %v414_v58 }
 0x21c   :  { %v383_v63 = vpop.xlane.xlu1 %382  ;;  %v392_v0 = vpop.xlane.xlu0 %391 }
 0x21d   :  { %678 = vrsqrt.f32 %v433_v61  ;;  %v415_v1 = vmul.f32 0.03125, %v383_v63  ;;  %v418_v2 = vmul.f32 0.03125, %v392_v0 }
 0x21e   :  { %680 = vrsqrt.f32 %v426_v62 }
 0x21f   :  { %v673_v3 = vpop.eup %672  ;;  %v427_v7 = vadd.f32 1e-12, %v415_v1  ;;  %v430_v8 = vadd.f32 1e-12, %v418_v2 }
 0x220   :  { %v452_v9 = vmul.f32 %v673_v3, %v868_v53  ;;  %v395_v10 = vpop.xlane.xlu1 %394  ;;  %v404_v11 = vpop.xlane.xlu0 %403 }
 0x221   :  { %682 = vrsqrt.f32 %v427_v7  ;;  %v419_v14 = vmul.f32 0.03125, %v395_v10  ;;  %v422_v15 = vmul.f32 0.03125, %v404_v11 }
 0x222   :  { %v471_v17 = vmul.f32 %v936_v4, %v452_v9  ;;  %684 = vrsqrt.f32 %v430_v8 }
 0x223   :  { %v675_v18 = vpop.eup %674  ;;  %v431_v19 = vadd.f32 1e-12, %v419_v14  ;;  %v434_v20 = vadd.f32 1e-12, %v422_v15 }
 0x224   :  { %v677_v21 = vpop.eup %676  ;;  %v490_v53 = vadd.f32 %v942_v13, %v471_v17  ;;  %v453_v22 = vmul.f32 %v675_v18, %v876_v60  ;;  %v407_v23 = vpop.xlane.xlu1 %406 }
 0x225   :  { %v410_v24 = vpop.xlane.xlu0 %409  ;;  %v456_v27 = vmul.f32 %v677_v21, %v865_v52  ;;  %686 = vrsqrt.f32 %v431_v19  ;;  %v423_v28 = vmul.f32 0.03125, %v407_v23 }
 0x226   :  { %v424_v29 = vmul.f32 0.03125, %v410_v24  ;;  %v596_v30 = vpack.c.bf16 %v490_v53, %v490_v53  ;;  %v472_v31 = vmul.f32 %v936_v4, %v453_v22  ;;  %688 = vrsqrt.f32 %v434_v20 }
 0x227   :  { %v679_v32 = vpop.eup %678  ;;  %v475_v33 = vmul.f32 %v936_v4, %v456_v27  ;;  %v435_v36 = vadd.f32 1e-12, %v423_v28 }
 0x228   :  { %v436_v37 = vadd.f32 1e-12, %v424_v29  ;;  %v681_v38 = vpop.eup %680  ;;  %551 = vst.msk [vmem:[%s1033_s6 + $0x8] sm:$0xf] %vm548_vm1, %v596_v30  ;;  %v491_v52 = vadd.f32 %v942_v13, %v472_v31  ;;  %v457_v60 = vmul.f32 %v679_v32, %v888_v6  ;;  %v413_v39 = vpop.xlane.xlu1 %412 }
 0x229   :  { %v494_v41 = vadd.f32 %v942_v13, %v475_v33  ;;  %v450_v42 = vmul.f32 %v681_v38, %v873_v59  ;;  %690 = vrsqrt.f32 %v435_v36  ;;  %v425_v43 = vmul.f32 0.03125, %v413_v39 }
 0x22a   :  { %v597_v44 = vpack.c.bf16 %v491_v52, %v491_v52  ;;  %v476_v45 = vmul.f32 %v936_v4, %v457_v60  ;;  %692 = vrsqrt.f32 %v436_v37 }
 0x22b   :  { %v683_v46 = vpop.eup %682  ;;  %v600_v47 = vpack.c.bf16 %v494_v41, %v494_v41  ;;  %v469_v40 = vmul.f32 %v936_v4, %v450_v42  ;;  %v437_v48 = vadd.f32 1e-12, %v425_v43 }
 0x22c   :  { %v685_v49 = vpop.eup %684  ;;  %552 = vst.msk [vmem:[%s1033_s6 + $0xc] sm:$0xf] %vm548_vm1, %v597_v44  ;;  %v495_v6 = vadd.f32 %v942_v13, %v476_v45  ;;  %v451_v59 = vmul.f32 %v683_v46, %v897_v12 }
 0x22d   :  { %555 = vst.msk [vmem:[%s1033_s6 + $0x18] sm:$0xf] %vm548_vm1, %v600_v47  ;;  %v488_v50 = vadd.f32 %v942_v13, %v469_v40  ;;  %v454_v51 = vmul.f32 %v685_v49, %v886_v5  ;;  %694 = vrsqrt.f32 %v437_v48 }
 0x22e   :  { %v601_v54 = vpack.c.bf16 %v495_v6, %v495_v6  ;;  %v470_v55 = vmul.f32 %v936_v4, %v451_v59 }
 0x22f   :  { %v687_v56 = vpop.eup %686  ;;  %v594_v57 = vpack.c.bf16 %v488_v50, %v488_v50  ;;  %v473_v58 = vmul.f32 %v936_v4, %v454_v51 }
 0x230   :  { %v689_v61 = vpop.eup %688  ;;  %556 = vst.msk [vmem:[%s1033_s6 + $0x1c] sm:$0xf] %vm548_vm1, %v601_v54  ;;  %v489_v12 = vadd.f32 %v942_v13, %v470_v55  ;;  %v455_v62 = vmul.f32 %v687_v56, %v895_v16 }
 0x231   :  { %549 = vst.msk [vmem:[%s1033_s6] sm:$0xf] %vm548_vm1, %v594_v57  ;;  %v492_v5 = vadd.f32 %v942_v13, %v473_v58  ;;  %v458_v63 = vmul.f32 %v689_v61, %v910_v26 }
 0x232   :  { %v595_v0 = vpack.c.bf16 %v489_v12, %v489_v12  ;;  %v474_v1 = vmul.f32 %v936_v4, %v455_v62 }
 0x233   :  { %v691_v2 = vpop.eup %690  ;;  %v598_v3 = vpack.c.bf16 %v492_v5, %v492_v5  ;;  %v477_v7 = vmul.f32 %v936_v4, %v458_v63 }
 0x234   :  { %v693_v8 = vpop.eup %692  ;;  %550 = vst.msk [vmem:[%s1033_s6 + $0x4] sm:$0xf] %vm548_vm1, %v595_v0  ;;  %v493_v16 = vadd.f32 %v942_v13, %v474_v1  ;;  %v459_v9 = vmul.f32 %v691_v2, %v907_v25 }
 0x235   :  { %553 = vst.msk [vmem:[%s1033_s6 + $0x10] sm:$0xf] %vm548_vm1, %v598_v3  ;;  %v496_v26 = vadd.f32 %v942_v13, %v477_v7  ;;  %v460_v10 = vmul.f32 %v693_v8, %v921_v35 }
 0x236   :  { %v599_v11 = vpack.c.bf16 %v493_v16, %v493_v16  ;;  %v478_v14 = vmul.f32 %v936_v4, %v459_v9 }
 0x237   :  { %v695_v15 = vpop.eup %694  ;;  %v602_v17 = vpack.c.bf16 %v496_v26, %v496_v26  ;;  %v479_v18 = vmul.f32 %v936_v4, %v460_v10 }
 0x238   :  { %554 = vst.msk [vmem:[%s1033_s6 + $0x14] sm:$0xf] %vm548_vm1, %v599_v11  ;;  %v497_v25 = vadd.f32 %v942_v13, %v478_v14  ;;  %v461_v19 = vmul.f32 %v695_v15, %v918_v34 }
 0x239   :  { %557 = vst.msk [vmem:[%s1033_s6 + $0x20] sm:$0xf] %vm548_vm1, %v602_v17  ;;  %v498_v35 = vadd.f32 %v942_v13, %v479_v18 }
 0x23a   :  { %v603_v20 = vpack.c.bf16 %v497_v25, %v497_v25  ;;  %v480_v21 = vmul.f32 %v936_v4, %v461_v19 }
 0x23b   :  { %v604_v53 = vpack.c.bf16 %v498_v35, %v498_v35 }
 0x23c   :  { %558 = vst.msk [vmem:[%s1033_s6 + $0x24] sm:$0xf] %vm548_vm1, %v603_v20  ;;  %v499_v22 = vadd.f32 %v942_v13, %v480_v21 }
 0x23d   :  { %559 = vst.msk [vmem:[%s1033_s6 + $0x28] sm:$0xf] %vm548_vm1, %v604_v53 }
 0x23e   :  { %v605_v34 = vpack.c.bf16 %v499_v22, %v499_v22 }
 0x240   :  { %560 = vst.msk [vmem:[%s1033_s6 + $0x2c] sm:$0xf] %vm548_vm1, %v605_v34 }

// kernel: forward.13
= control target key start
LH: loop header
LB: loop body
LE: loop exit
PB: predicated region body
PF: predicated region fallthrough
CT: control target
= control target key end

     0   :  { %vm19_vm0 = vcmask 785408   ;;  %v402_v1 = vmov 0.0   ;;  %vm102_vm1 = vcmask 261120   ;;  %vm309_vm2 = vcmask 781312   ;;  %s528_s1 = inlined_call_operand.vmem [shape: bf16[32,96], index: 1, kind: input, shape index: {}]   ;;  %s529_s0 = inlined_call_operand.vmem [shape: bf16[96,32], index: 0, kind: input, shape index: {}]   ;;  %s530_s2 = inlined_call_operand.vmem [shape: f32[1,96], index: 2, kind: input, shape index: {}]   ;;  %s531_s3 = inlined_call_operand.vmem [shape: bf16[96,96], index: 3, kind: output, shape index: {}]  }
   0x1   :  { %v394_v0 = vld [vmem:[%s528_s1] sm:$0xff]   ;;  %26 = vst.msk [vmem:[#allocation2 + $0x30] sm:$0xff] %vm19_vm0, %v402_v1  ;;  %20 = vst.msk [vmem:[#allocation2] sm:$0xff] %vm19_vm0, %v402_v1  ;;  %v395_v2 = vld [vmem:[%s528_s1 + $0x8] sm:$0xff]  }
   0x2   :  { %21 = vst.msk [vmem:[#allocation2 + $0x8] sm:$0xff] %vm19_vm0, %v402_v1  ;;  %22 = vst.msk [vmem:[#allocation2 + $0x10] sm:$0xff] %vm19_vm0, %v402_v1  ;;  %389 = vmatprep.subr.bf16.mxu1 %v394_v0  ;;  %373 = vmatprep.subr.bf16.mxu0 %v394_v0  ;;  %v396_v3 = vld [vmem:[%s529_s0 + $0x10] sm:$0xff]   ;;  %v398_v4 = vld [vmem:[%s529_s0] sm:$0xff]  }
   0x3   :  { %23 = vst.msk [vmem:[#allocation2 + $0x18] sm:$0xff] %vm19_vm0, %v402_v1  ;;  %24 = vst.msk [vmem:[#allocation2 + $0x20] sm:$0xff] %vm19_vm0, %v402_v1  ;;  %391 = vmatpush3.bf16.msra.mxu1 %v394_v0  ;;  %374 = vmatpush3.bf16.msra.mxu0 %v394_v0  ;;  %v397_v5 = vld [vmem:[%s529_s0 + $0x18] sm:$0xff]   ;;  %v399_v6 = vld [vmem:[%s529_s0 + $0x8] sm:$0xff]  }
   0x4   :  { %25 = vst.msk [vmem:[#allocation2 + $0x28] sm:$0xff] %vm19_vm0, %v402_v1  ;;  %27 = vst.msk [vmem:[#allocation2 + $0x38] sm:$0xff] %vm19_vm0, %v402_v1  ;;  %390 = vmatprep.subr.bf16.mxu1 %v395_v2  ;;  %381 = vmatprep.mubr.msk.bf16.mxu1 %vm102_vm1, %v396_v3  ;;  %v400_v7 = vld [vmem:[%s529_s0 + $0x20] sm:$0xff]   ;;  %v401_v8 = vld [vmem:[%s529_s0 + $0x28] sm:$0xff]  }
   0x5   :  { %28 = vst.msk [vmem:[#allocation2 + $0x40] sm:$0xff] %vm19_vm0, %v402_v1  ;;  %29 = vst.msk [vmem:[#allocation2 + $0x48] sm:$0xff] %vm19_vm0, %v402_v1  ;;  %375 = vmatprep.subr.bf16.mxu0 %v395_v2  ;;  %377 = vmatprep.mubr.msk.bf16.mxu0 %vm102_vm1, %v398_v4  ;;  %v340_v35 = vld [vmem:[%s530_s2] ss:$0 sm:$0xff] }
   0x6   :  { %30 = vst.msk [vmem:[#allocation2 + $0x50] sm:$0xff] %vm19_vm0, %v402_v1  ;;  %31 = vst.msk [vmem:[#allocation2 + $0x58] sm:$0xff] %vm19_vm0, %v402_v1 }
   0x7   :  { %392 = vmatpush3.bf16.msra.mxu1 %v395_v2  ;;  %376 = vmatpush3.bf16.msra.mxu0 %v395_v2 }
   0x8   :  { %v38_v9 = vld [vmem:[#allocation2 + $0x30] sm:$0xff]  ;;  %v32_v12 = vld [vmem:[#allocation2] sm:$0xff] }
   0x9   :  { %v34_v10 = vld [vmem:[#allocation2 + $0x10] sm:$0xff]  ;;  %v33_v22 = vld [vmem:[#allocation2 + $0x8] sm:$0xff] }
   0xa   :  { %382 = vmatmul.mubr.msk.bf16.vlgmr.msra.gmra.mrb[0].mxu1 %vm102_vm1, %v397_v5  ;;  %378 = vmatmul.mubr.msk.bf16.vlgmr.msra.gmra.mrb[0].mxu0 %vm102_vm1, %v399_v6  ;;  %v36_v11 = vld [vmem:[#allocation2 + $0x20] sm:$0xff]  ;;  %v35_v16 = vld [vmem:[#allocation2 + $0x18] sm:$0xff] }
   0xb   :  { %385 = vmatprep.mubr.msk.bf16.mxu1 %vm102_vm1, %v400_v7  ;;  %v39_v14 = vld [vmem:[#allocation2 + $0x38] sm:$0xff]  ;;  %v37_v19 = vld [vmem:[#allocation2 + $0x28] sm:$0xff] }
   0xc   :  { %v40_v34 = vld [vmem:[#allocation2 + $0x40] sm:$0xff]  ;;  %v41_v40 = vld [vmem:[#allocation2 + $0x48] sm:$0xff] }
   0xd   :  { %v42_v33 = vld [vmem:[#allocation2 + $0x50] sm:$0xff]  ;;  %v43_v37 = vld [vmem:[#allocation2 + $0x58] sm:$0xff] }
  0x12   :  { %386 = vmatmul.mubr.msk.bf16.gmra.mrb[4].mxu1 %vm102_vm1, %v401_v8 }
  0xdd   :  { %v383_v13 = vpop.f32.mrb[0].mxu1  ;;  %v379_v15 = vpop.f32.mrb[0].mxu0 }
  0xde   :  { %v208_v17 = vadd.f32 %v383_v13, %v38_v9  ;;  %v171_v18 = vpop.f32.mrb[1].mxu1  ;;  %v204_v20 = vadd.f32 %v379_v15, %v34_v10  ;;  %v155_v21 = vpop.f32.mrb[1].mxu0 }
  0xdf   :  { %v206_v23 = vadd.f32 %v171_v18, %v36_v11  ;;  %v384_v24 = vpop.f32.mrb[2].mxu1  ;;  %v202_v25 = vadd.f32 %v155_v21, %v32_v12  ;;  %v380_v26 = vpop.f32.mrb[2].mxu0 }
  0xe0   :  { %221 = vst.msk [vmem:[#allocation2 + $0x30] sm:$0xff] %vm19_vm0, %v208_v17  ;;  %v209_v27 = vadd.f32 %v384_v24, %v39_v14  ;;  %v174_v28 = vpop.f32.mrb[3].mxu1  ;;  %217 = vst.msk [vmem:[#allocation2 + $0x10] sm:$0xff] %vm19_vm0, %v204_v20  ;;  %v205_v29 = vadd.f32 %v380_v26, %v35_v16  ;;  %v158_v30 = vpop.f32.mrb[3].mxu0 }
  0xe1   :  { %219 = vst.msk [vmem:[#allocation2 + $0x20] sm:$0xff] %vm19_vm0, %v206_v23  ;;  %v207_v31 = vadd.f32 %v174_v28, %v37_v19  ;;  %215 = vst.msk [vmem:[#allocation2] sm:$0xff] %vm19_vm0, %v202_v25  ;;  %v203_v32 = vadd.f32 %v158_v30, %v33_v22 }
  0xe2   :  { %222 = vst.msk [vmem:[#allocation2 + $0x38] sm:$0xff] %vm19_vm0, %v209_v27  ;;  %218 = vst.msk [vmem:[#allocation2 + $0x18] sm:$0xff] %vm19_vm0, %v205_v29 }
  0xe3   :  { %220 = vst.msk [vmem:[#allocation2 + $0x28] sm:$0xff] %vm19_vm0, %v207_v31  ;;  %216 = vst.msk [vmem:[#allocation2 + $0x8] sm:$0xff] %vm19_vm0, %v203_v32 }
  0xe5   :  { %v387_v36 = vpop.f32.mrb[4].mxu1 }
  0xe6   :  { %v212_v38 = vadd.f32 %v387_v36, %v42_v33  ;;  %v187_v39 = vpop.f32.mrb[5].mxu1 }
  0xe7   :  { %v236_v41 = vld [vmem:[#allocation2 + $0x30] sm:$0xff]  ;;  %v210_v43 = vadd.f32 %v187_v39, %v40_v34  ;;  %v388_v44 = vpop.f32.mrb[6].mxu1 }
  0xe8   :  { %v232_v42 = vld [vmem:[#allocation2 + $0x10] sm:$0xff]  ;;  %v255_v45 = vadd.f32 %v340_v35, %v236_v41  ;;  %v234_v46 = vld [vmem:[#allocation2 + $0x20] sm:$0xff]  ;;  %225 = vst.msk [vmem:[#allocation2 + $0x50] sm:$0xff] %vm19_vm0, %v212_v38  ;;  %v213_v49 = vadd.f32 %v388_v44, %v43_v37  ;;  %v190_v50 = vpop.f32.mrb[7].mxu1 }
  0xe9   :  { %v251_v47 = vadd.f32 %v340_v35, %v232_v42  ;;  %v230_v48 = vld [vmem:[#allocation2] sm:$0xff]  ;;  %v253_v51 = vadd.f32 %v340_v35, %v234_v46  ;;  %v237_v52 = vld [vmem:[#allocation2 + $0x38] sm:$0xff]  ;;  %223 = vst.msk [vmem:[#allocation2 + $0x40] sm:$0xff] %vm19_vm0, %v210_v43  ;;  %v211_v55 = vadd.f32 %v190_v50, %v41_v40 }
  0xea   :  { %v249_v53 = vadd.f32 %v340_v35, %v230_v48  ;;  %v233_v54 = vld [vmem:[#allocation2 + $0x18] sm:$0xff]  ;;  %v359_v56 = vpack.c.bf16 %v255_v45, %v255_v45  ;;  %v256_v57 = vadd.f32 %v340_v35, %v237_v52  ;;  %v235_v58 = vld [vmem:[#allocation2 + $0x28] sm:$0xff]  ;;  %226 = vst.msk [vmem:[#allocation2 + $0x58] sm:$0xff] %vm19_vm0, %v213_v49 }
  0xeb   :  { %v355_v59 = vpack.c.bf16 %v251_v47, %v251_v47  ;;  %v252_v60 = vadd.f32 %v340_v35, %v233_v54  ;;  %v231_v61 = vld [vmem:[#allocation2 + $0x8] sm:$0xff]  ;;  %v357_v62 = vpack.c.bf16 %v253_v51, %v253_v51  ;;  %v254_v63 = vadd.f32 %v340_v35, %v235_v58  ;;  %224 = vst.msk [vmem:[#allocation2 + $0x48] sm:$0xff] %vm19_vm0, %v211_v55 }
  0xec   :  { %v353_v0 = vpack.c.bf16 %v249_v53, %v249_v53  ;;  %v250_v1 = vadd.f32 %v340_v35, %v231_v61  ;;  %316 = vst.msk [vmem:[%s531_s3 + $0x18] sm:$0xf] %vm309_vm2, %v359_v56  ;;  %v360_v2 = vpack.c.bf16 %v256_v57, %v256_v57 }
  0xed   :  { %312 = vst.msk [vmem:[%s531_s3 + $0x8] sm:$0xf] %vm309_vm2, %v355_v59  ;;  %v356_v3 = vpack.c.bf16 %v252_v60, %v252_v60  ;;  %314 = vst.msk [vmem:[%s531_s3 + $0x10] sm:$0xf] %vm309_vm2, %v357_v62  ;;  %v358_v4 = vpack.c.bf16 %v254_v63, %v254_v63 }
  0xee   :  { %310 = vst.msk [vmem:[%s531_s3] sm:$0xf] %vm309_vm2, %v353_v0  ;;  %v354_v5 = vpack.c.bf16 %v250_v1, %v250_v1  ;;  %317 = vst.msk [vmem:[%s531_s3 + $0x1c] sm:$0xf] %vm309_vm2, %v360_v2 }
  0xef   :  { %313 = vst.msk [vmem:[%s531_s3 + $0xc] sm:$0xf] %vm309_vm2, %v356_v3  ;;  %315 = vst.msk [vmem:[%s531_s3 + $0x14] sm:$0xf] %vm309_vm2, %v358_v4  ;;  %v240_v6 = vld [vmem:[#allocation2 + $0x50] sm:$0xff] }
  0xf0   :  { %311 = vst.msk [vmem:[%s531_s3 + $0x4] sm:$0xf] %vm309_vm2, %v354_v5  ;;  %v259_v7 = vadd.f32 %v340_v35, %v240_v6  ;;  %v238_v8 = vld [vmem:[#allocation2 + $0x40] sm:$0xff] }
  0xf1   :  { %v257_v9 = vadd.f32 %v340_v35, %v238_v8  ;;  %v241_v10 = vld [vmem:[#allocation2 + $0x58] sm:$0xff] }
  0xf2   :  { %v363_v11 = vpack.c.bf16 %v259_v7, %v259_v7  ;;  %v260_v12 = vadd.f32 %v340_v35, %v241_v10  ;;  %v239_v13 = vld [vmem:[#allocation2 + $0x48] sm:$0xff] }
  0xf3   :  { %v361_v14 = vpack.c.bf16 %v257_v9, %v257_v9  ;;  %v258_v15 = vadd.f32 %v340_v35, %v239_v13 }
  0xf4   :  { %320 = vst.msk [vmem:[%s531_s3 + $0x28] sm:$0xf] %vm309_vm2, %v363_v11  ;;  %v364_v16 = vpack.c.bf16 %v260_v12, %v260_v12 }
  0xf5   :  { %318 = vst.msk [vmem:[%s531_s3 + $0x20] sm:$0xf] %vm309_vm2, %v361_v14  ;;  %v362_v17 = vpack.c.bf16 %v258_v15, %v258_v15 }
  0xf6   :  { %321 = vst.msk [vmem:[%s531_s3 + $0x2c] sm:$0xf] %vm309_vm2, %v364_v16 }
  0xf7   :  { %319 = vst.msk [vmem:[%s531_s3 + $0x24] sm:$0xf] %vm309_vm2, %v362_v17 }

// kernel: squeeze.1
= control target key start
LH: loop header
LB: loop body
LE: loop exit
PB: predicated region body
PF: predicated region fallthrough
CT: control target
= control target key end

     0   :  { %vm19_vm0 = vcmask 261120   ;;  %v39_v5 = vmov 0.0   ;;  %s59_s0 = inlined_call_operand.vmem [shape: bf16[6,32], index: 0, kind: input, shape index: {}]   ;;  %s60_s1 = inlined_call_operand.vmem [shape: bf16[2,3,32], index: 1, kind: output, shape index: {}]  }
   0x1   :  { %v14_v0 = vld [vmem:[%s59_s0] sm:$0xf] }
   0x2   :  { %v15_v1 = vunpack.c.l.bf16 %v14_v0 }
   0x4   :  { %17 = vst [vmem:[#allocation1] sm:$0xff] %v15_v1 }
   0xb   :  { %v18_v2 = vld [vmem:[#allocation1] sm:$0x3f]  }
   0xc   :  { %20 = vst.msk [vmem:[#allocation0] sm:$0x7] %vm19_vm0, %v18_v2   ;;  %22 = vst.msk [vmem:[#allocation0 + $0x5] sm:$0x38] %vm19_vm0, %v18_v2  }
  0x13   :  { %v27_v3 = vld [vmem:[#allocation0] sm:$0xf]  ;;  %v32_v4 = vld [vmem:[#allocation0 + $0x8] sm:$0xf] }
  0x14   :  { %v28_v6 = vpack.c.bf16 %v39_v5, %v27_v3  ;;  %v33_v7 = vpack.c.bf16 %v39_v5, %v32_v4 }
  0x16   :  { %30 = vst [vmem:[%s60_s1] sm:$0x3] %v28_v6  ;;  %37 = vst [vmem:[%s60_s1 + $0x2] sm:$0x3] %v33_v7 }

// kernel: forward.16
= control target key start
LH: loop header
LB: loop body
LE: loop exit
PB: predicated region body
PF: predicated region fallthrough
CT: control target
= control target key end

     0   :  { %vm19_vm0 = vcmask 523264   ;;  %v534_v1 = vmov 0.0   ;;  %vm102_vm1 = vcmask 261120   ;;  %vm417_vm2 = vcmask 519168   ;;  %s758_s1 = inlined_call_operand.vmem [shape: bf16[32,64], index: 1, kind: input, shape index: {}]   ;;  %s759_s0 = inlined_call_operand.vmem [shape: bf16[96,32], index: 0, kind: input, shape index: {}]   ;;  %s760_s2 = inlined_call_operand.vmem [shape: f32[1,64], index: 2, kind: input, shape index: {}]   ;;  %s761_s3 = inlined_call_operand.vmem [shape: bf16[96,64], index: 3, kind: output, shape index: {}]  }
   0x1   :  { %v502_v0 = vld [vmem:[%s758_s1] sm:$0xff]   ;;  %22 = vst.msk [vmem:[#allocation2 + $0x10] sm:$0xff] %vm19_vm0, %v534_v1  ;;  %20 = vst.msk [vmem:[#allocation2] sm:$0xff] %vm19_vm0, %v534_v1  ;;  %v503_v2 = vld [vmem:[%s758_s1 + $0x8] sm:$0xff]  }
   0x2   :  { %21 = vst.msk [vmem:[#allocation2 + $0x8] sm:$0xff] %vm19_vm0, %v534_v1  ;;  %23 = vst.msk [vmem:[#allocation2 + $0x18] sm:$0xff] %vm19_vm0, %v534_v1  ;;  %481 = vmatprep.subr.bf16.mxu0 %v502_v0  ;;  %497 = vmatprep.subr.bf16.mxu1 %v502_v0  ;;  %v504_v3 = vld [vmem:[%s759_s0] sm:$0xff]   ;;  %v505_v4 = vld [vmem:[%s759_s0 + $0x10] sm:$0xff]  }
   0x3   :  { %24 = vst.msk [vmem:[#allocation2 + $0x20] sm:$0xff] %vm19_vm0, %v534_v1  ;;  %25 = vst.msk [vmem:[#allocation2 + $0x28] sm:$0xff] %vm19_vm0, %v534_v1  ;;  %482 = vmatpush3.bf16.msra.mxu0 %v502_v0  ;;  %499 = vmatpush3.bf16.msra.mxu1 %v502_v0  ;;  %v506_v5 = vld [vmem:[%s759_s0 + $0x8] sm:$0xff]   ;;  %v507_v6 = vld [vmem:[%s759_s0 + $0x18] sm:$0xff]  }
   0x4   :  { %26 = vst.msk [vmem:[#allocation2 + $0x30] sm:$0xff] %vm19_vm0, %v534_v1  ;;  %27 = vst.msk [vmem:[#allocation2 + $0x38] sm:$0xff] %vm19_vm0, %v534_v1  ;;  %483 = vmatprep.subr.bf16.mxu0 %v503_v2  ;;  %498 = vmatprep.subr.bf16.mxu1 %v503_v2  ;;  %v508_v7 = vld [vmem:[%s759_s0 + $0x20] sm:$0xff]   ;;  %v509_v8 = vld [vmem:[%s759_s0 + $0x28] sm:$0xff]  }
   0x5   :  { %28 = vst.msk [vmem:[#allocation2 + $0x40] sm:$0xff] %vm19_vm0, %v534_v1  ;;  %29 = vst.msk [vmem:[#allocation2 + $0x48] sm:$0xff] %vm19_vm0, %v534_v1  ;;  %485 = vmatprep.mubr.msk.bf16.mxu0 %vm102_vm1, %v504_v3  ;;  %489 = vmatprep.mubr.msk.bf16.mxu1 %vm102_vm1, %v505_v4  ;;  %v608_v35 = vld [vmem:[%s760_s2] ss:$0 sm:$0xff] }
   0x6   :  { %30 = vst.msk [vmem:[#allocation2 + $0x50] sm:$0xff] %vm19_vm0, %v534_v1  ;;  %31 = vst.msk [vmem:[#allocation2 + $0x58] sm:$0xff] %vm19_vm0, %v534_v1 }
   0x7   :  { %484 = vmatpush3.bf16.msra.mxu0 %v503_v2  ;;  %500 = vmatpush3.bf16.msra.mxu1 %v503_v2 }
   0x8   :  { %v34_v9 = vld [vmem:[#allocation2 + $0x10] sm:$0xff]  ;;  %v32_v11 = vld [vmem:[#allocation2] sm:$0xff] }
   0x9   :  { %v35_v15 = vld [vmem:[#allocation2 + $0x18] sm:$0xff]  ;;  %v33_v21 = vld [vmem:[#allocation2 + $0x8] sm:$0xff] }
   0xa   :  { %486 = vmatmul.mubr.msk.bf16.vlgmr.msra.gmra.mrb[0].mxu0 %vm102_vm1, %v506_v5  ;;  %490 = vmatmul.mubr.msk.bf16.vlgmr.msra.gmra.mrb[0].mxu1 %vm102_vm1, %v507_v6  ;;  %v36_v12 = vld [vmem:[#allocation2 + $0x20] sm:$0xff]  ;;  %v37_v22 = vld [vmem:[#allocation2 + $0x28] sm:$0xff] }
   0xb   :  { %493 = vmatprep.mubr.msk.bf16.mxu1 %vm102_vm1, %v508_v7  ;;  %v38_v10 = vld [vmem:[#allocation2 + $0x30] sm:$0xff]  ;;  %v39_v16 = vld [vmem:[#allocation2 + $0x38] sm:$0xff] }
   0xc   :  { %v40_v34 = vld [vmem:[#allocation2 + $0x40] sm:$0xff]  ;;  %v41_v40 = vld [vmem:[#allocation2 + $0x48] sm:$0xff] }
   0xd   :  { %v42_v33 = vld [vmem:[#allocation2 + $0x50] sm:$0xff]  ;;  %v43_v37 = vld [vmem:[#allocation2 + $0x58] sm:$0xff] }
  0x12   :  { %494 = vmatmul.mubr.msk.bf16.gmra.mrb[4].mxu1 %vm102_vm1, %v509_v8 }
  0xdd   :  { %v487_v13 = vpop.f32.mrb[0].mxu0  ;;  %v491_v14 = vpop.f32.mrb[0].mxu1 }
  0xde   :  { %v204_v17 = vadd.f32 %v487_v13, %v34_v9  ;;  %v208_v18 = vadd.f32 %v491_v14, %v38_v10  ;;  %v155_v19 = vpop.f32.mrb[1].mxu0  ;;  %v171_v20 = vpop.f32.mrb[1].mxu1 }
  0xdf   :  { %v202_v23 = vadd.f32 %v155_v19, %v32_v11  ;;  %v206_v24 = vadd.f32 %v171_v20, %v36_v12  ;;  %v488_v25 = vpop.f32.mrb[2].mxu0  ;;  %v492_v26 = vpop.f32.mrb[2].mxu1 }
  0xe0   :  { %217 = vst.msk [vmem:[#allocation2 + $0x10] sm:$0xff] %vm19_vm0, %v204_v17  ;;  %221 = vst.msk [vmem:[#allocation2 + $0x30] sm:$0xff] %vm19_vm0, %v208_v18  ;;  %v205_v27 = vadd.f32 %v488_v25, %v35_v15  ;;  %v209_v28 = vadd.f32 %v492_v26, %v39_v16  ;;  %v158_v29 = vpop.f32.mrb[3].mxu0  ;;  %v174_v30 = vpop.f32.mrb[3].mxu1 }
  0xe1   :  { %215 = vst.msk [vmem:[#allocation2] sm:$0xff] %vm19_vm0, %v202_v23  ;;  %219 = vst.msk [vmem:[#allocation2 + $0x20] sm:$0xff] %vm19_vm0, %v206_v24  ;;  %v203_v31 = vadd.f32 %v158_v29, %v33_v21  ;;  %v207_v32 = vadd.f32 %v174_v30, %v37_v22 }
  0xe2   :  { %218 = vst.msk [vmem:[#allocation2 + $0x18] sm:$0xff] %vm19_vm0, %v205_v27  ;;  %222 = vst.msk [vmem:[#allocation2 + $0x38] sm:$0xff] %vm19_vm0, %v209_v28 }
  0xe3   :  { %216 = vst.msk [vmem:[#allocation2 + $0x8] sm:$0xff] %vm19_vm0, %v203_v31  ;;  %220 = vst.msk [vmem:[#allocation2 + $0x28] sm:$0xff] %vm19_vm0, %v207_v32 }
  0xe5   :  { %v495_v36 = vpop.f32.mrb[4].mxu1 }
  0xe6   :  { %v212_v38 = vadd.f32 %v495_v36, %v42_v33  ;;  %v187_v39 = vpop.f32.mrb[5].mxu1 }
  0xe7   :  { %v232_v41 = vld [vmem:[#allocation2 + $0x10] sm:$0xff]  ;;  %v210_v43 = vadd.f32 %v187_v39, %v40_v34  ;;  %v496_v44 = vpop.f32.mrb[6].mxu1 }
  0xe8   :  { %v236_v42 = vld [vmem:[#allocation2 + $0x30] sm:$0xff]  ;;  %v611_v45 = vadd.f32 %v608_v35, %v232_v41  ;;  %v230_v47 = vld [vmem:[#allocation2] sm:$0xff]  ;;  %225 = vst.msk [vmem:[#allocation2 + $0x50] sm:$0xff] %vm19_vm0, %v212_v38  ;;  %v213_v49 = vadd.f32 %v496_v44, %v43_v37  ;;  %v190_v50 = vpop.f32.mrb[7].mxu1 }
  0xe9   :  { %v614_v46 = vadd.f32 %v608_v35, %v236_v42  ;;  %v234_v48 = vld [vmem:[#allocation2 + $0x20] sm:$0xff]  ;;  %v618_v51 = vadd.f32 %v608_v35, %v230_v47  ;;  %v233_v53 = vld [vmem:[#allocation2 + $0x18] sm:$0xff]  ;;  %223 = vst.msk [vmem:[#allocation2 + $0x40] sm:$0xff] %vm19_vm0, %v210_v43  ;;  %v211_v55 = vadd.f32 %v190_v50, %v41_v40 }
  0xea   :  { %v621_v52 = vadd.f32 %v608_v35, %v234_v48  ;;  %v237_v54 = vld [vmem:[#allocation2 + $0x38] sm:$0xff]  ;;  %v275_v56 = vmul.f32 0.044715, %v611_v45  ;;  %226 = vst.msk [vmem:[#allocation2 + $0x58] sm:$0xff] %vm19_vm0, %v213_v49  ;;  %v633_v62 = vadd.f32 %v608_v35, %v233_v53  ;;  %v231_v0 = vld [vmem:[#allocation2 + $0x8] sm:$0xff] }
  0xeb   :  { %v279_v57 = vmul.f32 0.044715, %v614_v46  ;;  %v273_v58 = vmul.f32 0.044715, %v618_v51  ;;  %224 = vst.msk [vmem:[#allocation2 + $0x48] sm:$0xff] %vm19_vm0, %v211_v55  ;;  %v636_v63 = vadd.f32 %v608_v35, %v237_v54  ;;  %v641_v3 = vadd.f32 %v608_v35, %v231_v0  ;;  %v235_v4 = vld [vmem:[#allocation2 + $0x28] sm:$0xff] }
  0xec   :  { %v277_v59 = vmul.f32 0.044715, %v621_v52  ;;  %v287_v60 = vmul.f32 %v275_v56, %v611_v45  ;;  %v276_v7 = vmul.f32 0.044715, %v633_v62  ;;  %v653_v14 = vadd.f32 %v608_v35, %v235_v4 }
  0xed   :  { %v291_v61 = vmul.f32 %v279_v57, %v614_v46  ;;  %v285_v1 = vmul.f32 %v273_v58, %v618_v51  ;;  %v280_v10 = vmul.f32 0.044715, %v636_v63  ;;  %v274_v18 = vmul.f32 0.044715, %v641_v3 }
  0xee   :  { %v289_v2 = vmul.f32 %v277_v59, %v621_v52  ;;  %v299_v5 = vmul.f32 %v287_v60, %v611_v45  ;;  %v288_v13 = vmul.f32 %v276_v7, %v633_v62  ;;  %v278_v29 = vmul.f32 0.044715, %v653_v14 }
  0xef   :  { %v303_v6 = vmul.f32 %v291_v61, %v614_v46  ;;  %v297_v8 = vmul.f32 %v285_v1, %v618_v51  ;;  %v292_v17 = vmul.f32 %v280_v10, %v636_v63  ;;  %v240_v19 = vld [vmem:[#allocation2 + $0x50] sm:$0xff]  ;;  %v286_v27 = vmul.f32 %v274_v18, %v641_v3 }
  0xf0   :  { %v301_v9 = vmul.f32 %v289_v2, %v621_v52  ;;  %v311_v11 = vadd.f32 %v299_v5, %v611_v45  ;;  %v300_v22 = vmul.f32 %v288_v13, %v633_v62  ;;  %v238_v23 = vld [vmem:[#allocation2 + $0x40] sm:$0xff]  ;;  %v665_v30 = vadd.f32 %v608_v35, %v240_v19 }
  0xf1   :  { %v315_v12 = vadd.f32 %v303_v6, %v614_v46  ;;  %v309_v15 = vadd.f32 %v297_v8, %v618_v51  ;;  %v304_v26 = vmul.f32 %v292_v17, %v636_v63  ;;  %v298_v32 = vmul.f32 %v286_v27, %v641_v3  ;;  %v241_v37 = vld [vmem:[#allocation2 + $0x58] sm:$0xff] }
  0xf2   :  { %v313_v16 = vadd.f32 %v301_v9, %v621_v52  ;;  %v323_v20 = vmul.f32 0.7978846, %v311_v11  ;;  %v312_v28 = vadd.f32 %v300_v22, %v633_v62  ;;  %v670_v33 = vadd.f32 %v608_v35, %v238_v23  ;;  %v239_v41 = vld [vmem:[#allocation2 + $0x48] sm:$0xff] }
  0xf3   :  { %v327_v21 = vmul.f32 0.7978846, %v315_v12  ;;  %v321_v24 = vmul.f32 0.7978846, %v309_v15  ;;  %v316_v31 = vadd.f32 %v304_v26, %v636_v63  ;;  %v290_v36 = vmul.f32 %v278_v29, %v653_v14 }
  0xf4   :  { %v325_v25 = vmul.f32 0.7978846, %v313_v16  ;;  %510 = vtanh.f32 %v323_v20  ;;  %v324_v34 = vmul.f32 0.7978846, %v312_v28  ;;  %v310_v39 = vadd.f32 %v298_v32, %v641_v3 }
  0xf5   :  { %512 = vtanh.f32 %v327_v21  ;;  %v328_v38 = vmul.f32 0.7978846, %v316_v31  ;;  %v283_v40 = vmul.f32 0.044715, %v665_v30  ;;  %v302_v42 = vmul.f32 %v290_v36, %v653_v14 }
  0xf6   :  { %514 = vtanh.f32 %v321_v24  ;;  %v281_v43 = vmul.f32 0.044715, %v670_v33  ;;  %v322_v44 = vmul.f32 0.7978846, %v310_v39  ;;  %v679_v48 = vadd.f32 %v608_v35, %v241_v37 }
  0xf7   :  { %516 = vtanh.f32 %v325_v25  ;;  %v295_v47 = vmul.f32 %v283_v40, %v665_v30  ;;  %v314_v49 = vadd.f32 %v302_v42, %v653_v14  ;;  %v684_v53 = vadd.f32 %v608_v35, %v239_v41 }
  0xf8   :  { %518 = vtanh.f32 %v324_v34  ;;  %v293_v50 = vmul.f32 %v281_v43, %v670_v33  ;;  %v284_v55 = vmul.f32 0.044715, %v679_v48  ;;  %v263_v56 = vmul.f32 0.5, %v611_v45 }
  0xf9   :  { %520 = vtanh.f32 %v328_v38  ;;  %v307_v54 = vmul.f32 %v295_v47, %v665_v30  ;;  %v326_v57 = vmul.f32 0.7978846, %v314_v49  ;;  %v282_v59 = vmul.f32 0.044715, %v684_v53 }
  0xfa   :  { %522 = vtanh.f32 %v322_v44  ;;  %v305_v58 = vmul.f32 %v293_v50, %v670_v33  ;;  %v267_v60 = vmul.f32 0.5, %v614_v46  ;;  %v261_v61 = vmul.f32 0.5, %v618_v51 }
  0xfb   :  { %v319_v35 = vadd.f32 %v307_v54, %v665_v30  ;;  %v296_v0 = vmul.f32 %v284_v55, %v679_v48  ;;  %v265_v2 = vmul.f32 0.5, %v621_v52  ;;  %524 = vtanh.f32 %v326_v57 }
  0xfc   :  { %v317_v4 = vadd.f32 %v305_v58, %v670_v33  ;;  %v294_v45 = vmul.f32 %v282_v59, %v684_v53  ;;  %v264_v7 = vmul.f32 0.5, %v633_v62  ;;  %v268_v10 = vmul.f32 0.5, %v636_v63 }
  0xfd   :  { %v331_v8 = vmul.f32 0.7978846, %v319_v35  ;;  %v308_v46 = vmul.f32 %v296_v0, %v679_v48  ;;  %v262_v32 = vmul.f32 0.5, %v641_v3  ;;  %v266_v41 = vmul.f32 0.5, %v653_v14 }
  0xfe   :  { %v511_v1 = vpop.eup %510  ;;  %v329_v11 = vmul.f32 0.7978846, %v317_v4  ;;  %v306_v12 = vmul.f32 %v294_v45, %v684_v53  ;;  %v271_v50 = vmul.f32 0.5, %v665_v30  ;;  %v269_v14 = vmul.f32 0.5, %v670_v33 }
  0xff   :  { %v513_v5 = vpop.eup %512  ;;  %v347_v6 = vadd.f32 1.0, %v511_v1  ;;  %526 = vtanh.f32 %v331_v8  ;;  %v320_v16 = vadd.f32 %v308_v46, %v679_v48  ;;  %v272_v35 = vmul.f32 0.5, %v679_v48 }
 0x100   :  { %v515_v51 = vpop.eup %514  ;;  %v351_v9 = vadd.f32 1.0, %v513_v5  ;;  %528 = vtanh.f32 %v329_v11  ;;  %v318_v62 = vadd.f32 %v306_v12, %v684_v53  ;;  %v270_v30 = vmul.f32 0.5, %v684_v53 }
 0x101   :  { %v517_v52 = vpop.eup %516  ;;  %v359_v13 = vmul.f32 %v347_v6, %v263_v56  ;;  %v345_v15 = vadd.f32 1.0, %v515_v51  ;;  %v332_v63 = vmul.f32 0.7978846, %v320_v16 }
 0x102   :  { %v519_v17 = vpop.eup %518  ;;  %v363_v18 = vmul.f32 %v351_v9, %v267_v60  ;;  %v349_v19 = vadd.f32 1.0, %v517_v52  ;;  %v330_v27 = vmul.f32 0.7978846, %v318_v62 }
 0x103   :  { %v521_v20 = vpop.eup %520  ;;  %v463_v21 = vpack.c.bf16 %v359_v13, %v359_v13  ;;  %v357_v22 = vmul.f32 %v345_v15, %v261_v61  ;;  %v348_v23 = vadd.f32 1.0, %v519_v17  ;;  %530 = vtanh.f32 %v332_v63 }
 0x104   :  { %v467_v24 = vpack.c.bf16 %v363_v18, %v363_v18  ;;  %v361_v25 = vmul.f32 %v349_v19, %v265_v2  ;;  %v352_v26 = vadd.f32 1.0, %v521_v20  ;;  %v523_v28 = vpop.eup %522  ;;  %532 = vtanh.f32 %v330_v27 }
 0x105   :  { %420 = vst.msk [vmem:[%s761_s3 + $0x8] sm:$0xf] %vm417_vm2, %v463_v21  ;;  %v461_v29 = vpack.c.bf16 %v357_v22, %v357_v22  ;;  %v360_v31 = vmul.f32 %v348_v23, %v264_v7  ;;  %v346_v37 = vadd.f32 1.0, %v523_v28  ;;  %v525_v39 = vpop.eup %524 }
 0x106   :  { %424 = vst.msk [vmem:[%s761_s3 + $0x18] sm:$0xf] %vm417_vm2, %v467_v24  ;;  %v465_v34 = vpack.c.bf16 %v361_v25, %v361_v25  ;;  %v364_v36 = vmul.f32 %v352_v26, %v268_v10  ;;  %v350_v42 = vadd.f32 1.0, %v525_v39 }
 0x107   :  { %418 = vst.msk [vmem:[%s761_s3] sm:$0xf] %vm417_vm2, %v461_v29  ;;  %v464_v38 = vpack.c.bf16 %v360_v31, %v360_v31  ;;  %v358_v40 = vmul.f32 %v346_v37, %v262_v32 }
 0x108   :  { %422 = vst.msk [vmem:[%s761_s3 + $0x10] sm:$0xf] %vm417_vm2, %v465_v34  ;;  %v468_v3 = vpack.c.bf16 %v364_v36, %v364_v36  ;;  %v362_v47 = vmul.f32 %v350_v42, %v266_v41 }
 0x109   :  { %421 = vst.msk [vmem:[%s761_s3 + $0xc] sm:$0xf] %vm417_vm2, %v464_v38  ;;  %v462_v43 = vpack.c.bf16 %v358_v40, %v358_v40  ;;  %v527_v44 = vpop.eup %526 }
 0x10a   :  { %425 = vst.msk [vmem:[%s761_s3 + $0x1c] sm:$0xf] %vm417_vm2, %v468_v3  ;;  %v529_v49 = vpop.eup %528  ;;  %v355_v54 = vadd.f32 1.0, %v527_v44  ;;  %v466_v55 = vpack.c.bf16 %v362_v47, %v362_v47 }
 0x10b   :  { %419 = vst.msk [vmem:[%s761_s3 + $0x4] sm:$0xf] %vm417_vm2, %v462_v43  ;;  %v353_v56 = vadd.f32 1.0, %v529_v49 }
 0x10c   :  { %v367_v57 = vmul.f32 %v355_v54, %v271_v50  ;;  %423 = vst.msk [vmem:[%s761_s3 + $0x14] sm:$0xf] %vm417_vm2, %v466_v55 }
 0x10d   :  { %v531_v58 = vpop.eup %530  ;;  %v365_v59 = vmul.f32 %v353_v56, %v269_v14 }
 0x10e   :  { %v533_v60 = vpop.eup %532  ;;  %v471_v61 = vpack.c.bf16 %v367_v57, %v367_v57  ;;  %v356_v0 = vadd.f32 1.0, %v531_v58 }
 0x10f   :  { %v469_v1 = vpack.c.bf16 %v365_v59, %v365_v59  ;;  %v354_v2 = vadd.f32 1.0, %v533_v60 }
 0x110   :  { %428 = vst.msk [vmem:[%s761_s3 + $0x28] sm:$0xf] %vm417_vm2, %v471_v61  ;;  %v368_v33 = vmul.f32 %v356_v0, %v272_v35 }
 0x111   :  { %426 = vst.msk [vmem:[%s761_s3 + $0x20] sm:$0xf] %vm417_vm2, %v469_v1  ;;  %v366_v4 = vmul.f32 %v354_v2, %v270_v30 }
 0x112   :  { %v472_v45 = vpack.c.bf16 %v368_v33, %v368_v33 }
 0x113   :  { %v470_v5 = vpack.c.bf16 %v366_v4, %v366_v4 }
 0x114   :  { %429 = vst.msk [vmem:[%s761_s3 + $0x2c] sm:$0xf] %vm417_vm2, %v472_v45 }
 0x115   :  { %427 = vst.msk [vmem:[%s761_s3 + $0x24] sm:$0xf] %vm417_vm2, %v470_v5 }

// kernel: forward.23
= control target key start
LH: loop header
LB: loop body
LE: loop exit
PB: predicated region body
PF: predicated region fallthrough
CT: control target
= control target key end

     0   :  { %v706_v1 = vmov 0.0   ;;  %vm707_vm0 = vmmov 0   ;;  %s819_s0 = inlined_call_operand.vmem [shape: bf16[3,2,32], index: 0, kind: input, shape index: {}]   ;;  %s820_s1 = inlined_call_operand.vmem [shape: bf16[32,32], index: 1, kind: input, shape index: {}]   ;;  %s821_s2 = inlined_call_operand.vmem [shape: f32[1,32], index: 2, kind: input, shape index: {}]   ;;  %s822_s3 = inlined_call_operand.vmem [shape: bf16[32,32], index: 3, kind: input, shape index: {}]   ;;  %s823_s4 = inlined_call_operand.vmem [shape: f32[1,32], index: 4, kind: input, shape index: {}]   ;;  %s824_s5 = inlined_call_operand.hbm [shape: f32[2,4], index: 5, kind: output, shape index: {}]  }
   0x1   :  { %v654_v0 = vld [vmem:[%s820_s1] sm:$0xff]   ;;  %592 = vmatprep.subr.bf16.mxu0 %v706_v1  ;;  %600 = vmatprep.subr.bf16.mxu1 %v706_v1  ;;  %v655_v2 = vld [vmem:[%s820_s1 + $0x8] sm:$0xff]  }
   0x2   :  { %593 = vmatpush3.bf16.msra.mxu0 %v654_v0  ;;  %596 = vmatprep.mubr.msk.bf16.mxu0 %vm707_vm0, %v706_v1 }
   0x3   :  { %594 = vmatprep.subr.bf16.mxu0 %v706_v1  ;;  %604 = vmatprep.mubr.msk.bf16.mxu1 %vm707_vm0, %v706_v1 }
   0x4   :  { %10 = vsyncpa [#allocation3], 0  ;;  %v22_v3 = vld [vmem:[%s819_s0] sm:$0x1]  ;;  %vm53_vm1 = vcmask 261120   ;;  %v657_v7 = vld [vmem:[%s822_s3 + $0x8] sm:$0xff]  }
   0x5   :  { %v23_v4 = vld [vmem:[%s819_s0 + $0x1] sm:$0x1]  ;;  %v24_v5 = vld [vmem:[%s819_s0 + $0x2] sm:$0x1]  ;;  %v554_v8 = vld [vmem:[%s821_s2] ss:$0 sm:$0xff] }
   0x6   :  { %595 = vmatpush3.bf16.msra.mxu0 %v655_v2  ;;  %v656_v6 = vld [vmem:[%s822_s3] sm:$0xff]   ;;  %vm162_vm2 = vcmask 254976   ;;  %vm535_vm9 = vcmask 15360   ;;  %s709_s7 = smov [#allocation2]   ;;  %vm538_vm10 = vcmask 25600  }
   0x7   :  { %608 = vmatprep.subr.bf16.mxu0 %v706_v1  ;;  %601 = vmatpush3.bf16.msra.mxu1 %v656_v6  ;;  %v558_v34 = vld [vmem:[%s823_s4] ss:$0 sm:$0xff]  ;;  %s708_s4 = smov 2   ;;  %s546_s8 = sshll.u32 %s709_s7, 4  ;;  %s547_s8 = int_to_ptr.vmem [resolvable:$true] %s546_s8 }
   0x8   :  { %602 = vmatprep.subr.bf16.mxu1 %v706_v1  ;;  %s682_s9 = scalar_lea.vmem %s547_s8, 32  ;;  %p687_p1 = scmp.lt.s32.totalorder %s547_s8, %s547_s8 }
   0x9   :  { %597 = vmatmul.mubr.msk.bf16.vlgmr.msra.gmra.mrb[0].mxu0 %vm53_vm1, %v22_v3  ;;  %p683_p0 = scmp.ne.s32.totalorder %s547_s8, %s682_s9  ;;  %p688_p2 = scmp.lt.s32.totalorder %s682_s9, %s682_s9 }
   0xa   :  { %609 = vmatpush3.bf16.msra.mxu0 %v654_v0  ;;  %612 = vmatprep.mubr.msk.bf16.mxu0 %vm707_vm0, %v706_v1 }
   0xb   :  { %610 = vmatprep.subr.bf16.mxu0 %v706_v1  ;;  %603 = vmatpush3.bf16.msra.mxu1 %v657_v7  ;;  %p689_p3 = por %p688_p2, %p687_p1 }
   0xc   :  { %616 = vmatprep.subr.bf16.mxu1 %v706_v1 }
   0xd   :  { %p690_p4 = pnand %p689_p3, %p683_p0 }
   0xe   :  { %611 = vmatpush3.bf16.msra.mxu0 %v655_v2 }
   0xf   :  { %624 = vmatprep.subr.bf16.mxu0 %v706_v1 }
  0x11   :  { %613 = vmatmul.mubr.msk.bf16.vlgmr.msra.gmra.mrb[4].mxu0 %vm53_vm1, %v23_v4 }
  0x12   :  { %625 = vmatpush3.bf16.msra.mxu0 %v654_v0  ;;  %628 = vmatprep.mubr.msk.bf16.mxu0 %vm707_vm0, %v706_v1 }
  0x13   :  { %626 = vmatprep.subr.bf16.mxu0 %v706_v1 }
  0x16   :  { %627 = vmatpush3.bf16.msra.mxu0 %v655_v2 }
  0x17   :  { %640 = vmatprep.subr.mxu0 %v706_v1 }
  0x19   :  { %629 = vmatmul.mubr.msk.bf16.vlgmr.msra.gmra.mrb[8].mxu0 %vm53_vm1, %v24_v5 }
  0x1a   :  { %642 = vmatprep.mubr.msk.f32.mxu0 %vm707_vm0, %v706_v1 }
  0xdc   :  { %v91_v9 = vpop.f32.mrb[0].mxu0 }
  0xdd   :  { %v92_v10 = vadd.f32 %v554_v8, %v91_v9  ;;  %v598_v11 = vpop.f32.mrb[1].mxu0 }
  0xde   :  { %v94_v12 = vpop.f32.mrb[2].mxu0 }
  0xdf   :  { %658 = vtanh.f32 %v92_v10  ;;  %v599_v13 = vpop.f32.mrb[3].mxu0 }
  0xe4   :  { %v213_v14 = vpop.f32.mrb[4].mxu0 }
  0xe5   :  { %v214_v15 = vadd.f32 %v554_v8, %v213_v14  ;;  %v614_v16 = vpop.f32.mrb[5].mxu0 }
  0xe6   :  { %v216_v17 = vpop.f32.mrb[6].mxu0 }
  0xe7   :  { %660 = vtanh.f32 %v214_v15  ;;  %v615_v18 = vpop.f32.mrb[7].mxu0 }
  0xe9   :  { %v659_v19 = vpop.eup %658 }
  0xea   :  { %v98_v20 = vpack.c.bf16 %v659_v19, %v659_v19 }
  0xec   :  { %605 = vmatmul.mubr.msk.bf16.vlgmr.msra.gmra.mrb[0].mxu1 %vm53_vm1, %v98_v20  ;;  %v316_v21 = vpop.f32.mrb[8].mxu0 }
  0xed   :  { %v317_v22 = vadd.f32 %v554_v8, %v316_v21  ;;  %617 = vmatpush3.bf16.msra.mxu1 %v656_v6  ;;  %v630_v23 = vpop.f32.mrb[9].mxu0  ;;  %620 = vmatprep.mubr.msk.bf16.mxu1 %vm707_vm0, %v706_v1 }
  0xee   :  { %v319_v24 = vpop.f32.mrb[10].mxu0  ;;  %618 = vmatprep.subr.bf16.mxu1 %v706_v1 }
  0xef   :  { %662 = vtanh.f32 %v317_v22  ;;  %v631_v25 = vpop.f32.mrb[11].mxu0 }
  0xf1   :  { %v661_v26 = vpop.eup %660  ;;  %619 = vmatpush3.bf16.msra.mxu1 %v657_v7 }
  0xf2   :  { %v220_v27 = vpack.c.bf16 %v661_v26, %v661_v26  ;;  %632 = vmatprep.subr.bf16.mxu1 %v706_v1 }
  0xf4   :  { %621 = vmatmul.mubr.msk.bf16.vlgmr.msra.gmra.mrb[4].mxu1 %vm53_vm1, %v220_v27 }
  0xf5   :  { %633 = vmatpush3.bf16.msra.mxu1 %v656_v6  ;;  %636 = vmatprep.mubr.msk.bf16.mxu1 %vm707_vm0, %v706_v1 }
  0xf6   :  { %634 = vmatprep.subr.bf16.mxu1 %v706_v1 }
  0xf9   :  { %v663_v28 = vpop.eup %662  ;;  %635 = vmatpush3.bf16.msra.mxu1 %v657_v7 }
  0xfa   :  { %v323_v29 = vpack.c.bf16 %v663_v28, %v663_v28  ;;  %645 = vmatprep.subr.mxu1 %v706_v1 }
  0xfc   :  { %637 = vmatmul.mubr.msk.bf16.vlgmr.msra.gmra.mrb[8].mxu1 %vm53_vm1, %v323_v29 }
  0xfd   :  { %647 = vmatprep.mubr.msk.f32.mxu1 %vm707_vm0, %v706_v1 }
 0x1bf   :  { %v154_v30 = vpop.f32.mrb[0].mxu1 }
 0x1c0   :  { %v606_v31 = vpop.f32.mrb[1].mxu1  ;;  %v155_v40 = vadd.f32 %v558_v34, %v154_v30 }
 0x1c1   :  { %v157_v32 = vpop.f32.mrb[2].mxu1 }
 0x1c2   :  { %v607_v33 = vpop.f32.mrb[3].mxu1 }
 0x1c7   :  { %v258_v35 = vpop.f32.mrb[4].mxu1 }
 0x1c8   :  { %v259_v36 = vadd.f32 %v558_v34, %v258_v35  ;;  %v622_v37 = vpop.f32.mrb[5].mxu1 }
 0x1c9   :  { %v261_v38 = vpop.f32.mrb[6].mxu1 }
 0x1ca   :  { %664 = vtanh.f32 %v259_v36  ;;  %v623_v39 = vpop.f32.mrb[7].mxu1 }
 0x1cb   :  { %666 = vtanh.f32 %v155_v40 }
 0x1cf   :  { %v361_v41 = vpop.f32.mrb[8].mxu1 }
 0x1d0   :  { %v362_v42 = vadd.f32 %v558_v34, %v361_v41  ;;  %v638_v43 = vpop.f32.mrb[9].mxu1 }
 0x1d1   :  { %v364_v44 = vpop.f32.mrb[10].mxu1 }
 0x1d2   :  { %668 = vtanh.f32 %v362_v42  ;;  %v639_v45 = vpop.f32.mrb[11].mxu1 }
 0x1d4   :  { %v665_v46 = vpop.eup %664 }
 0x1d5   :  { %v265_v47 = vmul.f32 %v665_v46, %v665_v46  ;;  %v667_v49 = vpop.eup %666 }
 0x1d6   :  { %v161_v53 = vmul.f32 %v667_v49, %v667_v49 }
 0x1d7   :  { %v266_v48 = vsel %vm162_vm2, %v265_v47, 0.0 }
 0x1d8   :  { %267 = vadd.xlane.f32.xlu1 %v266_v48  ;;  %v163_v54 = vsel %vm162_vm2, %v161_v53, 0.0 }
 0x1dc   :  { %v669_v50 = vpop.eup %668 }
 0x1dd   :  { %v368_v51 = vmul.f32 %v669_v50, %v669_v50 }
 0x1df   :  { %v369_v52 = vsel %vm162_vm2, %v368_v51, 0.0 }
 0x1e0   :  { %370 = vadd.xlane.f32.xlu0 %v369_v52 }
 0x1e4   :  { %164 = vadd.xlane.f32.xlu0 %v163_v54 }
 0x265   :  { %v268_v55 = vpop.xlane.xlu1 %267 }
 0x266   :  { %670 = vrsqrt.f32 %v268_v55  ;;  %vm271_vm3 = vcmp.eq.f32.partialorder %v268_v55, inf  ;;  %v274_v60 = vand.u32 2147483648, %v268_v55  ;;  %vm273_vm4 = vcmp.eq.f32.partialorder %v268_v55, 0.0 }
 0x26d   :  { %v371_v56 = vpop.xlane.xlu0 %370 }
 0x26e   :  { %672 = vrsqrt.f32 %v371_v56  ;;  %vm374_vm5 = vcmp.eq.f32.partialorder %v371_v56, inf  ;;  %v377_v2 = vand.u32 2147483648, %v371_v56  ;;  %vm376_vm6 = vcmp.eq.f32.partialorder %v371_v56, 0.0 }
 0x270   :  { %v671_v57 = vpop.eup %670 }
 0x271   :  { %v270_v58 = vmul.f32 %v671_v57, %v268_v55  ;;  %v165_v59 = vpop.xlane.xlu0 %164 }
 0x272   :  { %674 = vrsqrt.f32 %v165_v59  ;;  %vm168_vm7 = vcmp.eq.f32.partialorder %v165_v59, inf  ;;  %v171_v8 = vand.u32 2147483648, %v165_v59  ;;  %vm170_vm8 = vcmp.eq.f32.partialorder %v165_v59, 0.0 }
 0x273   :  { %v272_v61 = vsel %vm271_vm3, %v268_v55, %v270_v58 }
 0x274   :  { %v275_v62 = vsel %vm273_vm4, %v274_v60, %v272_v61 }
 0x275   :  { %v276_v63 = vmax.f32 %v275_v62, 1e-08 }
 0x277   :  { %676 = vrcp.f32 %v276_v63 }
 0x278   :  { %v673_v0 = vpop.eup %672 }
 0x279   :  { %v373_v1 = vmul.f32 %v673_v0, %v371_v56 }
 0x27b   :  { %v375_v3 = vsel %vm374_vm5, %v371_v56, %v373_v1 }
 0x27c   :  { %v675_v4 = vpop.eup %674  ;;  %v378_v5 = vsel %vm376_vm6, %v377_v2, %v375_v3 }
 0x27d   :  { %v379_v6 = vmax.f32 %v378_v5, 1e-08  ;;  %v167_v7 = vmul.f32 %v675_v4, %v165_v59 }
 0x27f   :  { %678 = vrcp.f32 %v379_v6  ;;  %v169_v9 = vsel %vm168_vm7, %v165_v59, %v167_v7 }
 0x280   :  { %v172_v10 = vsel %vm170_vm8, %v171_v8, %v169_v9 }
 0x281   :  { %v677_v11 = vpop.eup %676  ;;  %v173_v12 = vmax.f32 %v172_v10, 1e-08 }
 0x282   :  { %v278_v13 = vmul.f32 %v677_v11, %v665_v46 }
 0x283   :  { %680 = vrcp.f32 %v173_v12 }
 0x284   :  { %641 = vmatpush3.xpose.msk.msra.mxu0 %vm53_vm1, %v278_v13 }
 0x289   :  { %v679_v14 = vpop.eup %678 }
 0x28a   :  { %v381_v15 = vmul.f32 %v679_v14, %v669_v50 }
 0x28c   :  { %646 = vmatpush3.xpose.msk.msra.mxu1 %vm53_vm1, %v381_v15 }
 0x28d   :  { %v681_v16 = vpop.eup %680 }
 0x28e   :  { %v175_v17 = vmul.f32 %v681_v16, %v667_v49 }
 0x290   :  { %643 = vmatmul.mubr.msk.f32.vlgmr.msra.gmra.mrb[12].mxu0 %vm53_vm1, %v175_v17  ;;  %648 = vmatmul.mubr.msk.f32.vlgmr.msra.gmra.mrb[12].mxu1 %vm53_vm1, %v175_v17 }
 0x363   :  { %v454_v18 = vpop.f32.mrb[12].mxu0  ;;  %v527_v19 = vpop.f32.mrb[12].mxu1 }
 0x364   :  { %532 = vrot.lane.b32.xlu1 %v527_v19, %s708_s4  ;;  %v644_v20 = vpop.f32.mrb[13].mxu0  ;;  %v649_v21 = vpop.f32.mrb[13].mxu1 }
 0x3d6   :  { %v533_v22 = vpop.permute.xlu1 %532 }
 0x3d7   :  { %v536_v23 = vsel %vm535_vm9, %v454_v18, %v533_v22 }
 0x3d8   :  { %v537_v24 = vmul.f32 20.0, %v536_v23 }
 0x3da   :  { %539 = vst.msk [vmem:[#allocation2] sm:$0x3] %vm538_vm10, %v537_v24 }
 0x3db   :  { %693 = shalt.err (!%p690_p4)
}
 0x3dc   :  { %s694_s12 = scalar_lea.hbm %s824_s5, 32 }
 0x3dd   :  { %p695_p5 = scmp.ne.s32.totalorder %s824_s5, %s694_s12  ;;  %p698_p6 = scmp.lt.u32.totalorder %s694_s12, %s824_s5 }
 0x3df   :  { %p700_p7 = pnand %p698_p6, %p695_p5 }
 0x3e1   :  { %703 = shalt.err (!%p700_p7)
}
 0x3e2   :  { %549 = dma.vmem_to_hbm [thread:$0]  %s547_s8, 32, %s824_s5, [#allocation3]  }
 0x3e3   :  { %704 = dma.done.wait [#allocation3], 32  }
 0x3e4   :  { %705 = vsyncadd [#allocation3], 4294967264 }
 0x3e5   :  { %553 = vsyncpa [#allocation3], 1 }

// kernel: forward.17
= control target key start
LH: loop header
LB: loop body
LE: loop exit
PB: predicated region body
PF: predicated region fallthrough
CT: control target
= control target key end

     0   :  { %vm28_vm0 = vcmask 261120   ;;  %v727_v1 = vmov 0.0   ;;  %vm127_vm1 = vcmask 523264   ;;  %vm565_vm2 = vcmask 257024   ;;  %s1064_s1 = inlined_call_operand.vmem [shape: bf16[64,32], index: 1, kind: input, shape index: {}]   ;;  %s1065_s0 = inlined_call_operand.vmem [shape: bf16[96,64], index: 0, kind: input, shape index: {}]   ;;  %s1066_s3 = inlined_call_operand.vmem [shape: bf16[96,32], index: 3, kind: input, shape index: {}]   ;;  %s1067_s2 = inlined_call_operand.vmem [shape: f32[1,32], index: 2, kind: input, shape index: {}]   ;;  %s1068_s4 = inlined_call_operand.vmem [shape: f32[1,32], index: 4, kind: input, shape index: {}]   ;;  %s1069_s5 = inlined_call_operand.vmem [shape: f32[1,32], index: 5, kind: input, shape index: {}]   ;;  %s1070_s6 = inlined_call_operand.vmem [shape: bf16[96,32], index: 6, kind: output, shape index: {}]  }
   0x1   :  { %v693_v0 = vld [vmem:[%s1064_s1] sm:$0xff]   ;;  %31 = vst.msk [vmem:[#allocation2 + $0x10] sm:$0xff] %vm28_vm0, %v727_v1  ;;  %29 = vst.msk [vmem:[#allocation2] sm:$0xff] %vm28_vm0, %v727_v1  ;;  %v694_v2 = vld [vmem:[%s1064_s1 + $0x8] sm:$0xff]  }
   0x2   :  { %30 = vst.msk [vmem:[#allocation2 + $0x8] sm:$0xff] %vm28_vm0, %v727_v1  ;;  %32 = vst.msk [vmem:[#allocation2 + $0x18] sm:$0xff] %vm28_vm0, %v727_v1  ;;  %664 = vmatprep.subr.bf16.mxu0 %v693_v0  ;;  %684 = vmatprep.subr.bf16.mxu1 %v693_v0  ;;  %v695_v3 = vld [vmem:[%s1064_s1 + $0x10] sm:$0xff]   ;;  %v697_v4 = vld [vmem:[%s1065_s0] sm:$0xff]  }
   0x3   :  { %33 = vst.msk [vmem:[#allocation2 + $0x20] sm:$0xff] %vm28_vm0, %v727_v1  ;;  %34 = vst.msk [vmem:[#allocation2 + $0x28] sm:$0xff] %vm28_vm0, %v727_v1  ;;  %665 = vmatpush3.bf16.msra.mxu0 %v693_v0  ;;  %688 = vmatpush3.bf16.msra.mxu1 %v693_v0  ;;  %v698_v5 = vld [vmem:[%s1065_s0 + $0x10] sm:$0xff]   ;;  %v696_v6 = vld [vmem:[%s1064_s1 + $0x18] sm:$0xff]  }
   0x4   :  { %35 = vst.msk [vmem:[#allocation2 + $0x30] sm:$0xff] %vm28_vm0, %v727_v1  ;;  %36 = vst.msk [vmem:[#allocation2 + $0x38] sm:$0xff] %vm28_vm0, %v727_v1  ;;  %666 = vmatprep.subr.bf16.mxu0 %v694_v2  ;;  %685 = vmatprep.subr.bf16.mxu1 %v694_v2  ;;  %v699_v7 = vld [vmem:[%s1065_s0 + $0x8] sm:$0xff]   ;;  %v700_v8 = vld [vmem:[%s1065_s0 + $0x18] sm:$0xff]  }
   0x5   :  { %37 = vst.msk [vmem:[#allocation2 + $0x40] sm:$0xff] %vm28_vm0, %v727_v1  ;;  %38 = vst.msk [vmem:[#allocation2 + $0x48] sm:$0xff] %vm28_vm0, %v727_v1  ;;  %672 = vmatprep.mubr.msk.bf16.mxu0 %vm127_vm1, %v697_v4  ;;  %676 = vmatprep.mubr.msk.bf16.mxu1 %vm127_vm1, %v698_v5  ;;  %v701_v9 = vld [vmem:[%s1065_s0 + $0x20] sm:$0xff]   ;;  %v702_v10 = vld [vmem:[%s1065_s0 + $0x28] sm:$0xff]  }
   0x6   :  { %39 = vst.msk [vmem:[#allocation2 + $0x50] sm:$0xff] %vm28_vm0, %v727_v1  ;;  %40 = vst.msk [vmem:[#allocation2 + $0x58] sm:$0xff] %vm28_vm0, %v727_v1  ;;  %v651_v36 = vld [vmem:[%s1066_s3 + $0x18] sm:$0xff]   ;;  %v649_v37 = vld [vmem:[%s1066_s3 + $0x8] sm:$0xff]  }
   0x7   :  { %667 = vmatpush3.bf16.msra.mxu0 %v694_v2  ;;  %689 = vmatpush3.bf16.msra.mxu1 %v694_v2  ;;  %v828_v39 = vld [vmem:[%s1066_s3] sm:$0xff]   ;;  %v639_v45 = vunpack.c.l.bf16 %v651_v36  ;;  %v631_v47 = vunpack.c.l.bf16 %v649_v37  ;;  %v632_v58 = vunpack.c.h.bf16 %v649_v37  ;;  %v650_v60 = vld [vmem:[%s1066_s3 + $0x10] sm:$0xff]  }
   0x8   :  { %668 = vmatprep.subr.bf16.mxu0 %v695_v3  ;;  %686 = vmatprep.subr.bf16.mxu1 %v695_v3  ;;  %v43_v11 = vld [vmem:[#allocation2 + $0x10] sm:$0xff]  ;;  %v41_v13 = vld [vmem:[#allocation2] sm:$0xff]  ;;  %v627_v52 = vunpack.c.l.bf16 %v828_v39  ;;  %v635_v5 = vunpack.c.l.bf16 %v650_v60 }
   0x9   :  { %v44_v17 = vld [vmem:[#allocation2 + $0x18] sm:$0xff]  ;;  %v42_v23 = vld [vmem:[#allocation2 + $0x8] sm:$0xff]  ;;  %v833_v42 = vld [vmem:[%s1067_s2] ss:$0 sm:$0xff] }
   0xa   :  { %v45_v14 = vld [vmem:[#allocation2 + $0x20] sm:$0xff]  ;;  %v46_v24 = vld [vmem:[#allocation2 + $0x28] sm:$0xff] }
   0xb   :  { %669 = vmatpush3.bf16.msra.mxu0 %v695_v3  ;;  %690 = vmatpush3.bf16.msra.mxu1 %v695_v3  ;;  %v47_v12 = vld [vmem:[#allocation2 + $0x30] sm:$0xff]  ;;  %v48_v18 = vld [vmem:[#allocation2 + $0x38] sm:$0xff] }
   0xc   :  { %670 = vmatprep.subr.bf16.mxu0 %v696_v6  ;;  %687 = vmatprep.subr.bf16.mxu1 %v696_v6  ;;  %v49_v38 = vld [vmem:[#allocation2 + $0x40] sm:$0xff]  ;;  %v50_v46 = vld [vmem:[#allocation2 + $0x48] sm:$0xff] }
   0xd   :  { %v51_v35 = vld [vmem:[#allocation2 + $0x50] sm:$0xff]  ;;  %v52_v41 = vld [vmem:[#allocation2 + $0x58] sm:$0xff] }
   0xf   :  { %671 = vmatpush3.bf16.msra.mxu0 %v696_v6  ;;  %691 = vmatpush3.bf16.msra.mxu1 %v696_v6 }
  0x12   :  { %673 = vmatmul.mubr.msk.bf16.vlgmr.msra.gmra.mrb[0].mxu0 %vm127_vm1, %v699_v7  ;;  %677 = vmatmul.mubr.msk.bf16.vlgmr.msra.gmra.mrb[0].mxu1 %vm127_vm1, %v700_v8  ;;  %v640_v7 = vunpack.c.h.bf16 %v651_v36 }
  0x13   :  { %680 = vmatprep.mubr.msk.bf16.mxu1 %vm127_vm1, %v701_v9 }
  0x1a   :  { %681 = vmatmul.mubr.msk.bf16.gmra.mrb[4].mxu1 %vm127_vm1, %v702_v10 }
  0xe5   :  { %v674_v15 = vpop.f32.mrb[0].mxu0  ;;  %v678_v16 = vpop.f32.mrb[0].mxu1 }
  0xe6   :  { %v229_v19 = vadd.f32 %v674_v15, %v43_v11  ;;  %v233_v20 = vadd.f32 %v678_v16, %v47_v12  ;;  %v180_v21 = vpop.f32.mrb[1].mxu0  ;;  %v196_v22 = vpop.f32.mrb[1].mxu1  ;;  %v636_v16 = vunpack.c.h.bf16 %v650_v60 }
  0xe7   :  { %v227_v25 = vadd.f32 %v180_v21, %v41_v13  ;;  %v231_v26 = vadd.f32 %v196_v22, %v45_v14  ;;  %v675_v27 = vpop.f32.mrb[2].mxu0  ;;  %v679_v28 = vpop.f32.mrb[2].mxu1 }
  0xe8   :  { %242 = vst.msk [vmem:[#allocation2 + $0x10] sm:$0xff] %vm28_vm0, %v229_v19  ;;  %246 = vst.msk [vmem:[#allocation2 + $0x30] sm:$0xff] %vm28_vm0, %v233_v20  ;;  %v230_v29 = vadd.f32 %v675_v27, %v44_v17  ;;  %v234_v30 = vadd.f32 %v679_v28, %v48_v18  ;;  %v183_v31 = vpop.f32.mrb[3].mxu0  ;;  %v199_v32 = vpop.f32.mrb[3].mxu1  ;;  %v628_v17 = vunpack.c.h.bf16 %v828_v39  ;;  %v652_v18 = vld [vmem:[%s1066_s3 + $0x20] sm:$0xff]  }
  0xe9   :  { %240 = vst.msk [vmem:[#allocation2] sm:$0xff] %vm28_vm0, %v227_v25  ;;  %244 = vst.msk [vmem:[#allocation2 + $0x20] sm:$0xff] %vm28_vm0, %v231_v26  ;;  %v228_v33 = vadd.f32 %v183_v31, %v42_v23  ;;  %v232_v34 = vadd.f32 %v199_v32, %v46_v24  ;;  %v644_v25 = vunpack.c.h.bf16 %v652_v18  ;;  %v643_v27 = vunpack.c.l.bf16 %v652_v18 }
  0xea   :  { %243 = vst.msk [vmem:[#allocation2 + $0x18] sm:$0xff] %vm28_vm0, %v230_v29  ;;  %247 = vst.msk [vmem:[#allocation2 + $0x38] sm:$0xff] %vm28_vm0, %v234_v30 }
  0xeb   :  { %241 = vst.msk [vmem:[#allocation2 + $0x8] sm:$0xff] %vm28_vm0, %v228_v33  ;;  %245 = vst.msk [vmem:[#allocation2 + $0x28] sm:$0xff] %vm28_vm0, %v232_v34  ;;  %v653_v33 = vld [vmem:[%s1066_s3 + $0x28] sm:$0xff]  }
  0xec   :  { %v647_v39 = vunpack.c.l.bf16 %v653_v33 }
  0xed   :  { %v682_v40 = vpop.f32.mrb[4].mxu1 }
  0xee   :  { %v237_v43 = vadd.f32 %v682_v40, %v51_v35  ;;  %v212_v44 = vpop.f32.mrb[5].mxu1 }
  0xef   :  { %v235_v48 = vadd.f32 %v212_v44, %v49_v38  ;;  %v683_v49 = vpop.f32.mrb[6].mxu1  ;;  %v261_v50 = vld [vmem:[#allocation2 + $0x30] sm:$0xff]  ;;  %v648_v38 = vunpack.c.h.bf16 %v653_v33 }
  0xf0   :  { %v257_v51 = vld [vmem:[#allocation2 + $0x10] sm:$0xff]  ;;  %250 = vst.msk [vmem:[#allocation2 + $0x50] sm:$0xff] %vm28_vm0, %v237_v43  ;;  %v238_v53 = vadd.f32 %v683_v49, %v52_v41  ;;  %v280_v54 = vadd.f32 %v833_v42, %v261_v50  ;;  %v215_v55 = vpop.f32.mrb[7].mxu1  ;;  %v255_v57 = vld [vmem:[#allocation2] sm:$0xff] }
  0xf1   :  { %v276_v56 = vadd.f32 %v833_v42, %v257_v51  ;;  %v259_v59 = vld [vmem:[#allocation2 + $0x20] sm:$0xff]  ;;  %248 = vst.msk [vmem:[#allocation2 + $0x40] sm:$0xff] %vm28_vm0, %v235_v48  ;;  %v236_v61 = vadd.f32 %v215_v55, %v50_v46  ;;  %v274_v62 = vadd.f32 %v833_v42, %v255_v57  ;;  %v258_v63 = vld [vmem:[#allocation2 + $0x18] sm:$0xff] }
  0xf2   :  { %v262_v0 = vld [vmem:[#allocation2 + $0x38] sm:$0xff]  ;;  %251 = vst.msk [vmem:[#allocation2 + $0x58] sm:$0xff] %vm28_vm0, %v238_v53  ;;  %v845_v1 = vadd.f32 %v639_v45, %v280_v54  ;;  %v277_v3 = vadd.f32 %v833_v42, %v258_v63  ;;  %v278_v4 = vadd.f32 %v833_v42, %v259_v59  ;;  %v260_v12 = vld [vmem:[#allocation2 + $0x28] sm:$0xff] }
  0xf3   :  { %v847_v2 = vadd.f32 %v631_v47, %v276_v56  ;;  %249 = vst.msk [vmem:[#allocation2 + $0x48] sm:$0xff] %vm28_vm0, %v236_v61  ;;  %v281_v6 = vadd.f32 %v833_v42, %v262_v0  ;;  %v857_v10 = vadd.f32 %v627_v52, %v274_v62  ;;  %v256_v13 = vld [vmem:[#allocation2 + $0x8] sm:$0xff]  ;;  %v279_v15 = vadd.f32 %v833_v42, %v260_v12 }
  0xf4   :  { %v340_v8 = vsel %vm28_vm0, %v845_v1, 0.0  ;;  %v859_v11 = vadd.f32 %v632_v58, %v277_v3  ;;  %v861_v14 = vadd.f32 %v635_v5, %v278_v4  ;;  %v275_v22 = vadd.f32 %v833_v42, %v256_v13 }
  0xf5   :  { %v328_v9 = vsel %vm28_vm0, %v847_v2, 0.0  ;;  %341 = vadd.xlane.f32.xlu0 %v340_v8  ;;  %v322_v19 = vsel %vm28_vm0, %v857_v10, 0.0  ;;  %v317_v21 = vadd.f32 %v640_v7, %v281_v6  ;;  %v315_v31 = vadd.f32 %v636_v16, %v279_v15 }
  0xf6   :  { %329 = vadd.xlane.f32.xlu1 %v328_v9  ;;  %v331_v20 = vsel %vm28_vm0, %v859_v11, 0.0  ;;  %v334_v29 = vsel %vm28_vm0, %v861_v14, 0.0  ;;  %v311_v32 = vadd.f32 %v628_v17, %v275_v22 }
  0xf7   :  { %v343_v30 = vsel %vm28_vm0, %v317_v21, 0.0  ;;  %v265_v35 = vld [vmem:[#allocation2 + $0x50] sm:$0xff]  ;;  %v337_v40 = vsel %vm28_vm0, %v315_v31, 0.0 }
  0xf8   :  { %v263_v23 = vld [vmem:[#allocation2 + $0x40] sm:$0xff]  ;;  %v325_v41 = vsel %vm28_vm0, %v311_v32, 0.0  ;;  %v284_v44 = vadd.f32 %v833_v42, %v265_v35 }
  0xf9   :  { %323 = vadd.xlane.f32.xlu0 %v322_v19  ;;  %v282_v26 = vadd.f32 %v833_v42, %v263_v23  ;;  %v266_v34 = vld [vmem:[#allocation2 + $0x58] sm:$0xff] }
  0xfa   :  { %332 = vadd.xlane.f32.xlu1 %v331_v20  ;;  %v264_v24 = vld [vmem:[#allocation2 + $0x48] sm:$0xff]  ;;  %v285_v43 = vadd.f32 %v833_v42, %v266_v34  ;;  %v895_v48 = vadd.f32 %v647_v39, %v284_v44 }
  0xfb   :  { %v283_v28 = vadd.f32 %v833_v42, %v264_v24  ;;  %v883_v37 = vadd.f32 %v643_v27, %v282_v26 }
  0xfc   :  { %v893_v47 = vadd.f32 %v648_v38, %v285_v43  ;;  %v352_v42 = vsel %vm28_vm0, %v895_v48, 0.0 }
  0xfd   :  { %335 = vadd.xlane.f32.xlu0 %v334_v29  ;;  %v881_v36 = vadd.f32 %v644_v25, %v283_v28  ;;  %v346_v46 = vsel %vm28_vm0, %v883_v37, 0.0 }
  0xfe   :  { %344 = vadd.xlane.f32.xlu1 %v343_v30  ;;  %v355_v49 = vsel %vm28_vm0, %v893_v47, 0.0 }
  0xff   :  { %v349_v45 = vsel %vm28_vm0, %v881_v36, 0.0 }
 0x101   :  { %326 = vadd.xlane.f32.xlu0 %v325_v41 }
 0x102   :  { %338 = vadd.xlane.f32.xlu1 %v337_v40 }
 0x105   :  { %347 = vadd.xlane.f32.xlu0 %v346_v46 }
 0x106   :  { %350 = vadd.xlane.f32.xlu1 %v349_v45 }
 0x109   :  { %353 = vadd.xlane.f32.xlu0 %v352_v42 }
 0x10a   :  { %356 = vadd.xlane.f32.xlu1 %v355_v49 }
 0x182   :  { %v342_v50 = vpop.xlane.xlu0 %341 }
 0x183   :  { %v330_v51 = vpop.xlane.xlu1 %329  ;;  %v365_v52 = vmul.f32 0.03125, %v342_v50 }
 0x184   :  { %v361_v53 = vmul.f32 0.03125, %v330_v51 }
 0x185   :  { %v902_v54 = vsub.f32 %v845_v1, %v365_v52 }
 0x186   :  { %v905_v55 = vsub.f32 %v847_v2, %v361_v53  ;;  %v324_v56 = vpop.xlane.xlu0 %323 }
 0x187   :  { %v333_v57 = vpop.xlane.xlu1 %332  ;;  %v359_v58 = vmul.f32 0.03125, %v324_v56  ;;  %v389_v0 = vmul.f32 %v902_v54, %v902_v54 }
 0x188   :  { %v362_v59 = vmul.f32 0.03125, %v333_v57  ;;  %v385_v60 = vmul.f32 %v905_v55, %v905_v55 }
 0x189   :  { %v910_v61 = vsub.f32 %v857_v10, %v359_v58  ;;  %v413_v10 = vsel %vm28_vm0, %v389_v0, 0.0 }
 0x18a   :  { %v913_v62 = vsub.f32 %v859_v11, %v362_v59  ;;  %v401_v63 = vsel %vm28_vm0, %v385_v60, 0.0  ;;  %v336_v1 = vpop.xlane.xlu0 %335 }
 0x18b   :  { %v345_v2 = vpop.xlane.xlu1 %344  ;;  %402 = vadd.xlane.f32.xlu0 %v401_v63  ;;  %v363_v3 = vmul.f32 0.03125, %v336_v1  ;;  %v383_v6 = vmul.f32 %v910_v61, %v910_v61 }
 0x18c   :  { %v366_v4 = vmul.f32 0.03125, %v345_v2  ;;  %v386_v5 = vmul.f32 %v913_v62, %v913_v62 }
 0x18d   :  { %v923_v7 = vsub.f32 %v861_v14, %v363_v3  ;;  %v395_v17 = vsel %vm28_vm0, %v383_v6, 0.0  ;;  %v973_v6 = vld [vmem:[%s1068_s4] ss:$0 sm:$0xff] }
 0x18e   :  { %v925_v8 = vsub.f32 %v317_v21, %v366_v4  ;;  %v404_v9 = vsel %vm28_vm0, %v386_v5, 0.0  ;;  %v327_v12 = vpop.xlane.xlu0 %326 }
 0x18f   :  { %405 = vadd.xlane.f32.xlu1 %v404_v9  ;;  %v339_v11 = vpop.xlane.xlu1 %338  ;;  %414 = vadd.xlane.f32.xlu0 %v413_v10  ;;  %v360_v15 = vmul.f32 0.03125, %v327_v12  ;;  %v387_v20 = vmul.f32 %v923_v7, %v923_v7 }
 0x190   :  { %v364_v13 = vmul.f32 0.03125, %v339_v11  ;;  %v390_v16 = vmul.f32 %v925_v8, %v925_v8 }
 0x191   :  { %v934_v14 = vsub.f32 %v311_v32, %v360_v15  ;;  %v407_v29 = vsel %vm28_vm0, %v387_v20, 0.0  ;;  %v979_v15 = vld [vmem:[%s1069_s5] ss:$0 sm:$0xff] }
 0x192   :  { %v932_v18 = vsub.f32 %v315_v31, %v364_v13  ;;  %v416_v19 = vsel %vm28_vm0, %v390_v16, 0.0  ;;  %v348_v22 = vpop.xlane.xlu0 %347 }
 0x193   :  { %417 = vadd.xlane.f32.xlu1 %v416_v19  ;;  %v351_v21 = vpop.xlane.xlu1 %350  ;;  %396 = vadd.xlane.f32.xlu0 %v395_v17  ;;  %v367_v24 = vmul.f32 0.03125, %v348_v22  ;;  %v384_v25 = vmul.f32 %v934_v14, %v934_v14 }
 0x194   :  { %v368_v23 = vmul.f32 0.03125, %v351_v21  ;;  %v388_v26 = vmul.f32 %v932_v18, %v932_v18 }
 0x195   :  { %v947_v28 = vsub.f32 %v883_v37, %v367_v24  ;;  %v398_v30 = vsel %vm28_vm0, %v384_v25, 0.0 }
 0x196   :  { %v944_v27 = vsub.f32 %v881_v36, %v368_v23  ;;  %v354_v32 = vpop.xlane.xlu0 %353  ;;  %v410_v38 = vsel %vm28_vm0, %v388_v26, 0.0 }
 0x197   :  { %v357_v31 = vpop.xlane.xlu1 %356  ;;  %408 = vadd.xlane.f32.xlu0 %v407_v29  ;;  %399 = vadd.xlane.f32.xlu1 %v398_v30  ;;  %v369_v34 = vmul.f32 0.03125, %v354_v32  ;;  %v391_v35 = vmul.f32 %v947_v28, %v947_v28 }
 0x198   :  { %v370_v33 = vmul.f32 0.03125, %v357_v31  ;;  %v392_v40 = vmul.f32 %v944_v27, %v944_v27 }
 0x199   :  { %v958_v37 = vsub.f32 %v895_v48, %v369_v34  ;;  %v419_v39 = vsel %vm28_vm0, %v391_v35, 0.0 }
 0x19a   :  { %v955_v36 = vsub.f32 %v893_v47, %v370_v33  ;;  %v422_v43 = vsel %vm28_vm0, %v392_v40, 0.0 }
 0x19b   :  { %411 = vadd.xlane.f32.xlu1 %v410_v38  ;;  %420 = vadd.xlane.f32.xlu0 %v419_v39  ;;  %v393_v41 = vmul.f32 %v958_v37, %v958_v37 }
 0x19c   :  { %v394_v45 = vmul.f32 %v955_v36, %v955_v36 }
 0x19d   :  { %v425_v44 = vsel %vm28_vm0, %v393_v41, 0.0 }
 0x19e   :  { %v428_v46 = vsel %vm28_vm0, %v394_v45, 0.0 }
 0x19f   :  { %423 = vadd.xlane.f32.xlu1 %v422_v43  ;;  %426 = vadd.xlane.f32.xlu0 %v425_v44 }
 0x1a3   :  { %429 = vadd.xlane.f32.xlu1 %v428_v46 }
 0x218   :  { %v403_v47 = vpop.xlane.xlu0 %402 }
 0x219   :  { %v433_v48 = vmul.f32 0.03125, %v403_v47 }
 0x21b   :  { %v445_v49 = vadd.f32 1e-12, %v433_v48 }
 0x21c   :  { %v406_v42 = vpop.xlane.xlu1 %405  ;;  %v415_v50 = vpop.xlane.xlu0 %414 }
 0x21d   :  { %703 = vrsqrt.f32 %v445_v49  ;;  %v434_v51 = vmul.f32 0.03125, %v406_v42  ;;  %v437_v52 = vmul.f32 0.03125, %v415_v50 }
 0x21f   :  { %v446_v53 = vadd.f32 1e-12, %v434_v51  ;;  %v449_v56 = vadd.f32 1e-12, %v437_v52 }
 0x220   :  { %v418_v57 = vpop.xlane.xlu1 %417  ;;  %v397_v58 = vpop.xlane.xlu0 %396 }
 0x221   :  { %705 = vrsqrt.f32 %v446_v53  ;;  %v438_v59 = vmul.f32 0.03125, %v418_v57  ;;  %v431_v60 = vmul.f32 0.03125, %v397_v58 }
 0x222   :  { %707 = vrsqrt.f32 %v449_v56 }
 0x223   :  { %v450_v63 = vadd.f32 1e-12, %v438_v59  ;;  %v443_v0 = vadd.f32 1e-12, %v431_v60 }
 0x224   :  { %v400_v1 = vpop.xlane.xlu1 %399  ;;  %v409_v2 = vpop.xlane.xlu0 %408 }
 0x225   :  { %709 = vrsqrt.f32 %v450_v63  ;;  %v432_v3 = vmul.f32 0.03125, %v400_v1  ;;  %v435_v4 = vmul.f32 0.03125, %v409_v2 }
 0x226   :  { %711 = vrsqrt.f32 %v443_v0 }
 0x227   :  { %v704_v5 = vpop.eup %703  ;;  %v444_v9 = vadd.f32 1e-12, %v432_v3  ;;  %v447_v10 = vadd.f32 1e-12, %v435_v4 }
 0x228   :  { %v469_v11 = vmul.f32 %v704_v5, %v905_v55  ;;  %v412_v12 = vpop.xlane.xlu1 %411  ;;  %v421_v13 = vpop.xlane.xlu0 %420 }
 0x229   :  { %713 = vrsqrt.f32 %v444_v9  ;;  %v436_v16 = vmul.f32 0.03125, %v412_v12  ;;  %v439_v17 = vmul.f32 0.03125, %v421_v13 }
 0x22a   :  { %v488_v19 = vmul.f32 %v973_v6, %v469_v11  ;;  %715 = vrsqrt.f32 %v447_v10 }
 0x22b   :  { %v706_v20 = vpop.eup %705  ;;  %v448_v21 = vadd.f32 1e-12, %v436_v16  ;;  %v451_v22 = vadd.f32 1e-12, %v439_v17 }
 0x22c   :  { %v708_v23 = vpop.eup %707  ;;  %v507_v55 = vadd.f32 %v979_v15, %v488_v19  ;;  %v470_v24 = vmul.f32 %v706_v20, %v913_v62  ;;  %v424_v25 = vpop.xlane.xlu1 %423 }
 0x22d   :  { %v427_v26 = vpop.xlane.xlu0 %426  ;;  %v473_v29 = vmul.f32 %v708_v23, %v902_v54  ;;  %717 = vrsqrt.f32 %v448_v21  ;;  %v440_v30 = vmul.f32 0.03125, %v424_v25 }
 0x22e   :  { %v441_v31 = vmul.f32 0.03125, %v427_v26  ;;  %v615_v32 = vpack.c.bf16 %v507_v55, %v507_v55  ;;  %v489_v33 = vmul.f32 %v973_v6, %v470_v24  ;;  %719 = vrsqrt.f32 %v451_v22 }
 0x22f   :  { %v710_v34 = vpop.eup %709  ;;  %v492_v35 = vmul.f32 %v973_v6, %v473_v29  ;;  %v452_v38 = vadd.f32 1e-12, %v440_v30 }
 0x230   :  { %v453_v39 = vadd.f32 1e-12, %v441_v31  ;;  %v712_v40 = vpop.eup %711  ;;  %568 = vst.msk [vmem:[%s1070_s6 + $0x8] sm:$0xf] %vm565_vm2, %v615_v32  ;;  %v508_v54 = vadd.f32 %v979_v15, %v489_v33  ;;  %v474_v62 = vmul.f32 %v710_v34, %v925_v8  ;;  %v430_v41 = vpop.xlane.xlu1 %429 }
 0x231   :  { %v511_v43 = vadd.f32 %v979_v15, %v492_v35  ;;  %v467_v44 = vmul.f32 %v712_v40, %v910_v61  ;;  %721 = vrsqrt.f32 %v452_v38  ;;  %v442_v45 = vmul.f32 0.03125, %v430_v41 }
 0x232   :  { %v616_v46 = vpack.c.bf16 %v508_v54, %v508_v54  ;;  %v493_v47 = vmul.f32 %v973_v6, %v474_v62  ;;  %723 = vrsqrt.f32 %v453_v39 }
 0x233   :  { %v714_v48 = vpop.eup %713  ;;  %v619_v49 = vpack.c.bf16 %v511_v43, %v511_v43  ;;  %v486_v42 = vmul.f32 %v973_v6, %v467_v44  ;;  %v454_v50 = vadd.f32 1e-12, %v442_v45 }
 0x234   :  { %v716_v51 = vpop.eup %715  ;;  %569 = vst.msk [vmem:[%s1070_s6 + $0xc] sm:$0xf] %vm565_vm2, %v616_v46  ;;  %v512_v8 = vadd.f32 %v979_v15, %v493_v47  ;;  %v468_v61 = vmul.f32 %v714_v48, %v934_v14 }
 0x235   :  { %572 = vst.msk [vmem:[%s1070_s6 + $0x18] sm:$0xf] %vm565_vm2, %v619_v49  ;;  %v505_v52 = vadd.f32 %v979_v15, %v486_v42  ;;  %v471_v53 = vmul.f32 %v716_v51, %v923_v7  ;;  %725 = vrsqrt.f32 %v454_v50 }
 0x236   :  { %v620_v56 = vpack.c.bf16 %v512_v8, %v512_v8  ;;  %v487_v57 = vmul.f32 %v973_v6, %v468_v61 }
 0x237   :  { %v718_v58 = vpop.eup %717  ;;  %v613_v59 = vpack.c.bf16 %v505_v52, %v505_v52  ;;  %v490_v60 = vmul.f32 %v973_v6, %v471_v53 }
 0x238   :  { %v720_v63 = vpop.eup %719  ;;  %573 = vst.msk [vmem:[%s1070_s6 + $0x1c] sm:$0xf] %vm565_vm2, %v620_v56  ;;  %v506_v14 = vadd.f32 %v979_v15, %v487_v57  ;;  %v472_v0 = vmul.f32 %v718_v58, %v932_v18 }
 0x239   :  { %566 = vst.msk [vmem:[%s1070_s6] sm:$0xf] %vm565_vm2, %v613_v59  ;;  %v509_v7 = vadd.f32 %v979_v15, %v490_v60  ;;  %v475_v1 = vmul.f32 %v720_v63, %v947_v28 }
 0x23a   :  { %v614_v2 = vpack.c.bf16 %v506_v14, %v506_v14  ;;  %v491_v3 = vmul.f32 %v973_v6, %v472_v0 }
 0x23b   :  { %v722_v4 = vpop.eup %721  ;;  %v617_v5 = vpack.c.bf16 %v509_v7, %v509_v7  ;;  %v494_v9 = vmul.f32 %v973_v6, %v475_v1 }
 0x23c   :  { %v724_v10 = vpop.eup %723  ;;  %567 = vst.msk [vmem:[%s1070_s6 + $0x4] sm:$0xf] %vm565_vm2, %v614_v2  ;;  %v510_v18 = vadd.f32 %v979_v15, %v491_v3  ;;  %v476_v11 = vmul.f32 %v722_v4, %v944_v27 }
 0x23d   :  { %570 = vst.msk [vmem:[%s1070_s6 + $0x10] sm:$0xf] %vm565_vm2, %v617_v5  ;;  %v513_v28 = vadd.f32 %v979_v15, %v494_v9  ;;  %v477_v12 = vmul.f32 %v724_v10, %v958_v37 }
 0x23e   :  { %v618_v13 = vpack.c.bf16 %v510_v18, %v510_v18  ;;  %v495_v16 = vmul.f32 %v973_v6, %v476_v11 }
 0x23f   :  { %v726_v17 = vpop.eup %725  ;;  %v621_v19 = vpack.c.bf16 %v513_v28, %v513_v28  ;;  %v496_v20 = vmul.f32 %v973_v6, %v477_v12 }
 0x240   :  { %571 = vst.msk [vmem:[%s1070_s6 + $0x14] sm:$0xf] %vm565_vm2, %v618_v13  ;;  %v514_v27 = vadd.f32 %v979_v15, %v495_v16  ;;  %v478_v21 = vmul.f32 %v726_v17, %v955_v36 }
 0x241   :  { %574 = vst.msk [vmem:[%s1070_s6 + $0x20] sm:$0xf] %vm565_vm2, %v621_v19  ;;  %v515_v37 = vadd.f32 %v979_v15, %v496_v20 }
 0x242   :  { %v622_v22 = vpack.c.bf16 %v514_v27, %v514_v27  ;;  %v497_v23 = vmul.f32 %v973_v6, %v478_v21 }
 0x243   :  { %v623_v55 = vpack.c.bf16 %v515_v37, %v515_v37 }
 0x244   :  { %575 = vst.msk [vmem:[%s1070_s6 + $0x24] sm:$0xf] %vm565_vm2, %v622_v22  ;;  %v516_v24 = vadd.f32 %v979_v15, %v497_v23 }
 0x245   :  { %576 = vst.msk [vmem:[%s1070_s6 + $0x28] sm:$0xf] %vm565_vm2, %v623_v55 }
 0x246   :  { %v624_v36 = vpack.c.bf16 %v516_v24, %v516_v24 }
 0x248   :  { %577 = vst.msk [vmem:[%s1070_s6 + $0x2c] sm:$0xf] %vm565_vm2, %v624_v36 }

</bundles_post_ra>
